<compile_context>
chip_gen: v7x
topology: tpu7x:2x2x1
jax: 0.10.0
libtpu: 0.0.40
codegen_flags: <defaults>
</compile_context>

<pallas_src>
import jax
import jax.numpy as jnp
from jax.experimental import pallas as pl
from jax.experimental.pallas import tpu as pltpu


N_FEATURES = 100
H0, H1, H2 = 256, 512, 1024
N_OUT = 784

K_PAD = 128       # 100 -> 128 : aligned K for the first MXU pass
N_OUT_PAD = 896   # 784 -> 896 = 7*128 : lane-dense (unmasked) output stores


def _round_up(n, m):
    return ((n + m - 1) // m) * m


def _leaky_relu(x, slope=0.2):
    return jnp.where(x > 0, x, slope * x)


def generator_kernel(x_ref,
                     w0_ref, b0_ref,
                     w1_ref, b1_ref,
                     w2_ref, b2_ref,
                     w3_ref, b3_ref,
                     out_ref):
    # Four fused MXU matmuls (bf16 inputs, fp32 accumulation) with bias +
    # LeakyReLU epilogues on the VPU. Weights/biases are VMEM-resident across
    # the batch grid (constant index_map -> no re-fetch after the first tile).
    h = jnp.dot(x_ref[...], w0_ref[...],
                preferred_element_type=jnp.float32) + b0_ref[...]
    h = _leaky_relu(h)

    h = jnp.dot(h.astype(jnp.bfloat16), w1_ref[...],
                preferred_element_type=jnp.float32) + b1_ref[...]
    h = _leaky_relu(h)

    h = jnp.dot(h.astype(jnp.bfloat16), w2_ref[...],
                preferred_element_type=jnp.float32) + b2_ref[...]
    h = _leaky_relu(h)

    h = jnp.dot(h.astype(jnp.bfloat16), w3_ref[...],
                preferred_element_type=jnp.float32) + b3_ref[...]
    # tanh in f32 (valid on v5e's f32-only EUP as well), bf16 store halves the
    # output HBM stream; tanh output is in [-1,1] so bf16 loss is negligible.
    out_ref[...] = jnp.tanh(h).astype(jnp.bfloat16)


def _prepare_params(params):
    """Pad to lane-aligned shapes, cast weights to bf16 (biases stay fp32).

    Zero padding does not change the result:
      - extra w0 rows (100 -> 128) multiply zero-padded x columns,
      - extra w3/b3 columns (784 -> 896) produce output columns sliced off.
    """
    (w0, b0), (w1, b1), (w2, b2), (w3, b3) = params
    w0p = jnp.zeros((K_PAD, H0), jnp.float32).at[:N_FEATURES, :].set(w0)
    w3p = jnp.zeros((H2, N_OUT_PAD), jnp.float32).at[:, :N_OUT].set(w3)
    b3p = jnp.zeros((1, N_OUT_PAD), jnp.float32).at[:, :N_OUT].set(b3)
    ws = [w.astype(jnp.bfloat16) for w in (w0p, w1, w2, w3p)]
    bs = [b0, b1, b2, b3p]
    return ws, bs


def _pick_tile(B):
    """Batch-tile selection.

    - B <= 64:  one small tile, rounded to 16 sublanes (min bf16 tile) to
                avoid a packed-sublane relayout.
    - 65..255:  two tiles so both v7x TensorCores are busy.
    - B >= 256: MXU-filling tiles (multiple of 128, capped at 512) while still
                producing >= 2 grid steps.
    """
    if B <= 64:
        return _round_up(max(B, 1), 16)
    if B < 256:
        return _round_up(-(-B // 2), 16)
    return min(512, max(128, ((B // 2) // 128) * 128))


@jax.jit
def generator_forward(x, params):
    B = x.shape[0]
    TM = _pick_tile(B)
    Bp = _round_up(B, TM)

    # Pad x to [Bp, 128] in bf16 (zero rows / zero feature columns).
    xp = jnp.zeros((Bp, K_PAD), jnp.bfloat16).at[:B, :N_FEATURES].set(
        x.astype(jnp.bfloat16))
    (w0, w1, w2, w3), (b0, b1, b2, b3) = _prepare_params(params)

    grid = (Bp // TM,)

    def resident(shape):
        # Full-array block, same block index for every grid step -> loaded
        # into VMEM once and reused across all batch tiles.
        return pl.BlockSpec(shape, lambda i: (0, 0))

    weight_elems = K_PAD * H0 + H0 * H1 + H1 * H2 + H2 * N_OUT_PAD
    flops = 2 * Bp * weight_elems
    bytes_accessed = (xp.size * 2                       # x in (bf16)
                      + Bp * N_OUT_PAD * 2              # out (bf16)
                      + 2 * weight_elems                # bf16 weights
                      + 4 * (H0 + H1 + H2 + N_OUT_PAD)) # fp32 biases

    out = pl.pallas_call(
        generator_kernel,
        out_shape=jax.ShapeDtypeStruct((Bp, N_OUT_PAD), jnp.bfloat16),
        grid=grid,
        in_specs=[
            pl.BlockSpec((TM, K_PAD), lambda i: (i, 0)),   # x: tiled on batch
            resident((K_PAD, H0)), resident((1, H0)),
            resident((H0, H1)),    resident((1, H1)),
            resident((H1, H2)),    resident((1, H2)),
            resident((H2, N_OUT_PAD)), resident((1, N_OUT_PAD)),
        ],
        out_specs=pl.BlockSpec((TM, N_OUT_PAD), lambda i: (i, 0)),
        compiler_params=pltpu.CompilerParams(
            dimension_semantics=("parallel",),
            vmem_limit_bytes=48 << 20,
        ),
        cost_estimate=pl.CostEstimate(
            flops=flops,
            transcendentals=Bp * N_OUT_PAD,
            bytes_accessed=bytes_accessed,
        ),
    )(xp, w0, b0, w1, b1, w2, b2, w3, b3)

    return out[:B, :N_OUT].astype(jnp.float32)


def init_params(key):
    """Deterministic init mirroring PyTorch nn.Linear default:
    U(-1/sqrt(fan_in), 1/sqrt(fan_in)) for both weight and bias.
    Weights stored as [in, out] (transposed vs. PyTorch's [out, in])."""
    dims = [(N_FEATURES, H0), (H0, H1), (H1, H2), (H2, N_OUT)]
    params = []
    for (fan_in, fan_out) in dims:
        key, kw, kb = jax.random.split(key, 3)
        bound = 1.0 / jnp.sqrt(fan_in)
        w = jax.random.uniform(kw, (fan_in, fan_out), jnp.float32, -bound, bound)
        b = jax.random.uniform(kb, (1, fan_out), jnp.float32, -bound, bound)
        params.append((w, b))
    return params


def reference_forward(x, params):
    """Pure-JAX reference mirroring the kernel's numerics
    (bf16 matmul inputs, fp32 accumulation / epilogue)."""
    h = x
    for i, (w, b) in enumerate(params):
        h = jnp.dot(h.astype(jnp.bfloat16), w.astype(jnp.bfloat16),
                    preferred_element_type=jnp.float32) + b
        if i < 3:
            h = _leaky_relu(h)
        else:
            h = jnp.tanh(h)
    return h


if __name__ == "__main__":
    key = jax.random.PRNGKey(0)
    key, kx, kx2, kx3 = jax.random.split(key, 4)
    params = init_params(key)

    # Small batch (single small tile).
    batch = 8
    x = jax.random.normal(kx, (batch, N_FEATURES), jnp.float32)
    out = jax.block_until_ready(generator_forward(x, params))
    ref = reference_forward(x, params)
    assert out.shape == (batch, N_OUT), out.shape
    assert jnp.allclose(out, ref, atol=2e-2, rtol=2e-2), "mismatch vs reference (B=8)"

    # Medium batch (two-tile path for v7x megacore, with batch padding).
    batch2 = 136
    x2 = jax.random.normal(kx2, (batch2, N_FEATURES), jnp.float32)
    out2 = jax.block_until_ready(generator_forward(x2, params))
    ref2 = reference_forward(x2, params)
    assert out2.shape == (batch2, N_OUT), out2.shape
    assert jnp.allclose(out2, ref2, atol=2e-2, rtol=2e-2), "mismatch vs reference (B=136)"

    # Larger batch (128-multiple tile path, multi-tile grid).
    batch3 = 272
    x3 = jax.random.normal(kx3, (batch3, N_FEATURES), jnp.float32)
    out3 = jax.block_until_ready(generator_forward(x3, params))
    ref3 = reference_forward(x3, params)
    assert out3.shape == (batch3, N_OUT), out3.shape
    assert jnp.allclose(out3, ref3, atol=2e-2, rtol=2e-2), "mismatch vs reference (B=272)"

    print("KERNEL_OK")
</pallas_src>

<mosaic_0001>
module attributes {stable_mosaic.version = 11 : i64} {
  func.func @generator_kernel(%arg0: i32, %arg1: memref<16x128xbf16, #tpu.memory_space<vmem>>, %arg2: memref<128x256xbf16, #tpu.memory_space<vmem>>, %arg3: memref<1x256xf32, #tpu.memory_space<vmem>>, %arg4: memref<256x512xbf16, #tpu.memory_space<vmem>>, %arg5: memref<1x512xf32, #tpu.memory_space<vmem>>, %arg6: memref<512x1024xbf16, #tpu.memory_space<vmem>>, %arg7: memref<1x1024xf32, #tpu.memory_space<vmem>>, %arg8: memref<1024x896xbf16, #tpu.memory_space<vmem>>, %arg9: memref<1x896xf32, #tpu.memory_space<vmem>>, %arg10: memref<16x896xbf16, #tpu.memory_space<vmem>>) attributes {dimension_semantics = [#tpu.dimension_semantics<parallel>], iteration_bounds = array<i64: 1>, scalar_prefetch = 0 : i64, scratch_operands = 0 : i64, tpu.core_type = #tpu.core_type<tc>, window_params = [{transform_indices = @transform_0, window_bounds = array<i64: 16, 128>}, {pipeline_mode = #tpu.pipeline_mode<synchronous>, transform_indices = @transform_1, window_bounds = array<i64: 128, 256>}, {pipeline_mode = #tpu.pipeline_mode<synchronous>, transform_indices = @transform_2, window_bounds = array<i64: 1, 256>}, {pipeline_mode = #tpu.pipeline_mode<synchronous>, transform_indices = @transform_3, window_bounds = array<i64: 256, 512>}, {pipeline_mode = #tpu.pipeline_mode<synchronous>, transform_indices = @transform_4, window_bounds = array<i64: 1, 512>}, {pipeline_mode = #tpu.pipeline_mode<synchronous>, transform_indices = @transform_5, window_bounds = array<i64: 512, 1024>}, {pipeline_mode = #tpu.pipeline_mode<synchronous>, transform_indices = @transform_6, window_bounds = array<i64: 1, 1024>}, {pipeline_mode = #tpu.pipeline_mode<synchronous>, transform_indices = @transform_7, window_bounds = array<i64: 1024, 896>}, {pipeline_mode = #tpu.pipeline_mode<synchronous>, transform_indices = @transform_8, window_bounds = array<i64: 1, 896>}, {transform_indices = @transform_9, window_bounds = array<i64: 16, 896>}]} {
    %c0 = arith.constant 0 : index
    %c0_0 = arith.constant 0 : index
    %0 = vector.load %arg1[%c0, %c0_0] : memref<16x128xbf16, #tpu.memory_space<vmem>>, vector<16x128xbf16>
    %c0_1 = arith.constant 0 : index
    %c0_2 = arith.constant 0 : index
    %1 = vector.load %arg2[%c0_1, %c0_2] : memref<128x256xbf16, #tpu.memory_space<vmem>>, vector<128x256xbf16>
    %cst = arith.constant dense<0.000000e+00> : vector<16x256xf32>
    %2 = tpu.matmul %0, %1, %cst {dimension_numbers = #tpu.dot_dimension_numbers<[1], [0], [0], [1], [0, 0, 1, 1], [], []>} : vector<16x128xbf16>, vector<128x256xbf16>, vector<16x256xf32> -> vector<16x256xf32>
    %c0_3 = arith.constant 0 : index
    %c0_4 = arith.constant 0 : index
    %3 = vector.load %arg3[%c0_3, %c0_4] : memref<1x256xf32, #tpu.memory_space<vmem>>, vector<1x256xf32>
    %4 = vector.broadcast %3 : vector<1x256xf32> to vector<16x256xf32>
    %5 = arith.addf %2, %4 : vector<16x256xf32>
    %cst_5 = arith.constant 0.000000e+00 : f32
    %6 = vector.broadcast %cst_5 : f32 to vector<16x256xf32>
    %7 = arith.cmpf ogt, %5, %6 : vector<16x256xf32>
    %cst_6 = arith.constant 2.000000e-01 : f32
    %8 = vector.broadcast %cst_6 : f32 to vector<16x256xf32>
    %9 = arith.mulf %8, %5 : vector<16x256xf32>
    %10 = arith.select %7, %5, %9 : vector<16x256xi1>, vector<16x256xf32>
    %11 = arith.truncf %10 : vector<16x256xf32> to vector<16x256xbf16>
    %c0_7 = arith.constant 0 : index
    %c0_8 = arith.constant 0 : index
    %12 = vector.load %arg4[%c0_7, %c0_8] : memref<256x512xbf16, #tpu.memory_space<vmem>>, vector<256x512xbf16>
    %cst_9 = arith.constant dense<0.000000e+00> : vector<16x512xf32>
    %13 = tpu.matmul %11, %12, %cst_9 {dimension_numbers = #tpu.dot_dimension_numbers<[1], [0], [0], [1], [0, 0, 1, 1], [], []>} : vector<16x256xbf16>, vector<256x512xbf16>, vector<16x512xf32> -> vector<16x512xf32>
    %c0_10 = arith.constant 0 : index
    %c0_11 = arith.constant 0 : index
    %14 = vector.load %arg5[%c0_10, %c0_11] : memref<1x512xf32, #tpu.memory_space<vmem>>, vector<1x512xf32>
    %15 = vector.broadcast %14 : vector<1x512xf32> to vector<16x512xf32>
    %16 = arith.addf %13, %15 : vector<16x512xf32>
    %cst_12 = arith.constant 0.000000e+00 : f32
    %17 = vector.broadcast %cst_12 : f32 to vector<16x512xf32>
    %18 = arith.cmpf ogt, %16, %17 : vector<16x512xf32>
    %cst_13 = arith.constant 2.000000e-01 : f32
    %19 = vector.broadcast %cst_13 : f32 to vector<16x512xf32>
    %20 = arith.mulf %19, %16 : vector<16x512xf32>
    %21 = arith.select %18, %16, %20 : vector<16x512xi1>, vector<16x512xf32>
    %22 = arith.truncf %21 : vector<16x512xf32> to vector<16x512xbf16>
    %c0_14 = arith.constant 0 : index
    %c0_15 = arith.constant 0 : index
    %23 = vector.load %arg6[%c0_14, %c0_15] : memref<512x1024xbf16, #tpu.memory_space<vmem>>, vector<512x1024xbf16>
    %cst_16 = arith.constant dense<0.000000e+00> : vector<16x1024xf32>
    %24 = tpu.matmul %22, %23, %cst_16 {dimension_numbers = #tpu.dot_dimension_numbers<[1], [0], [0], [1], [0, 0, 1, 1], [], []>} : vector<16x512xbf16>, vector<512x1024xbf16>, vector<16x1024xf32> -> vector<16x1024xf32>
    %c0_17 = arith.constant 0 : index
    %c0_18 = arith.constant 0 : index
    %25 = vector.load %arg7[%c0_17, %c0_18] : memref<1x1024xf32, #tpu.memory_space<vmem>>, vector<1x1024xf32>
    %26 = vector.broadcast %25 : vector<1x1024xf32> to vector<16x1024xf32>
    %27 = arith.addf %24, %26 : vector<16x1024xf32>
    %cst_19 = arith.constant 0.000000e+00 : f32
    %28 = vector.broadcast %cst_19 : f32 to vector<16x1024xf32>
    %29 = arith.cmpf ogt, %27, %28 : vector<16x1024xf32>
    %cst_20 = arith.constant 2.000000e-01 : f32
    %30 = vector.broadcast %cst_20 : f32 to vector<16x1024xf32>
    %31 = arith.mulf %30, %27 : vector<16x1024xf32>
    %32 = arith.select %29, %27, %31 : vector<16x1024xi1>, vector<16x1024xf32>
    %33 = arith.truncf %32 : vector<16x1024xf32> to vector<16x1024xbf16>
    %c0_21 = arith.constant 0 : index
    %c0_22 = arith.constant 0 : index
    %34 = vector.load %arg8[%c0_21, %c0_22] : memref<1024x896xbf16, #tpu.memory_space<vmem>>, vector<1024x896xbf16>
    %cst_23 = arith.constant dense<0.000000e+00> : vector<16x896xf32>
    %35 = tpu.matmul %33, %34, %cst_23 {dimension_numbers = #tpu.dot_dimension_numbers<[1], [0], [0], [1], [0, 0, 1, 1], [], []>} : vector<16x1024xbf16>, vector<1024x896xbf16>, vector<16x896xf32> -> vector<16x896xf32>
    %c0_24 = arith.constant 0 : index
    %c0_25 = arith.constant 0 : index
    %36 = vector.load %arg9[%c0_24, %c0_25] : memref<1x896xf32, #tpu.memory_space<vmem>>, vector<1x896xf32>
    %37 = vector.broadcast %36 : vector<1x896xf32> to vector<16x896xf32>
    %38 = arith.addf %35, %37 : vector<16x896xf32>
    %39 = math.tanh %38 : vector<16x896xf32>
    %40 = arith.truncf %39 : vector<16x896xf32> to vector<16x896xbf16>
    %c0_26 = arith.constant 0 : index
    %c0_27 = arith.constant 0 : index
    %41 = vector.load %arg10[%c0_26, %c0_27] : memref<16x896xbf16, #tpu.memory_space<vmem>>, vector<16x896xbf16>
    tpu.vector_store %arg10[%c0_26, %c0_27], %40 {strides = array<i32>} : memref<16x896xbf16, #tpu.memory_space<vmem>>, vector<16x896xbf16>,
    return
  }
  func.func @transform_0(%arg0: i32) -> (i32, i32) {
    %c0_i32 = arith.constant 0 : i32
    %c0_i32_0 = arith.constant 0 : i32
    return %arg0, %c0_i32 : i32, i32
  }
  func.func @transform_1(%arg0: i32) -> (i32, i32) {
    %c0_i32 = arith.constant 0 : i32
    %c0_i32_0 = arith.constant 0 : i32
    %c0_i32_1 = arith.constant 0 : i32
    return %c0_i32, %c0_i32_0 : i32, i32
  }
  func.func @transform_2(%arg0: i32) -> (i32, i32) {
    %c0_i32 = arith.constant 0 : i32
    %c0_i32_0 = arith.constant 0 : i32
    %c0_i32_1 = arith.constant 0 : i32
    return %c0_i32, %c0_i32_0 : i32, i32
  }
  func.func @transform_3(%arg0: i32) -> (i32, i32) {
    %c0_i32 = arith.constant 0 : i32
    %c0_i32_0 = arith.constant 0 : i32
    %c0_i32_1 = arith.constant 0 : i32
    return %c0_i32, %c0_i32_0 : i32, i32
  }
  func.func @transform_4(%arg0: i32) -> (i32, i32) {
    %c0_i32 = arith.constant 0 : i32
    %c0_i32_0 = arith.constant 0 : i32
    %c0_i32_1 = arith.constant 0 : i32
    return %c0_i32, %c0_i32_0 : i32, i32
  }
  func.func @transform_5(%arg0: i32) -> (i32, i32) {
    %c0_i32 = arith.constant 0 : i32
    %c0_i32_0 = arith.constant 0 : i32
    %c0_i32_1 = arith.constant 0 : i32
    return %c0_i32, %c0_i32_0 : i32, i32
  }
  func.func @transform_6(%arg0: i32) -> (i32, i32) {
    %c0_i32 = arith.constant 0 : i32
    %c0_i32_0 = arith.constant 0 : i32
    %c0_i32_1 = arith.constant 0 : i32
    return %c0_i32, %c0_i32_0 : i32, i32
  }
  func.func @transform_7(%arg0: i32) -> (i32, i32) {
    %c0_i32 = arith.constant 0 : i32
    %c0_i32_0 = arith.constant 0 : i32
    %c0_i32_1 = arith.constant 0 : i32
    return %c0_i32, %c0_i32_0 : i32, i32
  }
  func.func @transform_8(%arg0: i32) -> (i32, i32) {
    %c0_i32 = arith.constant 0 : i32
    %c0_i32_0 = arith.constant 0 : i32
    %c0_i32_1 = arith.constant 0 : i32
    return %c0_i32, %c0_i32_0 : i32, i32
  }
  func.func @transform_9(%arg0: i32) -> (i32, i32) {
    %c0_i32 = arith.constant 0 : i32
    %c0_i32_0 = arith.constant 0 : i32
    return %arg0, %c0_i32 : i32, i32
  }
}

</mosaic_0001>

<bundles_post_ra>
// kernel: generator_forward.1
= control target key start
LH: loop header
LB: loop body
LE: loop exit
PB: predicated region body
PF: predicated region fallthrough
CT: control target
= control target key end

     0   :  { %v8066_v1 = vmov 0   ;;  %s10690_s1 = inlined_call_operand.vmem [shape: bf16[128,256], index: 1, kind: input, shape index: {}]   ;;  %s10691_s0 = inlined_call_operand.vmem [shape: bf16[16,128], index: 0, kind: input, shape index: {}]   ;;  %s10692_s3 = inlined_call_operand.vmem [shape: bf16[256,512], index: 3, kind: input, shape index: {}]   ;;  %s10693_s5 = inlined_call_operand.vmem [shape: bf16[512,1024], index: 5, kind: input, shape index: {}]   ;;  %s10694_s2 = inlined_call_operand.vmem [shape: f32[1,256], index: 2, kind: input, shape index: {}]   ;;  %s10695_s4 = inlined_call_operand.vmem [shape: f32[1,512], index: 4, kind: input, shape index: {}]   ;;  %s10696_s7 = inlined_call_operand.vmem [shape: bf16[1024,896], index: 7, kind: input, shape index: {}]   ;;  %s10697_s6 = inlined_call_operand.vmem [shape: f32[1,1024], index: 6, kind: input, shape index: {}]   ;;  %s10698_s8 = inlined_call_operand.vmem [shape: f32[1,896], index: 8, kind: input, shape index: {}]   ;;  %s10699_s9 = inlined_call_operand.vmem [shape: bf16[16,896], index: 9, kind: output, shape index: {}]  }
   0x1   :  { %v7277_v0 = vld [vmem:[%s10690_s1 + $0x4] ss:$8 sps:$4 sm:$0xff]   ;;  %181 = vmatprep.mubr.bf16.mxu0 %v8066_v1  ;;  %v7279_v2 = vld [vmem:[%s10690_s1] ss:$8 sps:$4 sm:$0xff]   ;;  %v7280_v3 = vld [vmem:[%s10690_s1 + $0x14] ss:$8 sps:$4 sm:$0xff]  }
   0x2   :  { %149 = vmatprep.subr.bf16.mxu0 %v7277_v0  ;;  %v7282_v4 = vld [vmem:[%s10690_s1 + $0x10] ss:$8 sps:$4 sm:$0xff]   ;;  %v7283_v5 = vld [vmem:[%s10690_s1 + $0x24] ss:$8 sps:$4 sm:$0xff]   ;;  %v7285_v6 = vld [vmem:[%s10690_s1 + $0x20] ss:$8 sps:$4 sm:$0xff]  }
   0x3   :  { %150 = vmatpush1.bf16.msra.mxu0 %v7279_v2  ;;  %v7286_v7 = vld [vmem:[%s10690_s1 + $0x34] ss:$8 sps:$4 sm:$0xff]   ;;  %v7288_v8 = vld [vmem:[%s10690_s1 + $0x30] ss:$8 sps:$4 sm:$0xff]   ;;  %v7289_v9 = vld [vmem:[%s10690_s1 + $0x44] ss:$8 sps:$4 sm:$0xff]  }
   0x4   :  { %151 = vmatprep.subr.bf16.mxu0 %v7280_v3  ;;  %v7291_v10 = vld [vmem:[%s10690_s1 + $0x40] ss:$8 sps:$4 sm:$0xff]   ;;  %v7292_v11 = vld [vmem:[%s10690_s1 + $0x54] ss:$8 sps:$4 sm:$0xff]   ;;  %v7294_v12 = vld [vmem:[%s10690_s1 + $0x50] ss:$8 sps:$4 sm:$0xff]  }
   0x5   :  { %v7295_v13 = vld [vmem:[%s10690_s1 + $0x64] ss:$8 sps:$4 sm:$0xff]   ;;  %v7297_v14 = vld [vmem:[%s10690_s1 + $0x60] ss:$8 sps:$4 sm:$0xff]   ;;  %v7298_v15 = vld [vmem:[%s10690_s1 + $0x74] ss:$8 sps:$4 sm:$0xff]  }
   0x6   :  { %v7300_v16 = vld [vmem:[%s10690_s1 + $0x70] ss:$8 sps:$4 sm:$0xff]   ;;  %v7304_v17 = vld [vmem:[%s10692_s3 + $0x4] ss:$16 sps:$4 sm:$0xff]   ;;  %v7352_v50 = vld [vmem:[%s10692_s3 + $0xc] ss:$16 sps:$4 sm:$0xff]  }
   0x7   :  { %152 = vmatpush1.bf16.msra.mxu0 %v7282_v4  ;;  %v7301_v18 = vld [vmem:[%s10691_s0] sm:$0xff]  }
   0x8   :  { %153 = vmatprep.subr.bf16.mxu0 %v7283_v5  ;;  %v7302_v19 = vld [vmem:[%s10692_s3] ss:$16 sps:$4 sm:$0xff]   ;;  %v7307_v20 = vld [vmem:[%s10692_s3 + $0x24] ss:$16 sps:$4 sm:$0xff]  }
   0x9   :  { %v7305_v21 = vld [vmem:[%s10692_s3 + $0x20] ss:$16 sps:$4 sm:$0xff]   ;;  %v7310_v22 = vld [vmem:[%s10692_s3 + $0x44] ss:$16 sps:$4 sm:$0xff]  }
   0xa   :  { %v7308_v23 = vld [vmem:[%s10692_s3 + $0x40] ss:$16 sps:$4 sm:$0xff]   ;;  %v7313_v24 = vld [vmem:[%s10692_s3 + $0x64] ss:$16 sps:$4 sm:$0xff]  }
   0xb   :  { %154 = vmatpush1.bf16.msra.mxu0 %v7285_v6  ;;  %v7311_v25 = vld [vmem:[%s10692_s3 + $0x60] ss:$16 sps:$4 sm:$0xff]   ;;  %v7316_v26 = vld [vmem:[%s10692_s3 + $0x84] ss:$16 sps:$4 sm:$0xff]  }
   0xc   :  { %155 = vmatprep.subr.bf16.mxu0 %v7286_v7  ;;  %v7314_v27 = vld [vmem:[%s10692_s3 + $0x80] ss:$16 sps:$4 sm:$0xff]   ;;  %v7319_v28 = vld [vmem:[%s10692_s3 + $0xa4] ss:$16 sps:$4 sm:$0xff]  }
   0xd   :  { %v7317_v29 = vld [vmem:[%s10692_s3 + $0xa0] ss:$16 sps:$4 sm:$0xff]   ;;  %v7322_v30 = vld [vmem:[%s10692_s3 + $0xc4] ss:$16 sps:$4 sm:$0xff]  }
   0xe   :  { %v7320_v31 = vld [vmem:[%s10692_s3 + $0xc0] ss:$16 sps:$4 sm:$0xff]   ;;  %v7325_v32 = vld [vmem:[%s10692_s3 + $0xe4] ss:$16 sps:$4 sm:$0xff]  }
   0xf   :  { %156 = vmatpush1.bf16.msra.mxu0 %v7288_v8  ;;  %v7323_v33 = vld [vmem:[%s10692_s3 + $0xe0] ss:$16 sps:$4 sm:$0xff]   ;;  %v7328_v34 = vld [vmem:[%s10692_s3 + $0x104] ss:$16 sps:$4 sm:$0xff]  }
  0x10   :  { %157 = vmatprep.subr.bf16.mxu0 %v7289_v9  ;;  %v7326_v35 = vld [vmem:[%s10692_s3 + $0x100] ss:$16 sps:$4 sm:$0xff]   ;;  %v7331_v36 = vld [vmem:[%s10692_s3 + $0x124] ss:$16 sps:$4 sm:$0xff]  }
  0x11   :  { %v7329_v37 = vld [vmem:[%s10692_s3 + $0x120] ss:$16 sps:$4 sm:$0xff]   ;;  %v7334_v38 = vld [vmem:[%s10692_s3 + $0x144] ss:$16 sps:$4 sm:$0xff]  }
  0x12   :  { %v7332_v39 = vld [vmem:[%s10692_s3 + $0x140] ss:$16 sps:$4 sm:$0xff]   ;;  %v7337_v40 = vld [vmem:[%s10692_s3 + $0x164] ss:$16 sps:$4 sm:$0xff]  }
  0x13   :  { %158 = vmatpush1.bf16.msra.mxu0 %v7291_v10  ;;  %v7335_v41 = vld [vmem:[%s10692_s3 + $0x160] ss:$16 sps:$4 sm:$0xff]   ;;  %v7340_v42 = vld [vmem:[%s10692_s3 + $0x184] ss:$16 sps:$4 sm:$0xff]  }
  0x14   :  { %159 = vmatprep.subr.bf16.mxu0 %v7292_v11  ;;  %v7338_v43 = vld [vmem:[%s10692_s3 + $0x180] ss:$16 sps:$4 sm:$0xff]   ;;  %v7343_v44 = vld [vmem:[%s10692_s3 + $0x1a4] ss:$16 sps:$4 sm:$0xff]  }
  0x15   :  { %v7341_v45 = vld [vmem:[%s10692_s3 + $0x1a0] ss:$16 sps:$4 sm:$0xff]   ;;  %v7346_v46 = vld [vmem:[%s10692_s3 + $0x1c4] ss:$16 sps:$4 sm:$0xff]  }
  0x16   :  { %v7344_v47 = vld [vmem:[%s10692_s3 + $0x1c0] ss:$16 sps:$4 sm:$0xff]   ;;  %v7349_v48 = vld [vmem:[%s10692_s3 + $0x1e4] ss:$16 sps:$4 sm:$0xff]  }
  0x17   :  { %160 = vmatpush1.bf16.msra.mxu0 %v7294_v12  ;;  %v7347_v49 = vld [vmem:[%s10692_s3 + $0x1e0] ss:$16 sps:$4 sm:$0xff]  }
  0x18   :  { %161 = vmatprep.subr.bf16.mxu0 %v7295_v13  ;;  %v726_v51 = vld [vmem:[%s10693_s5] sm:$0xff] }
  0x19   :  { %v730_v52 = vld [vmem:[%s10693_s5 + $0x20] sm:$0xff] }
  0x1a   :  { %v6389_v53 = vcombine.high %v726_v51, %v730_v52  ;;  %v6388_v54 = vcombine.low %v726_v51, %v730_v52  ;;  %v734_v55 = vld [vmem:[%s10693_s5 + $0x40] sm:$0xff] }
  0x1b   :  { %162 = vmatpush1.bf16.msra.mxu0 %v7297_v14  ;;  %v738_v56 = vld [vmem:[%s10693_s5 + $0x60] sm:$0xff] }
  0x1c   :  { %163 = vmatprep.subr.bf16.mxu0 %v7298_v15  ;;  %v6397_v57 = vcombine.high %v734_v55, %v738_v56  ;;  %2304 = vmatprep.subr.bf16.mxu1 %v6389_v53  ;;  %v6396_v58 = vcombine.low %v734_v55, %v738_v56  ;;  %v742_v59 = vld [vmem:[%s10693_s5 + $0x80] sm:$0xff] }
  0x1d   :  { %2305 = vmatpush1.bf16.msra.mxu1 %v6388_v54  ;;  %v746_v60 = vld [vmem:[%s10693_s5 + $0xa0] sm:$0xff] }
  0x1e   :  { %2306 = vmatprep.subr.bf16.mxu1 %v6397_v57  ;;  %v6405_v61 = vcombine.high %v742_v59, %v746_v60  ;;  %v6404_v62 = vcombine.low %v742_v59, %v746_v60  ;;  %v750_v63 = vld [vmem:[%s10693_s5 + $0xc0] sm:$0xff] }
  0x1f   :  { %164 = vmatpush1.bf16.msra.mxu0 %v7300_v16  ;;  %v754_v0 = vld [vmem:[%s10693_s5 + $0xe0] sm:$0xff] }
  0x20   :  { %612 = vmatprep.subr.bf16.mxu0 %v7304_v17  ;;  %v6413_v1 = vcombine.high %v750_v63, %v754_v0  ;;  %v6412_v2 = vcombine.low %v750_v63, %v754_v0  ;;  %v758_v3 = vld [vmem:[%s10693_s5 + $0x100] sm:$0xff] }
  0x21   :  { %2307 = vmatpush1.bf16.msra.mxu1 %v6396_v58  ;;  %v762_v4 = vld [vmem:[%s10693_s5 + $0x120] sm:$0xff] }
  0x22   :  { %182 = vmatmul.mubr.bf16.vlgmr.msra.gmra.mrb[0].mxu0 %v7301_v18  ;;  %2308 = vmatprep.subr.bf16.mxu1 %v6405_v61  ;;  %v6421_v5 = vcombine.high %v758_v3, %v762_v4  ;;  %v6420_v6 = vcombine.low %v758_v3, %v762_v4  ;;  %v766_v7 = vld [vmem:[%s10693_s5 + $0x140] sm:$0xff]  ;;  %v7350_v3 = vld [vmem:[%s10692_s3 + $0x8] ss:$16 sps:$4 sm:$0xff]   ;;  %v7355_v4 = vld [vmem:[%s10692_s3 + $0x2c] ss:$16 sps:$4 sm:$0xff]  }
  0x23   :  { %613 = vmatpush1.bf16.msra.mxu0 %v7302_v19  ;;  %v770_v8 = vld [vmem:[%s10693_s5 + $0x160] sm:$0xff] }
  0x24   :  { %614 = vmatprep.subr.bf16.mxu0 %v7307_v20  ;;  %v6429_v9 = vcombine.high %v766_v7, %v770_v8  ;;  %v6428_v10 = vcombine.low %v766_v7, %v770_v8  ;;  %v774_v11 = vld [vmem:[%s10693_s5 + $0x180] sm:$0xff]  ;;  %v7356_v7 = vld [vmem:[%s10692_s3 + $0x48] ss:$16 sps:$4 sm:$0xff]   ;;  %v7361_v8 = vld [vmem:[%s10692_s3 + $0x6c] ss:$16 sps:$4 sm:$0xff]  }
  0x25   :  { %2309 = vmatpush1.bf16.msra.mxu1 %v6404_v62  ;;  %v778_v12 = vld [vmem:[%s10693_s5 + $0x1a0] sm:$0xff] }
  0x26   :  { %2310 = vmatprep.subr.bf16.mxu1 %v6413_v1  ;;  %v6437_v13 = vcombine.high %v774_v11, %v778_v12  ;;  %v6436_v14 = vcombine.low %v774_v11, %v778_v12  ;;  %v782_v15 = vld [vmem:[%s10693_s5 + $0x1c0] sm:$0xff]  ;;  %v7362_v11 = vld [vmem:[%s10692_s3 + $0x88] ss:$16 sps:$4 sm:$0xff]   ;;  %v7367_v12 = vld [vmem:[%s10692_s3 + $0xac] ss:$16 sps:$4 sm:$0xff]  }
  0x27   :  { %615 = vmatpush1.bf16.msra.mxu0 %v7305_v21  ;;  %v786_v16 = vld [vmem:[%s10693_s5 + $0x1e0] sm:$0xff] }
  0x28   :  { %616 = vmatprep.subr.bf16.mxu0 %v7310_v22  ;;  %v6445_v17 = vcombine.high %v782_v15, %v786_v16  ;;  %v6444_v18 = vcombine.low %v782_v15, %v786_v16  ;;  %v790_v19 = vld [vmem:[%s10693_s5 + $0x200] sm:$0xff]  ;;  %v7368_v15 = vld [vmem:[%s10692_s3 + $0xc8] ss:$16 sps:$4 sm:$0xff]   ;;  %v7373_v16 = vld [vmem:[%s10692_s3 + $0xec] ss:$16 sps:$4 sm:$0xff]  }
  0x29   :  { %2311 = vmatpush1.bf16.msra.mxu1 %v6412_v2  ;;  %v794_v20 = vld [vmem:[%s10693_s5 + $0x220] sm:$0xff] }
  0x2a   :  { %2312 = vmatprep.subr.bf16.mxu1 %v6421_v5  ;;  %v6453_v21 = vcombine.high %v790_v19, %v794_v20  ;;  %v6452_v22 = vcombine.low %v790_v19, %v794_v20  ;;  %v7353_v5 = vld [vmem:[%s10692_s3 + $0x28] ss:$16 sps:$4 sm:$0xff]   ;;  %v7379_v20 = vld [vmem:[%s10692_s3 + $0x12c] ss:$16 sps:$4 sm:$0xff]  }
  0x2b   :  { %617 = vmatpush1.bf16.msra.mxu0 %v7308_v23  ;;  %v798_v23 = vld [vmem:[%s10693_s5 + $0x240] sm:$0xff]  ;;  %v7374_v19 = vld [vmem:[%s10692_s3 + $0x108] ss:$16 sps:$4 sm:$0xff]  }
  0x2c   :  { %618 = vmatprep.subr.bf16.mxu0 %v7313_v24  ;;  %v802_v24 = vld [vmem:[%s10693_s5 + $0x260] sm:$0xff] }
  0x2d   :  { %2313 = vmatpush1.bf16.msra.mxu1 %v6420_v6  ;;  %v7358_v6 = vld [vmem:[%s10692_s3 + $0x4c] ss:$16 sps:$4 sm:$0xff]  }
  0x2e   :  { %2314 = vmatprep.subr.bf16.mxu1 %v6429_v9  ;;  %v7359_v9 = vld [vmem:[%s10692_s3 + $0x68] ss:$16 sps:$4 sm:$0xff]  }
  0x2f   :  { %619 = vmatpush1.bf16.msra.mxu0 %v7311_v25  ;;  %v6461_v25 = vcombine.high %v798_v23, %v802_v24 }
  0x30   :  { %620 = vmatprep.subr.bf16.mxu0 %v7316_v26  ;;  %v53_v26 = vlaneseq }
  0x31   :  { %2315 = vmatpush1.bf16.msra.mxu1 %v6428_v10  ;;  %v7364_v10 = vld [vmem:[%s10692_s3 + $0x8c] ss:$16 sps:$4 sm:$0xff]  }
  0x32   :  { %2316 = vmatprep.subr.bf16.mxu1 %v6437_v13  ;;  %v7365_v13 = vld [vmem:[%s10692_s3 + $0xa8] ss:$16 sps:$4 sm:$0xff]  }
  0x33   :  { %621 = vmatpush1.bf16.msra.mxu0 %v7314_v27  ;;  %v6460_v27 = vcombine.low %v798_v23, %v802_v24  ;;  %v7380_v23 = vld [vmem:[%s10692_s3 + $0x148] ss:$16 sps:$4 sm:$0xff]   ;;  %v7385_v24 = vld [vmem:[%s10692_s3 + $0x16c] ss:$16 sps:$4 sm:$0xff]  }
  0x34   :  { %622 = vmatprep.subr.bf16.mxu0 %v7319_v28  ;;  %v806_v28 = vld [vmem:[%s10693_s5 + $0x280] sm:$0xff] }
  0x35   :  { %2317 = vmatpush1.bf16.msra.mxu1 %v6436_v14  ;;  %v7370_v14 = vld [vmem:[%s10692_s3 + $0xcc] ss:$16 sps:$4 sm:$0xff]  }
  0x36   :  { %2318 = vmatprep.subr.bf16.mxu1 %v6445_v17  ;;  %v7371_v17 = vld [vmem:[%s10692_s3 + $0xe8] ss:$16 sps:$4 sm:$0xff]  }
  0x37   :  { %623 = vmatpush1.bf16.msra.mxu0 %v7317_v29  ;;  %v810_v29 = vld [vmem:[%s10693_s5 + $0x2a0] sm:$0xff] }
  0x38   :  { %624 = vmatprep.subr.bf16.mxu0 %v7322_v30  ;;  %v6469_v30 = vcombine.high %v806_v28, %v810_v29 }
  0x39   :  { %2319 = vmatpush1.bf16.msra.mxu1 %v6444_v18  ;;  %v7376_v18 = vld [vmem:[%s10692_s3 + $0x10c] ss:$16 sps:$4 sm:$0xff]  }
  0x3a   :  { %2320 = vmatprep.subr.bf16.mxu1 %v6453_v21  ;;  %v7377_v21 = vld [vmem:[%s10692_s3 + $0x128] ss:$16 sps:$4 sm:$0xff]  }
  0x3b   :  { %625 = vmatpush1.bf16.msra.mxu0 %v7320_v31  ;;  %v8333_v31 = vshrl.u32 %v53_v26, 7  ;;  %v7388_v26 = vld [vmem:[%s10692_s3 + $0x18c] ss:$16 sps:$4 sm:$0xff]  }
  0x3c   :  { %626 = vmatprep.subr.bf16.mxu0 %v7325_v32  ;;  %v6468_v32 = vcombine.low %v806_v28, %v810_v29  ;;  %v7391_v28 = vld [vmem:[%s10692_s3 + $0x1ac] ss:$16 sps:$4 sm:$0xff]   ;;  %v7389_v29 = vld [vmem:[%s10692_s3 + $0x1a8] ss:$16 sps:$4 sm:$0xff]  }
  0x3d   :  { %2321 = vmatpush1.bf16.msra.mxu1 %v6452_v22  ;;  %v7382_v22 = vld [vmem:[%s10692_s3 + $0x14c] ss:$16 sps:$4 sm:$0xff]  }
  0x3e   :  { %2322 = vmatprep.subr.bf16.mxu1 %v6461_v25  ;;  %v7383_v25 = vld [vmem:[%s10692_s3 + $0x168] ss:$16 sps:$4 sm:$0xff]  }
  0x3f   :  { %627 = vmatpush1.bf16.msra.mxu0 %v7323_v33  ;;  %v814_v33 = vld [vmem:[%s10693_s5 + $0x2c0] sm:$0xff] }
  0x40   :  { %628 = vmatprep.subr.bf16.mxu0 %v7328_v34  ;;  %v818_v34 = vld [vmem:[%s10693_s5 + $0x2e0] sm:$0xff] }
  0x41   :  { %2323 = vmatpush1.bf16.msra.mxu1 %v6460_v27  ;;  %v7386_v27 = vld [vmem:[%s10692_s3 + $0x188] ss:$16 sps:$4 sm:$0xff]  }
  0x42   :  { %2324 = vmatprep.subr.bf16.mxu1 %v6469_v30  ;;  %v7394_v30 = vld [vmem:[%s10692_s3 + $0x1cc] ss:$16 sps:$4 sm:$0xff]  }
  0x43   :  { %629 = vmatpush1.bf16.msra.mxu0 %v7326_v35  ;;  %v6477_v35 = vcombine.high %v814_v33, %v818_v34 }
  0x44   :  { %630 = vmatprep.subr.bf16.mxu0 %v7331_v36  ;;  %v8342_v36 = vsub.s32 0, %v8333_v31 }
  0x45   :  { %2325 = vmatpush1.bf16.msra.mxu1 %v6468_v32  ;;  %v7392_v32 = vld [vmem:[%s10692_s3 + $0x1c8] ss:$16 sps:$4 sm:$0xff]  }
  0x46   :  { %2326 = vmatprep.subr.bf16.mxu1 %v6477_v35  ;;  %v731_v35 = vld [vmem:[%s10693_s5 + $0x28] sm:$0xff] }
  0x47   :  { %631 = vmatpush1.bf16.msra.mxu0 %v7329_v37  ;;  %v6476_v37 = vcombine.low %v814_v33, %v818_v34  ;;  %v7397_v33 = vld [vmem:[%s10692_s3 + $0x1ec] ss:$16 sps:$4 sm:$0xff]  }
  0x48   :  { %632 = vmatprep.subr.bf16.mxu0 %v7334_v38  ;;  %v822_v38 = vld [vmem:[%s10693_s5 + $0x300] sm:$0xff]  ;;  %v727_v34 = vld [vmem:[%s10693_s5 + $0x8] sm:$0xff] }
  0x49   :  { %2327 = vmatpush1.bf16.msra.mxu1 %v6476_v37  ;;  %v7395_v37 = vld [vmem:[%s10692_s3 + $0x1e8] ss:$16 sps:$4 sm:$0xff]  }
  0x4b   :  { %633 = vmatpush1.bf16.msra.mxu0 %v7332_v39  ;;  %v826_v39 = vld [vmem:[%s10693_s5 + $0x320] sm:$0xff] }
  0x4c   :  { %634 = vmatprep.subr.bf16.mxu0 %v7337_v40  ;;  %v51_v40 = vld [vmem:[%s10694_s2] sm:$0x3] }
  0x4f   :  { %635 = vmatpush1.bf16.msra.mxu0 %v7335_v41  ;;  %v8354_v41 = vsub.s32 1, %v8333_v31 }
  0x50   :  { %636 = vmatprep.subr.bf16.mxu0 %v7340_v42  ;;  %v6485_v42 = vcombine.high %v822_v38, %v826_v39 }
  0x52   :  { %2328 = vmatprep.subr.bf16.mxu1 %v6485_v42  ;;  %v6390_v42 = vcombine.low %v727_v34, %v731_v35 }
  0x53   :  { %637 = vmatpush1.bf16.msra.mxu0 %v7338_v43  ;;  %v56_v43 = vrot.slane %v51_v40, %v8342_v36 }
  0x54   :  { %638 = vmatprep.subr.bf16.mxu0 %v7343_v44  ;;  %v6484_v44 = vcombine.low %v822_v38, %v826_v39  ;;  %v6391_v38 = vcombine.high %v727_v34, %v731_v35  ;;  %v735_v39 = vld [vmem:[%s10693_s5 + $0x48] sm:$0xff] }
  0x55   :  { %v819_v34 = vld [vmem:[%s10693_s5 + $0x2e8] sm:$0xff] }
  0x56   :  { %2329 = vmatpush1.bf16.msra.mxu1 %v6484_v44  ;;  %v743_v44 = vld [vmem:[%s10693_s5 + $0x88] sm:$0xff] }
  0x57   :  { %639 = vmatpush1.bf16.msra.mxu0 %v7341_v45  ;;  %v8360_v45 = vld [vmem:[%s10693_s5 + $0x340] sm:$0xff] }
  0x58   :  { %640 = vmatprep.subr.bf16.mxu0 %v7346_v46  ;;  %v8365_v46 = vld [vmem:[%s10693_s5 + $0x360] sm:$0xff] }
  0x5b   :  { %641 = vmatpush1.bf16.msra.mxu0 %v7344_v47  ;;  %v60_v47 = vrot.slane %v51_v40, %v8354_v41  ;;  %v739_v40 = vld [vmem:[%s10693_s5 + $0x68] sm:$0xff] }
  0x5c   :  { %642 = vmatprep.subr.bf16.mxu0 %v7349_v48  ;;  %v6493_v48 = vcombine.high %v8360_v45, %v8365_v46 }
  0x5e   :  { %2330 = vmatprep.subr.bf16.mxu1 %v6493_v48  ;;  %v6398_v48 = vcombine.low %v735_v39, %v739_v40 }
  0x5f   :  { %643 = vmatpush1.bf16.msra.mxu0 %v7347_v49 }
  0x60   :  { %655 = vmatprep.subr.bf16.mxu0 %v7352_v50 }
  0xf5   :  { %v183_v49 = vpop.f32.mrb[0].mxu0 }
  0xf6   :  { %v184_v50 = vadd.f32 %v183_v49, %v56_v43  ;;  %v185_v51 = vpop.f32.mrb[1].mxu0 }
  0xf7   :  { %v186_v52 = vadd.f32 %v185_v51, %v60_v47  ;;  %v187_v53 = vpop.f32.mrb[2].mxu0  ;;  %v755_v51 = vld [vmem:[%s10693_s5 + $0xe8] sm:$0xff] }
  0xf8   :  { %v196_v54 = vmul.f32 0.2, %v184_v50  ;;  %v188_v55 = vadd.f32 %v187_v53, %v56_v43  ;;  %v189_v56 = vpop.f32.mrb[3].mxu0  ;;  %vm192_vm0 = vcmp.gt.f32.partialorder %v184_v50, 0.0  ;;  %v6399_v43 = vcombine.high %v735_v39, %v739_v40  ;;  %v827_v39 = vld [vmem:[%s10693_s5 + $0x328] sm:$0xff] }
  0xf9   :  { %v197_v57 = vmul.f32 0.2, %v186_v52  ;;  %v190_v58 = vadd.f32 %v189_v56, %v60_v47  ;;  %vm193_vm1 = vcmp.gt.f32.partialorder %v186_v52, 0.0  ;;  %v747_v47 = vld [vmem:[%s10693_s5 + $0xa8] sm:$0xff] }
  0xfa   :  { %vm194_vm2 = vcmp.gt.f32.partialorder %v188_v55, 0.0  ;;  %v198_v59 = vmul.f32 0.2, %v188_v55  ;;  %v200_v61 = vsel %vm192_vm0, %v184_v50, %v196_v54  ;;  %v6407_v49 = vcombine.high %v743_v44, %v747_v47  ;;  %v751_v50 = vld [vmem:[%s10693_s5 + $0xc8] sm:$0xff] }
  0xfb   :  { %vm195_vm3 = vcmp.gt.f32.partialorder %v190_v58, 0.0  ;;  %v199_v60 = vmul.f32 0.2, %v190_v58  ;;  %v201_v0 = vsel %vm193_vm1, %v186_v52, %v197_v57  ;;  %v6406_v52 = vcombine.low %v743_v44, %v747_v47  ;;  %v759_v54 = vld [vmem:[%s10693_s5 + $0x108] sm:$0xff] }
  0xfc   :  { %v202_v62 = vsel %vm194_vm2, %v188_v55, %v198_v59  ;;  %v6415_v53 = vcombine.high %v751_v50, %v755_v51  ;;  %v763_v55 = vld [vmem:[%s10693_s5 + $0x128] sm:$0xff]  ;;  %v6414_v56 = vcombine.low %v751_v50, %v755_v51 }
  0xfd   :  { %v8370_v63 = vpack.c.bf16 %v202_v62, %v200_v61  ;;  %v203_v1 = vsel %vm195_vm3, %v190_v58, %v199_v60  ;;  %v6423_v57 = vcombine.high %v759_v54, %v763_v55  ;;  %v767_v58 = vld [vmem:[%s10693_s5 + $0x148] sm:$0xff]  ;;  %v6422_v60 = vcombine.low %v759_v54, %v763_v55 }
  0xfe   :  { %v205_v2 = vpack.c.bf16 %v203_v1, %v201_v0  ;;  %v771_v59 = vld [vmem:[%s10693_s5 + $0x168] sm:$0xff] }
  0xff   :  { %v6431_v61 = vcombine.high %v767_v58, %v771_v59  ;;  %v775_v62 = vld [vmem:[%s10693_s5 + $0x188] sm:$0xff]  ;;  %v6430_v0 = vcombine.low %v767_v58, %v771_v59  ;;  %v8608_v59 = vld [vmem:[%s10695_s4] sm:$0xf] }
 0x100   :  { %644 = vmatprep.mubr.bf16.mxu0 %v205_v2  ;;  %v835_v44 = vld [vmem:[%s10693_s5 + $0x368] sm:$0xff] }
 0x101   :  { %645 = vmatmul.mubr.bf16.vlgmr.msra.gmra.mrb[4].mxu0 %v8370_v63  ;;  %v843_v50 = vld [vmem:[%s10693_s5 + $0x3a8] sm:$0xff] }
 0x102   :  { %656 = vmatpush1.bf16.msra.mxu0 %v7350_v3  ;;  %687 = vmatprep.mubr.bf16.mxu0 %v205_v2  ;;  %v6492_v2 = vcombine.low %v8360_v45, %v8365_v46  ;;  %v783_v3 = vld [vmem:[%s10693_s5 + $0x1c8] sm:$0xff] }
 0x103   :  { %657 = vmatprep.subr.bf16.mxu0 %v7355_v4  ;;  %v787_v4 = vld [vmem:[%s10693_s5 + $0x1e8] sm:$0xff] }
 0x104   :  { %2331 = vmatpush1.bf16.msra.mxu1 %v6492_v2  ;;  %v6447_v46 = vcombine.high %v783_v3, %v787_v4  ;;  %v851_v54 = vld [vmem:[%s10693_s5 + $0x3e8] sm:$0xff] }
 0x106   :  { %658 = vmatpush1.bf16.msra.mxu0 %v7353_v5  ;;  %v838_v5 = vld [vmem:[%s10693_s5 + $0x380] sm:$0xff] }
 0x107   :  { %659 = vmatprep.subr.bf16.mxu0 %v7358_v6  ;;  %v842_v6 = vld [vmem:[%s10693_s5 + $0x3a0] sm:$0xff] }
 0x108   :  { %v6501_v45 = vcombine.high %v838_v5, %v842_v6 }
 0x10a   :  { %660 = vmatpush1.bf16.msra.mxu0 %v7356_v7  ;;  %2332 = vmatprep.subr.bf16.mxu1 %v6501_v45 }
 0x10b   :  { %661 = vmatprep.subr.bf16.mxu0 %v7361_v8  ;;  %v6500_v8 = vcombine.low %v838_v5, %v842_v6 }
 0x10d   :  { %2333 = vmatpush1.bf16.msra.mxu1 %v6500_v8  ;;  %v862_v8 = vld [vmem:[%s10693_s5 + $0x440] sm:$0xff] }
 0x10e   :  { %662 = vmatpush1.bf16.msra.mxu0 %v7359_v9  ;;  %v791_v9 = vld [vmem:[%s10693_s5 + $0x208] sm:$0xff] }
 0x10f   :  { %663 = vmatprep.subr.bf16.mxu0 %v7364_v10  ;;  %v795_v10 = vld [vmem:[%s10693_s5 + $0x228] sm:$0xff] }
 0x112   :  { %664 = vmatpush1.bf16.msra.mxu0 %v7362_v11  ;;  %v846_v11 = vld [vmem:[%s10693_s5 + $0x3c0] sm:$0xff] }
 0x113   :  { %665 = vmatprep.subr.bf16.mxu0 %v7367_v12  ;;  %v850_v12 = vld [vmem:[%s10693_s5 + $0x3e0] sm:$0xff] }
 0x116   :  { %666 = vmatpush1.bf16.msra.mxu0 %v7365_v13  ;;  %v6446_v13 = vcombine.low %v783_v3, %v787_v4 }
 0x117   :  { %667 = vmatprep.subr.bf16.mxu0 %v7370_v14  ;;  %v6509_v14 = vcombine.high %v846_v11, %v850_v12 }
 0x119   :  { %2334 = vmatprep.subr.bf16.mxu1 %v6509_v14 }
 0x11a   :  { %668 = vmatpush1.bf16.msra.mxu0 %v7368_v15  ;;  %v6455_v15 = vcombine.high %v791_v9, %v795_v10 }
 0x11b   :  { %669 = vmatprep.subr.bf16.mxu0 %v7373_v16  ;;  %v6508_v16 = vcombine.low %v846_v11, %v850_v12  ;;  %v866_v11 = vld [vmem:[%s10693_s5 + $0x460] sm:$0xff]  ;;  %v863_v12 = vld [vmem:[%s10693_s5 + $0x448] sm:$0xff] }
 0x11d   :  { %2335 = vmatpush1.bf16.msra.mxu1 %v6508_v16 }
 0x11e   :  { %670 = vmatpush1.bf16.msra.mxu0 %v7371_v17  ;;  %v799_v17 = vld [vmem:[%s10693_s5 + $0x248] sm:$0xff] }
 0x11f   :  { %671 = vmatprep.subr.bf16.mxu0 %v7376_v18  ;;  %v803_v18 = vld [vmem:[%s10693_s5 + $0x268] sm:$0xff] }
 0x122   :  { %672 = vmatpush1.bf16.msra.mxu0 %v7374_v19  ;;  %v8544_v19 = vld [vmem:[%s10693_s5 + $0x400] sm:$0xff] }
 0x123   :  { %673 = vmatprep.subr.bf16.mxu0 %v7379_v20  ;;  %v8549_v20 = vld [vmem:[%s10693_s5 + $0x420] sm:$0xff] }
 0x126   :  { %674 = vmatpush1.bf16.msra.mxu0 %v7377_v21  ;;  %v8554_v21 = vld [vmem:[%s10693_s5 + $0x408] sm:$0xff] }
 0x127   :  { %675 = vmatprep.subr.bf16.mxu0 %v7382_v22  ;;  %v6454_v22 = vcombine.low %v791_v9, %v795_v10 }
 0x12a   :  { %676 = vmatpush1.bf16.msra.mxu0 %v7380_v23  ;;  %v6517_v23 = vcombine.high %v8544_v19, %v8549_v20 }
 0x12b   :  { %677 = vmatprep.subr.bf16.mxu0 %v7385_v24  ;;  %v8561_v24 = vld [vmem:[%s10693_s5 + $0x428] sm:$0xff] }
 0x12c   :  { %2347 = vmatprep.subr.bf16.mxu1 %v6517_v23  ;;  %v6519_v58 = vcombine.high %v8554_v21, %v8561_v24  ;;  %v870_v23 = vld [vmem:[%s10693_s5 + $0x480] sm:$0xff] }
 0x12e   :  { %678 = vmatpush1.bf16.msra.mxu0 %v7383_v25  ;;  %v6463_v25 = vcombine.high %v799_v17, %v803_v18 }
 0x12f   :  { %679 = vmatprep.subr.bf16.mxu0 %v7388_v26  ;;  %v6516_v26 = vcombine.low %v8544_v19, %v8549_v20  ;;  %v879_v19 = vld [vmem:[%s10693_s5 + $0x4c8] sm:$0xff] }
 0x130   :  { %v883_v20 = vld [vmem:[%s10693_s5 + $0x4e8] sm:$0xff] }
 0x132   :  { %680 = vmatpush1.bf16.msra.mxu0 %v7386_v27  ;;  %v6518_v27 = vcombine.low %v8554_v21, %v8561_v24 }
 0x133   :  { %681 = vmatprep.subr.bf16.mxu0 %v7391_v28  ;;  %v807_v28 = vld [vmem:[%s10693_s5 + $0x288] sm:$0xff] }
 0x136   :  { %682 = vmatpush1.bf16.msra.mxu0 %v7389_v29  ;;  %v811_v29 = vld [vmem:[%s10693_s5 + $0x2a8] sm:$0xff] }
 0x137   :  { %683 = vmatprep.subr.bf16.mxu0 %v7394_v30  ;;  %v6462_v30 = vcombine.low %v799_v17, %v803_v18  ;;  %v6470_v35 = vcombine.low %v807_v28, %v811_v29  ;;  %v6525_v18 = vcombine.high %v862_v8, %v866_v11 }
 0x13a   :  { %684 = vmatpush1.bf16.msra.mxu0 %v7392_v32  ;;  %v6471_v32 = vcombine.high %v807_v28, %v811_v29  ;;  %v871_v28 = vld [vmem:[%s10693_s5 + $0x488] sm:$0xff] }
 0x13b   :  { %685 = vmatprep.subr.bf16.mxu0 %v7397_v33  ;;  %v815_v33 = vld [vmem:[%s10693_s5 + $0x2c8] sm:$0xff] }
 0x13c   :  { %v6478_v40 = vcombine.low %v815_v33, %v819_v34  ;;  %v875_v29 = vld [vmem:[%s10693_s5 + $0x4a8] sm:$0xff] }
 0x13d   :  { %v6534_v24 = vcombine.low %v871_v28, %v875_v29 }
 0x13e   :  { %686 = vmatpush1.bf16.msra.mxu0 %v7395_v37  ;;  %v6479_v37 = vcombine.high %v815_v33, %v819_v34  ;;  %v6535_v34 = vcombine.high %v871_v28, %v875_v29 }
 0x13f   :  { %2390 = vmatprep.subr.bf16.mxu0 %v6391_v38  ;;  %v823_v38 = vld [vmem:[%s10693_s5 + $0x308] sm:$0xff] }
 0x140   :  { %v6486_v47 = vcombine.low %v823_v38, %v827_v39 }
 0x141   :  { %688 = vmatmul.mubr.bf16.vlgmr.msra.gmra.mrb[8].mxu0 %v8370_v63  ;;  %v779_v63 = vld [vmem:[%s10693_s5 + $0x1a8] sm:$0xff] }
 0x142   :  { %2391 = vmatpush1.bf16.msra.mxu0 %v6390_v42  ;;  %v6439_v1 = vcombine.high %v775_v62, %v779_v63  ;;  %v6438_v7 = vcombine.low %v775_v62, %v779_v63  ;;  %v6487_v42 = vcombine.high %v823_v38, %v827_v39  ;;  %v886_v38 = vld [vmem:[%s10693_s5 + $0x500] sm:$0xff] }
 0x143   :  { %2392 = vmatprep.subr.bf16.mxu0 %v6399_v43  ;;  %v831_v43 = vld [vmem:[%s10693_s5 + $0x348] sm:$0xff]  ;;  %v890_v39 = vld [vmem:[%s10693_s5 + $0x520] sm:$0xff] }
 0x144   :  { %v6494_v51 = vcombine.low %v831_v43, %v835_v44 }
 0x146   :  { %2393 = vmatpush1.bf16.msra.mxu0 %v6398_v48  ;;  %v6495_v48 = vcombine.high %v831_v43, %v835_v44  ;;  %v6542_v44 = vcombine.low %v879_v19, %v883_v20 }
 0x147   :  { %2394 = vmatprep.subr.bf16.mxu0 %v6407_v49  ;;  %v839_v49 = vld [vmem:[%s10693_s5 + $0x388] sm:$0xff] }
 0x148   :  { %v6502_v55 = vcombine.low %v839_v49, %v843_v50 }
 0x14a   :  { %2395 = vmatpush1.bf16.msra.mxu0 %v6406_v52  ;;  %v6503_v52 = vcombine.high %v839_v49, %v843_v50  ;;  %v894_v49 = vld [vmem:[%s10693_s5 + $0x540] sm:$0xff] }
 0x14b   :  { %2396 = vmatprep.subr.bf16.mxu0 %v6415_v53  ;;  %v847_v53 = vld [vmem:[%s10693_s5 + $0x3c8] sm:$0xff]  ;;  %v898_v50 = vld [vmem:[%s10693_s5 + $0x560] sm:$0xff] }
 0x14e   :  { %2397 = vmatpush1.bf16.msra.mxu0 %v6414_v56  ;;  %v6511_v56 = vcombine.high %v847_v53, %v851_v54 }
 0x14f   :  { %2398 = vmatprep.subr.bf16.mxu0 %v6423_v57  ;;  %v6510_v57 = vcombine.low %v847_v53, %v851_v54  ;;  %v6548_v53 = vcombine.low %v886_v38, %v890_v39 }
 0x152   :  { %2399 = vmatpush1.bf16.msra.mxu0 %v6422_v60  ;;  %v275_v60 = vrot.slane %v8608_v59, %v8342_v36 }
 0x153   :  { %2400 = vmatprep.subr.bf16.mxu0 %v6431_v61  ;;  %v279_v61 = vrot.slane %v8608_v59, %v8354_v41 }
 0x156   :  { %2401 = vmatpush1.bf16.msra.mxu0 %v6430_v0 }
 0x157   :  { %2402 = vmatprep.subr.bf16.mxu0 %v6439_v1 }
 0x15a   :  { %2403 = vmatpush1.bf16.msra.mxu0 %v6438_v7 }
 0x15b   :  { %2404 = vmatprep.subr.bf16.mxu0 %v6447_v46 }
 0x15e   :  { %2405 = vmatpush1.bf16.msra.mxu0 %v6446_v13  ;;  %v867_v13 = vld [vmem:[%s10693_s5 + $0x468] sm:$0xff] }
 0x15f   :  { %2406 = vmatprep.subr.bf16.mxu0 %v6455_v15 }
 0x162   :  { %2407 = vmatpush1.bf16.msra.mxu0 %v6454_v22  ;;  %v6527_v22 = vcombine.high %v863_v12, %v867_v13 }
 0x163   :  { %2408 = vmatprep.subr.bf16.mxu0 %v6463_v25  ;;  %v874_v25 = vld [vmem:[%s10693_s5 + $0x4a0] sm:$0xff] }
 0x164   :  { %v6533_v33 = vcombine.high %v870_v23, %v874_v25  ;;  %v6532_v21 = vcombine.low %v870_v23, %v874_v25  ;;  %v927_v23 = vld [vmem:[%s10693_s5 + $0x648] sm:$0xff] }
 0x165   :  { %v931_v25 = vld [vmem:[%s10693_s5 + $0x668] sm:$0xff] }
 0x166   :  { %2409 = vmatpush1.bf16.msra.mxu0 %v6462_v30  ;;  %v6524_v30 = vcombine.low %v862_v8, %v866_v11  ;;  %v918_v8 = vld [vmem:[%s10693_s5 + $0x600] sm:$0xff]  ;;  %v923_v11 = vld [vmem:[%s10693_s5 + $0x628] sm:$0xff] }
 0x167   :  { %2410 = vmatprep.subr.bf16.mxu0 %v6471_v32  ;;  %v6526_v32 = vcombine.low %v863_v12, %v867_v13 }
 0x16a   :  { %2411 = vmatpush1.bf16.msra.mxu0 %v6470_v35  ;;  %v878_v35 = vld [vmem:[%s10693_s5 + $0x4c0] sm:$0xff] }
 0x16b   :  { %2412 = vmatprep.subr.bf16.mxu0 %v6479_v37  ;;  %v882_v37 = vld [vmem:[%s10693_s5 + $0x4e0] sm:$0xff] }
 0x16c   :  { %v6540_v43 = vcombine.low %v878_v35, %v882_v37 }
 0x16e   :  { %2413 = vmatpush1.bf16.msra.mxu0 %v6478_v40  ;;  %v887_v40 = vld [vmem:[%s10693_s5 + $0x508] sm:$0xff] }
 0x16f   :  { %2414 = vmatprep.subr.bf16.mxu0 %v6487_v42  ;;  %v891_v42 = vld [vmem:[%s10693_s5 + $0x528] sm:$0xff] }
 0x170   :  { %v6550_v54 = vcombine.low %v887_v40, %v891_v42 }
 0x172   :  { %2415 = vmatpush1.bf16.msra.mxu0 %v6486_v47  ;;  %v6549_v47 = vcombine.high %v886_v38, %v890_v39  ;;  %v943_v38 = vld [vmem:[%s10693_s5 + $0x6c8] sm:$0xff] }
 0x173   :  { %2416 = vmatprep.subr.bf16.mxu0 %v6495_v48  ;;  %v6551_v48 = vcombine.high %v887_v40, %v891_v42  ;;  %v947_v39 = vld [vmem:[%s10693_s5 + $0x6e8] sm:$0xff] }
 0x176   :  { %2417 = vmatpush1.bf16.msra.mxu0 %v6494_v51  ;;  %v895_v51 = vld [vmem:[%s10693_s5 + $0x548] sm:$0xff] }
 0x177   :  { %2418 = vmatprep.subr.bf16.mxu0 %v6503_v52  ;;  %v899_v52 = vld [vmem:[%s10693_s5 + $0x568] sm:$0xff] }
 0x17a   :  { %2419 = vmatpush1.bf16.msra.mxu0 %v6502_v55  ;;  %v6557_v55 = vcombine.high %v894_v49, %v898_v50 }
 0x17b   :  { %2420 = vmatprep.subr.bf16.mxu0 %v6511_v56  ;;  %v6559_v56 = vcombine.high %v895_v51, %v899_v52 }
 0x17e   :  { %2421 = vmatpush1.bf16.msra.mxu0 %v6510_v57  ;;  %v902_v57 = vld [vmem:[%s10693_s5 + $0x580] sm:$0xff] }
 0x17f   :  { %2433 = vmatprep.subr.bf16.mxu0 %v6519_v58  ;;  %v906_v58 = vld [vmem:[%s10693_s5 + $0x5a0] sm:$0xff] }
 0x1d4   :  { %v646_v62 = vpop.f32.mrb[4].mxu0 }
 0x1d5   :  { %v647_v63 = vadd.f32 %v646_v62, %v275_v60  ;;  %v648_v0 = vpop.f32.mrb[5].mxu0  ;;  %v6556_v62 = vcombine.low %v894_v49, %v898_v50  ;;  %v951_v49 = vld [vmem:[%s10693_s5 + $0x708] sm:$0xff] }
 0x1d6   :  { %v649_v1 = vadd.f32 %v648_v0, %v279_v61  ;;  %v650_v2 = vpop.f32.mrb[6].mxu0  ;;  %v6565_v0 = vcombine.high %v902_v57, %v906_v58  ;;  %v955_v50 = vld [vmem:[%s10693_s5 + $0x728] sm:$0xff] }
 0x1d7   :  { %v706_v3 = vmul.f32 0.2, %v647_v63  ;;  %v651_v4 = vadd.f32 %v650_v2, %v275_v60  ;;  %v652_v5 = vpop.f32.mrb[7].mxu0  ;;  %vm698_vm4 = vcmp.gt.f32.partialorder %v647_v63, 0.0  ;;  %v903_v60 = vld [vmem:[%s10693_s5 + $0x588] sm:$0xff]  ;;  %v910_v2 = vld [vmem:[%s10693_s5 + $0x5c0] sm:$0xff] }
 0x1d8   :  { %v707_v6 = vmul.f32 0.2, %v649_v1  ;;  %v653_v7 = vadd.f32 %v652_v5, %v279_v61  ;;  %vm699_vm5 = vcmp.gt.f32.partialorder %v649_v1, 0.0  ;;  %v907_v61 = vld [vmem:[%s10693_s5 + $0x5a8] sm:$0xff] }
 0x1d9   :  { %vm702_vm6 = vcmp.gt.f32.partialorder %v651_v4, 0.0  ;;  %v710_v45 = vmul.f32 0.2, %v651_v4  ;;  %v714_v9 = vsel %vm698_vm4, %v647_v63, %v706_v3  ;;  %v6558_v63 = vcombine.low %v895_v51, %v899_v52  ;;  %v914_v3 = vld [vmem:[%s10693_s5 + $0x5e0] sm:$0xff]  ;;  %v915_v5 = vld [vmem:[%s10693_s5 + $0x5e8] sm:$0xff] }
 0x1da   :  { %vm703_vm7 = vcmp.gt.f32.partialorder %v653_v7, 0.0  ;;  %v711_v46 = vmul.f32 0.2, %v653_v7  ;;  %v715_v14 = vsel %vm699_vm5, %v649_v1, %v707_v6  ;;  %v6567_v1 = vcombine.high %v903_v60, %v907_v61 }
 0x1db   :  { %v718_v10 = vsel %vm702_vm6, %v651_v4, %v710_v45  ;;  %v911_v4 = vld [vmem:[%s10693_s5 + $0x5c8] sm:$0xff]  ;;  %v6564_v6 = vcombine.low %v902_v57, %v906_v58  ;;  %v6573_v45 = vcombine.high %v910_v2, %v914_v3  ;;  %v6572_v12 = vcombine.low %v910_v2, %v914_v3  ;;  %v966_v2 = vld [vmem:[%s10693_s5 + $0x780] sm:$0xff] }
 0x1dc   :  { %v8626_v15 = vpack.c.bf16 %v718_v10, %v714_v9  ;;  %v719_v16 = vsel %vm703_vm7, %v653_v7, %v711_v46  ;;  %v6566_v7 = vcombine.low %v903_v60, %v907_v61  ;;  %v6575_v46 = vcombine.high %v911_v4, %v915_v5  ;;  %v922_v9 = vld [vmem:[%s10693_s5 + $0x620] sm:$0xff]  ;;  %v919_v10 = vld [vmem:[%s10693_s5 + $0x608] sm:$0xff] }
 0x1dd   :  { %v8628_v17 = vpack.c.bf16 %v719_v16, %v715_v14  ;;  %v6574_v13 = vcombine.low %v911_v4, %v915_v5  ;;  %v6581_v14 = vcombine.high %v918_v8, %v922_v9  ;;  %v6583_v16 = vcombine.high %v919_v10, %v923_v11  ;;  %v959_v57 = vld [vmem:[%s10693_s5 + $0x748] sm:$0xff]  ;;  %v970_v3 = vld [vmem:[%s10693_s5 + $0x7a0] sm:$0xff] }
 0x1de   :  { %v6580_v28 = vcombine.low %v918_v8, %v922_v9  ;;  %v6582_v29 = vcombine.low %v919_v10, %v923_v11  ;;  %v6606_v52 = vcombine.low %v943_v38, %v947_v39  ;;  %v963_v58 = vld [vmem:[%s10693_s5 + $0x768] sm:$0xff]  ;;  %v6614_v61 = vcombine.low %v951_v49, %v955_v50  ;;  %v974_v10 = vld [vmem:[%s10693_s5 + $0x7c0] sm:$0xff] }
 0x1df   :  { %2336 = vmatprep.mubr.bf16.mxu1 %v8628_v17  ;;  %2422 = vmatprep.mubr.bf16.mxu0 %v8628_v17  ;;  %v967_v4 = vld [vmem:[%s10693_s5 + $0x788] sm:$0xff]  ;;  %v6629_v8 = vcombine.high %v966_v2, %v970_v3  ;;  %v978_v11 = vld [vmem:[%s10693_s5 + $0x7e0] sm:$0xff] }
 0x1e0   :  { %2337 = vmatmul.mubr.bf16.vlgmr.msra.gmra.mrb[0].mxu1 %v8626_v15  ;;  %2423 = vmatmul.mubr.bf16.vlgmr.msra.gmra.mrb[12].mxu0 %v8626_v15  ;;  %v971_v5 = vld [vmem:[%s10693_s5 + $0x7a8] sm:$0xff] }
 0x1e1   :  { %2348 = vmatpush1.bf16.msra.mxu1 %v6516_v26  ;;  %2434 = vmatpush1.bf16.msra.mxu0 %v6518_v27  ;;  %v6541_v26 = vcombine.high %v878_v35, %v882_v37  ;;  %v6543_v27 = vcombine.high %v879_v19, %v883_v20  ;;  %v935_v35 = vld [vmem:[%s10693_s5 + $0x688] sm:$0xff]  ;;  %v6590_v20 = vcombine.low %v927_v23, %v931_v25 }
 0x1e2   :  { %2349 = vmatprep.subr.bf16.mxu1 %v6525_v18  ;;  %2435 = vmatprep.subr.bf16.mxu0 %v6527_v22  ;;  %v926_v18 = vld [vmem:[%s10693_s5 + $0x640] sm:$0xff]  ;;  %v939_v37 = vld [vmem:[%s10693_s5 + $0x6a8] sm:$0xff]  ;;  %v6631_v9 = vcombine.high %v967_v4, %v971_v5 }
 0x1e3   :  { %v930_v22 = vld [vmem:[%s10693_s5 + $0x660] sm:$0xff]  ;;  %v6598_v42 = vcombine.low %v935_v35, %v939_v37 }
 0x1e4   :  { %v6588_v19 = vcombine.low %v926_v18, %v930_v22 }
 0x1e5   :  { %2350 = vmatpush1.bf16.msra.mxu1 %v6524_v30  ;;  %2436 = vmatpush1.bf16.msra.mxu0 %v6526_v32  ;;  %v6589_v30 = vcombine.high %v926_v18, %v930_v22  ;;  %v6591_v32 = vcombine.high %v927_v23, %v931_v25  ;;  %v6628_v18 = vcombine.low %v966_v2, %v970_v3 }
 0x1e6   :  { %2351 = vmatprep.subr.bf16.mxu1 %v6533_v33  ;;  %2437 = vmatprep.subr.bf16.mxu0 %v6535_v34  ;;  %v934_v33 = vld [vmem:[%s10693_s5 + $0x680] sm:$0xff]  ;;  %v6630_v22 = vcombine.low %v967_v4, %v971_v5  ;;  %v752_v4 = vld [vmem:[%s10693_s5 + $0xd0] sm:$0xff] }
 0x1e7   :  { %v938_v34 = vld [vmem:[%s10693_s5 + $0x6a0] sm:$0xff] }
 0x1e8   :  { %v6596_v40 = vcombine.low %v934_v33, %v938_v34 }
 0x1e9   :  { %2352 = vmatpush1.bf16.msra.mxu1 %v6532_v21  ;;  %2438 = vmatpush1.bf16.msra.mxu0 %v6534_v24  ;;  %v6597_v21 = vcombine.high %v934_v33, %v938_v34  ;;  %v6599_v24 = vcombine.high %v935_v35, %v939_v37  ;;  %v732_v35 = vld [vmem:[%s10693_s5 + $0x30] sm:$0xff]  ;;  %v729_v37 = vld [vmem:[%s10693_s5 + $0x18] sm:$0xff] }
 0x1ea   :  { %2353 = vmatprep.subr.bf16.mxu1 %v6541_v26  ;;  %2439 = vmatprep.subr.bf16.mxu0 %v6543_v27  ;;  %v942_v26 = vld [vmem:[%s10693_s5 + $0x6c0] sm:$0xff] }
 0x1eb   :  { %v946_v27 = vld [vmem:[%s10693_s5 + $0x6e0] sm:$0xff] }
 0x1ec   :  { %v6604_v51 = vcombine.low %v942_v26, %v946_v27 }
 0x1ed   :  { %2354 = vmatpush1.bf16.msra.mxu1 %v6540_v43  ;;  %2440 = vmatpush1.bf16.msra.mxu0 %v6542_v44  ;;  %v6605_v43 = vcombine.high %v942_v26, %v946_v27  ;;  %v6607_v44 = vcombine.high %v943_v38, %v947_v39 }
 0x1ee   :  { %2355 = vmatprep.subr.bf16.mxu1 %v6549_v47  ;;  %2441 = vmatprep.subr.bf16.mxu0 %v6551_v48  ;;  %v950_v47 = vld [vmem:[%s10693_s5 + $0x700] sm:$0xff] }
 0x1ef   :  { %v954_v48 = vld [vmem:[%s10693_s5 + $0x720] sm:$0xff] }
 0x1f0   :  { %v6612_v60 = vcombine.low %v950_v47, %v954_v48 }
 0x1f1   :  { %2356 = vmatpush1.bf16.msra.mxu1 %v6548_v53  ;;  %2442 = vmatpush1.bf16.msra.mxu0 %v6550_v54  ;;  %v6613_v53 = vcombine.high %v950_v47, %v954_v48  ;;  %v6615_v54 = vcombine.high %v951_v49, %v955_v50  ;;  %v740_v50 = vld [vmem:[%s10693_s5 + $0x70] sm:$0xff] }
 0x1f2   :  { %2357 = vmatprep.subr.bf16.mxu1 %v6557_v55  ;;  %2443 = vmatprep.subr.bf16.mxu0 %v6559_v56  ;;  %v958_v55 = vld [vmem:[%s10693_s5 + $0x740] sm:$0xff] }
 0x1f3   :  { %v962_v56 = vld [vmem:[%s10693_s5 + $0x760] sm:$0xff] }
 0x1f5   :  { %2358 = vmatpush1.bf16.msra.mxu1 %v6556_v62  ;;  %2444 = vmatpush1.bf16.msra.mxu0 %v6558_v63  ;;  %v8785_v62 = vsub.s32 2, %v8333_v31  ;;  %v6621_v63 = vcombine.high %v958_v55, %v962_v56 }
 0x1f6   :  { %2359 = vmatprep.subr.bf16.mxu1 %v6565_v0  ;;  %2445 = vmatprep.subr.bf16.mxu0 %v6567_v1  ;;  %v6623_v0 = vcombine.high %v959_v57, %v963_v58  ;;  %v8788_v1 = vsub.s32 3, %v8333_v31 }
 0x1f9   :  { %2360 = vmatpush1.bf16.msra.mxu1 %v6564_v6  ;;  %2446 = vmatpush1.bf16.msra.mxu0 %v6566_v7  ;;  %v283_v6 = vrot.slane %v8608_v59, %v8785_v62  ;;  %v6620_v7 = vcombine.low %v958_v55, %v962_v56 }
 0x1fa   :  { %2361 = vmatprep.subr.bf16.mxu1 %v6573_v45  ;;  %2447 = vmatprep.subr.bf16.mxu0 %v6575_v46  ;;  %v6622_v45 = vcombine.low %v959_v57, %v963_v58  ;;  %v287_v46 = vrot.slane %v8608_v59, %v8788_v1  ;;  %v744_v58 = vld [vmem:[%s10693_s5 + $0x90] sm:$0xff] }
 0x1fd   :  { %2362 = vmatpush1.bf16.msra.mxu1 %v6572_v12  ;;  %2448 = vmatpush1.bf16.msra.mxu0 %v6574_v13  ;;  %v975_v12 = vld [vmem:[%s10693_s5 + $0x7c8] sm:$0xff] }
 0x1fe   :  { %2363 = vmatprep.subr.bf16.mxu1 %v6581_v14  ;;  %2449 = vmatprep.subr.bf16.mxu0 %v6583_v16  ;;  %v979_v13 = vld [vmem:[%s10693_s5 + $0x7e8] sm:$0xff] }
 0x1ff   :  { %v6638_v27 = vcombine.low %v975_v12, %v979_v13 }
 0x201   :  { %2364 = vmatpush1.bf16.msra.mxu1 %v6580_v28  ;;  %2450 = vmatpush1.bf16.msra.mxu0 %v6582_v29  ;;  %v6637_v28 = vcombine.high %v974_v10, %v978_v11  ;;  %v6639_v29 = vcombine.high %v975_v12, %v979_v13  ;;  %v761_v12 = vld [vmem:[%s10693_s5 + $0x118] sm:$0xff] }
 0x202   :  { %2365 = vmatprep.subr.bf16.mxu1 %v6589_v30  ;;  %2451 = vmatprep.subr.bf16.mxu0 %v6591_v32  ;;  %v728_v30 = vld [vmem:[%s10693_s5 + $0x10] sm:$0xff]  ;;  %v765_v13 = vld [vmem:[%s10693_s5 + $0x138] sm:$0xff] }
 0x203   :  { %v6393_v39 = vcombine.high %v728_v30, %v732_v35 }
 0x205   :  { %2366 = vmatpush1.bf16.msra.mxu1 %v6588_v19  ;;  %2452 = vmatpush1.bf16.msra.mxu0 %v6590_v20  ;;  %v733_v19 = vld [vmem:[%s10693_s5 + $0x38] sm:$0xff] }
 0x206   :  { %2367 = vmatprep.subr.bf16.mxu1 %v6597_v21  ;;  %2453 = vmatprep.subr.bf16.mxu0 %v6599_v24  ;;  %v6636_v24 = vcombine.low %v974_v10, %v978_v11  ;;  %v6394_v55 = vcombine.low %v729_v37, %v733_v19  ;;  %v764_v11 = vld [vmem:[%s10693_s5 + $0x130] sm:$0xff] }
 0x209   :  { %2368 = vmatpush1.bf16.msra.mxu1 %v6596_v40  ;;  %2454 = vmatpush1.bf16.msra.mxu0 %v6598_v42  ;;  %v6395_v40 = vcombine.high %v729_v37, %v733_v19  ;;  %v781_v19 = vld [vmem:[%s10693_s5 + $0x1b8] sm:$0xff] }
 0x20a   :  { %2369 = vmatprep.subr.bf16.mxu1 %v6605_v43  ;;  %2455 = vmatprep.subr.bf16.mxu0 %v6607_v44  ;;  %v736_v44 = vld [vmem:[%s10693_s5 + $0x50] sm:$0xff] }
 0x20b   :  { %v6401_v56 = vcombine.high %v736_v44, %v740_v50 }
 0x20d   :  { %2370 = vmatpush1.bf16.msra.mxu1 %v6604_v51  ;;  %2456 = vmatpush1.bf16.msra.mxu0 %v6606_v52  ;;  %v737_v51 = vld [vmem:[%s10693_s5 + $0x58] sm:$0xff] }
 0x20e   :  { %2371 = vmatprep.subr.bf16.mxu1 %v6613_v53  ;;  %2457 = vmatprep.subr.bf16.mxu0 %v6615_v54  ;;  %v741_v52 = vld [vmem:[%s10693_s5 + $0x78] sm:$0xff]  ;;  %v6392_v54 = vcombine.low %v728_v30, %v732_v35  ;;  %v6426_v30 = vcombine.low %v761_v12, %v765_v13 }
 0x20f   :  { %v6403_v57 = vcombine.high %v737_v51, %v741_v52  ;;  %v6402_v2 = vcombine.low %v737_v51, %v741_v52  ;;  %v777_v35 = vld [vmem:[%s10693_s5 + $0x198] sm:$0xff] }
 0x210   :  { %v797_v52 = vld [vmem:[%s10693_s5 + $0x238] sm:$0xff] }
 0x211   :  { %2372 = vmatpush1.bf16.msra.mxu1 %v6612_v60  ;;  %2458 = vmatpush1.bf16.msra.mxu0 %v6614_v61  ;;  %v748_v60 = vld [vmem:[%s10693_s5 + $0xb0] sm:$0xff]  ;;  %v745_v61 = vld [vmem:[%s10693_s5 + $0x98] sm:$0xff] }
 0x212   :  { %2373 = vmatprep.subr.bf16.mxu1 %v6621_v63  ;;  %2459 = vmatprep.subr.bf16.mxu0 %v6623_v0  ;;  %v749_v63 = vld [vmem:[%s10693_s5 + $0xb8] sm:$0xff]  ;;  %v6400_v0 = vcombine.low %v736_v44, %v740_v50  ;;  %v6409_v3 = vcombine.high %v744_v58, %v748_v60 }
 0x213   :  { %v6411_v5 = vcombine.high %v745_v61, %v749_v63  ;;  %v793_v50 = vld [vmem:[%s10693_s5 + $0x218] sm:$0xff] }
 0x214   :  { %v689_v14 = vpop.f32.mrb[8].mxu0 }
 0x215   :  { %v690_v59 = vadd.f32 %v689_v14, %v283_v6  ;;  %v691_v16 = vpop.f32.mrb[9].mxu0  ;;  %2374 = vmatpush1.bf16.msra.mxu1 %v6620_v7  ;;  %2460 = vmatpush1.bf16.msra.mxu0 %v6622_v45  ;;  %v753_v7 = vld [vmem:[%s10693_s5 + $0xd8] sm:$0xff]  ;;  %v6408_v45 = vcombine.low %v744_v58, %v748_v60  ;;  %v804_v58 = vld [vmem:[%s10693_s5 + $0x270] sm:$0xff] }
 0x216   :  { %v692_v23 = vadd.f32 %v691_v16, %v287_v46  ;;  %v693_v25 = vpop.f32.mrb[10].mxu0  ;;  %2375 = vmatprep.subr.bf16.mxu1 %v6629_v8  ;;  %2461 = vmatprep.subr.bf16.mxu0 %v6631_v9  ;;  %v760_v9 = vld [vmem:[%s10693_s5 + $0x110] sm:$0xff]  ;;  %v801_v60 = vld [vmem:[%s10693_s5 + $0x258] sm:$0xff] }
 0x217   :  { %v708_v32 = vmul.f32 0.2, %v690_v59  ;;  %v694_v33 = vadd.f32 %v693_v25, %v283_v6  ;;  %v695_v34 = vpop.f32.mrb[11].mxu0  ;;  %vm700_vm8 = vcmp.gt.f32.partialorder %v690_v59, 0.0  ;;  %v756_v6 = vld [vmem:[%s10693_s5 + $0xf0] sm:$0xff]  ;;  %v6425_v16 = vcombine.high %v760_v9, %v764_v11  ;;  %v769_v25 = vld [vmem:[%s10693_s5 + $0x158] sm:$0xff] }
 0x218   :  { %v709_v20 = vmul.f32 0.2, %v692_v23  ;;  %v696_v21 = vadd.f32 %v695_v34, %v287_v46  ;;  %vm701_vm9 = vcmp.gt.f32.partialorder %v692_v23, 0.0  ;;  %v6410_v46 = vcombine.low %v745_v61, %v749_v63  ;;  %v780_v34 = vld [vmem:[%s10693_s5 + $0x1b0] sm:$0xff]  ;;  %v805_v63 = vld [vmem:[%s10693_s5 + $0x278] sm:$0xff] }
 0x219   :  { %vm704_vm10 = vcmp.gt.f32.partialorder %v694_v33, 0.0  ;;  %v712_v26 = vmul.f32 0.2, %v694_v33  ;;  %2376 = vmatpush1.bf16.msra.mxu1 %v6628_v18  ;;  %2462 = vmatpush1.bf16.msra.mxu0 %v6630_v22  ;;  %v716_v42 = vsel %vm700_vm8, %v690_v59, %v708_v32  ;;  %v6417_v8 = vcombine.high %v752_v4, %v756_v6  ;;  %v768_v18 = vld [vmem:[%s10693_s5 + $0x150] sm:$0xff] }
 0x21a   :  { %vm705_vm11 = vcmp.gt.f32.partialorder %v696_v21, 0.0  ;;  %v713_v38 = vmul.f32 0.2, %v696_v21  ;;  %2377 = vmatprep.subr.bf16.mxu1 %v6637_v28  ;;  %2463 = vmatprep.subr.bf16.mxu0 %v6639_v29  ;;  %v717_v47 = vsel %vm701_vm9, %v692_v23, %v709_v20  ;;  %v6416_v14 = vcombine.low %v752_v4, %v756_v6  ;;  %v772_v23 = vld [vmem:[%s10693_s5 + $0x170] sm:$0xff]  ;;  %v773_v28 = vld [vmem:[%s10693_s5 + $0x178] sm:$0xff] }
 0x21b   :  { %v720_v43 = vsel %vm704_vm10, %v694_v33, %v712_v26  ;;  %v6427_v22 = vcombine.high %v761_v12, %v765_v13  ;;  %v6424_v29 = vcombine.low %v760_v9, %v764_v11  ;;  %v6433_v32 = vcombine.high %v768_v18, %v772_v23  ;;  %v776_v33 = vld [vmem:[%s10693_s5 + $0x190] sm:$0xff]  ;;  %v809_v6 = vld [vmem:[%s10693_s5 + $0x298] sm:$0xff] }
 0x21c   :  { %v8834_v48 = vpack.c.bf16 %v720_v43, %v716_v42  ;;  %v721_v49 = vsel %vm705_vm11, %v696_v21, %v713_v38  ;;  %v6435_v37 = vcombine.high %v769_v25, %v773_v28  ;;  %v6432_v20 = vcombine.low %v768_v18, %v772_v23  ;;  %v784_v26 = vld [vmem:[%s10693_s5 + $0x1d0] sm:$0xff]  ;;  %v785_v38 = vld [vmem:[%s10693_s5 + $0x1d8] sm:$0xff] }
 0x21d   :  { %v8845_v53 = vpack.c.bf16 %v721_v49, %v717_v47  ;;  %2378 = vmatpush1.bf16.msra.mxu1 %v6636_v24  ;;  %2464 = vmatpush1.bf16.msra.mxu0 %v6638_v27  ;;  %v6434_v21 = vcombine.low %v769_v25, %v773_v28  ;;  %v6441_v24 = vcombine.high %v776_v33, %v780_v34  ;;  %v788_v27 = vld [vmem:[%s10693_s5 + $0x1f0] sm:$0xff]  ;;  %v817_v11 = vld [vmem:[%s10693_s5 + $0x2d8] sm:$0xff] }
 0x21e   :  { %2476 = vmatprep.subr.bf16.mxu1 %v6393_v39  ;;  %2562 = vmatprep.subr.bf16.mxu0 %v6395_v40  ;;  %v6443_v39 = vcombine.high %v777_v35, %v781_v19  ;;  %v789_v40 = vld [vmem:[%s10693_s5 + $0x1f8] sm:$0xff]  ;;  %v6440_v42 = vcombine.low %v776_v33, %v780_v34  ;;  %v6442_v43 = vcombine.low %v777_v35, %v781_v19  ;;  %v792_v47 = vld [vmem:[%s10693_s5 + $0x210] sm:$0xff] }
 0x21f   :  { %2379 = vmatprep.mubr.bf16.mxu1 %v8845_v53  ;;  %2465 = vmatprep.mubr.bf16.mxu0 %v8845_v53  ;;  %v6449_v44 = vcombine.high %v784_v26, %v788_v27  ;;  %v796_v49 = vld [vmem:[%s10693_s5 + $0x230] sm:$0xff]  ;;  %v6451_v51 = vcombine.high %v785_v38, %v789_v40  ;;  %v6459_v61 = vcombine.high %v793_v50, %v797_v52  ;;  %v821_v13 = vld [vmem:[%s10693_s5 + $0x2f8] sm:$0xff] }
 0x220   :  { %2380 = vmatmul.mubr.bf16.vlgmr.msra.gmra.mrb[0].mxu1 %v8834_v48  ;;  %2466 = vmatmul.mubr.bf16.vlgmr.msra.gmra.mrb[12].mxu0 %v8834_v48  ;;  %v808_v4 = vld [vmem:[%s10693_s5 + $0x290] sm:$0xff]  ;;  %v825_v23 = vld [vmem:[%s10693_s5 + $0x318] sm:$0xff]  ;;  %v6483_v25 = vcombine.high %v817_v11, %v821_v13 }
 0x221   :  { %2477 = vmatpush1.bf16.msra.mxu1 %v6392_v54  ;;  %2508 = vmatprep.mubr.bf16.mxu1 %v8628_v17  ;;  %v6448_v54 = vcombine.low %v784_v26, %v788_v27  ;;  %v816_v9 = vld [vmem:[%s10693_s5 + $0x2d0] sm:$0xff]  ;;  %v829_v28 = vld [vmem:[%s10693_s5 + $0x338] sm:$0xff] }
 0x222   :  { %2563 = vmatpush1.bf16.msra.mxu0 %v6394_v55  ;;  %2594 = vmatprep.mubr.bf16.mxu0 %v8628_v17  ;;  %v757_v17 = vld [vmem:[%s10693_s5 + $0xf8] sm:$0xff]  ;;  %v6450_v55 = vcombine.low %v785_v38, %v789_v40  ;;  %v824_v18 = vld [vmem:[%s10693_s5 + $0x310] sm:$0xff] }
 0x223   :  { %2478 = vmatprep.subr.bf16.mxu1 %v6401_v56  ;;  %2564 = vmatprep.subr.bf16.mxu0 %v6403_v57  ;;  %v6419_v10 = vcombine.high %v753_v7, %v757_v17  ;;  %v6418_v59 = vcombine.low %v753_v7, %v757_v17  ;;  %v6457_v56 = vcombine.high %v792_v47, %v796_v49  ;;  %v800_v57 = vld [vmem:[%s10693_s5 + $0x250] sm:$0xff]  ;;  %v813_v17 = vld [vmem:[%s10693_s5 + $0x2b8] sm:$0xff] }
 0x224   :  { %v6467_v7 = vcombine.high %v801_v60, %v805_v63  ;;  %v6475_v12 = vcombine.high %v809_v6, %v813_v17  ;;  %v832_v33 = vld [vmem:[%s10693_s5 + $0x350] sm:$0xff]  ;;  %v833_v35 = vld [vmem:[%s10693_s5 + $0x358] sm:$0xff] }
 0x225   :  { %2479 = vmatpush1.bf16.msra.mxu1 %v6400_v0  ;;  %v6456_v0 = vcombine.low %v792_v47, %v796_v49  ;;  %v836_v34 = vld [vmem:[%s10693_s5 + $0x370] sm:$0xff]  ;;  %v837_v19 = vld [vmem:[%s10693_s5 + $0x378] sm:$0xff] }
 0x226   :  { %2565 = vmatpush1.bf16.msra.mxu0 %v6402_v2  ;;  %2480 = vmatprep.subr.bf16.mxu1 %v6409_v3  ;;  %v6458_v2 = vcombine.low %v793_v50, %v797_v52  ;;  %v6465_v3 = vcombine.high %v800_v57, %v804_v58  ;;  %v840_v26 = vld [vmem:[%s10693_s5 + $0x390] sm:$0xff]  ;;  %v841_v38 = vld [vmem:[%s10693_s5 + $0x398] sm:$0xff] }
 0x227   :  { %2566 = vmatprep.subr.bf16.mxu0 %v6411_v5  ;;  %v812_v5 = vld [vmem:[%s10693_s5 + $0x2b0] sm:$0xff]  ;;  %v845_v40 = vld [vmem:[%s10693_s5 + $0x3b8] sm:$0xff] }
 0x228   :  { %v844_v27 = vld [vmem:[%s10693_s5 + $0x3b0] sm:$0xff]  ;;  %v6507_v50 = vcombine.high %v841_v38, %v845_v40  ;;  %v853_v52 = vld [vmem:[%s10693_s5 + $0x3f8] sm:$0xff] }
 0x229   :  { %2481 = vmatpush1.bf16.msra.mxu1 %v6408_v45  ;;  %v6464_v45 = vcombine.low %v800_v57, %v804_v58  ;;  %v848_v47 = vld [vmem:[%s10693_s5 + $0x3d0] sm:$0xff]  ;;  %v6506_v57 = vcombine.low %v841_v38, %v845_v40 }
 0x22a   :  { %2567 = vmatpush1.bf16.msra.mxu0 %v6410_v46  ;;  %2482 = vmatprep.subr.bf16.mxu1 %v6417_v8  ;;  %v6466_v46 = vcombine.low %v801_v60, %v805_v63  ;;  %v6473_v8 = vcombine.high %v808_v4, %v812_v5  ;;  %v852_v49 = vld [vmem:[%s10693_s5 + $0x3f0] sm:$0xff]  ;;  %v857_v60 = vld [vmem:[%s10693_s5 + $0x418] sm:$0xff] }
 0x22b   :  { %2568 = vmatprep.subr.bf16.mxu0 %v6419_v10  ;;  %v820_v10 = vld [vmem:[%s10693_s5 + $0x2f0] sm:$0xff]  ;;  %v6513_v58 = vcombine.high %v848_v47, %v852_v49 }
 0x22c   :  { %v904_v40 = vld [vmem:[%s10693_s5 + $0x590] sm:$0xff] }
 0x22d   :  { %2483 = vmatpush1.bf16.msra.mxu1 %v6416_v14  ;;  %v6472_v14 = vcombine.low %v808_v4, %v812_v5  ;;  %v864_v4 = vld [vmem:[%s10693_s5 + $0x450] sm:$0xff] }
 0x22e   :  { %2569 = vmatpush1.bf16.msra.mxu0 %v6418_v59  ;;  %2484 = vmatprep.subr.bf16.mxu1 %v6425_v16  ;;  %v6474_v59 = vcombine.low %v809_v6, %v813_v17  ;;  %v6481_v16 = vcombine.high %v816_v9, %v820_v10  ;;  %v868_v5 = vld [vmem:[%s10693_s5 + $0x470] sm:$0xff]  ;;  %v869_v17 = vld [vmem:[%s10693_s5 + $0x478] sm:$0xff] }
 0x22f   :  { %2570 = vmatprep.subr.bf16.mxu0 %v6427_v22  ;;  %v828_v22 = vld [vmem:[%s10693_s5 + $0x330] sm:$0xff] }
 0x231   :  { %2485 = vmatpush1.bf16.msra.mxu1 %v6424_v29  ;;  %v6480_v29 = vcombine.low %v816_v9, %v820_v10  ;;  %v873_v10 = vld [vmem:[%s10693_s5 + $0x498] sm:$0xff] }
 0x232   :  { %2571 = vmatpush1.bf16.msra.mxu0 %v6426_v30  ;;  %2486 = vmatprep.subr.bf16.mxu1 %v6433_v32  ;;  %v6482_v30 = vcombine.low %v817_v11, %v821_v13  ;;  %v6489_v32 = vcombine.high %v824_v18, %v828_v22  ;;  %v877_v11 = vld [vmem:[%s10693_s5 + $0x4b8] sm:$0xff] }
 0x233   :  { %2572 = vmatprep.subr.bf16.mxu0 %v6435_v37  ;;  %v6491_v37 = vcombine.high %v825_v23, %v829_v28 }
 0x235   :  { %2487 = vmatpush1.bf16.msra.mxu1 %v6432_v20  ;;  %v6488_v20 = vcombine.low %v824_v18, %v828_v22 }
 0x236   :  { %2573 = vmatpush1.bf16.msra.mxu0 %v6434_v21  ;;  %2488 = vmatprep.subr.bf16.mxu1 %v6441_v24  ;;  %v6490_v21 = vcombine.low %v825_v23, %v829_v28  ;;  %v6497_v24 = vcombine.high %v832_v33, %v836_v34  ;;  %v881_v23 = vld [vmem:[%s10693_s5 + $0x4d8] sm:$0xff] }
 0x237   :  { %2574 = vmatprep.subr.bf16.mxu0 %v6443_v39  ;;  %v6499_v39 = vcombine.high %v833_v35, %v837_v19 }
 0x239   :  { %2489 = vmatpush1.bf16.msra.mxu1 %v6440_v42  ;;  %v6496_v42 = vcombine.low %v832_v33, %v836_v34  ;;  %v893_v34 = vld [vmem:[%s10693_s5 + $0x538] sm:$0xff] }
 0x23a   :  { %2575 = vmatpush1.bf16.msra.mxu0 %v6442_v43  ;;  %2490 = vmatprep.subr.bf16.mxu1 %v6449_v44  ;;  %v6498_v43 = vcombine.low %v833_v35, %v837_v19  ;;  %v6505_v44 = vcombine.high %v840_v26, %v844_v27  ;;  %v896_v19 = vld [vmem:[%s10693_s5 + $0x550] sm:$0xff] }
 0x23b   :  { %2576 = vmatprep.subr.bf16.mxu0 %v6451_v51  ;;  %v849_v51 = vld [vmem:[%s10693_s5 + $0x3d8] sm:$0xff] }
 0x23c   :  { %v6515_v63 = vcombine.high %v849_v51, %v853_v52 }
 0x23d   :  { %2491 = vmatpush1.bf16.msra.mxu1 %v6448_v54  ;;  %v6504_v54 = vcombine.low %v840_v26, %v844_v27  ;;  %v897_v26 = vld [vmem:[%s10693_s5 + $0x558] sm:$0xff] }
 0x23e   :  { %2577 = vmatpush1.bf16.msra.mxu0 %v6450_v55  ;;  %2492 = vmatprep.subr.bf16.mxu1 %v6457_v56  ;;  %v856_v55 = vld [vmem:[%s10693_s5 + $0x410] sm:$0xff]  ;;  %v901_v27 = vld [vmem:[%s10693_s5 + $0x578] sm:$0xff] }
 0x23f   :  { %2578 = vmatprep.subr.bf16.mxu0 %v6459_v61  ;;  %v860_v56 = vld [vmem:[%s10693_s5 + $0x430] sm:$0xff]  ;;  %v861_v61 = vld [vmem:[%s10693_s5 + $0x438] sm:$0xff] }
 0x240   :  { %v6523_v6 = vcombine.high %v857_v60, %v861_v61  ;;  %v6522_v9 = vcombine.low %v857_v60, %v861_v61 }
 0x241   :  { %2493 = vmatpush1.bf16.msra.mxu1 %v6456_v0  ;;  %v6512_v0 = vcombine.low %v848_v47, %v852_v49  ;;  %v905_v47 = vld [vmem:[%s10693_s5 + $0x598] sm:$0xff] }
 0x242   :  { %2579 = vmatpush1.bf16.msra.mxu0 %v6458_v2  ;;  %2494 = vmatprep.subr.bf16.mxu1 %v6465_v3  ;;  %v6514_v2 = vcombine.low %v849_v51, %v853_v52  ;;  %v6521_v3 = vcombine.high %v856_v55, %v860_v56  ;;  %v909_v49 = vld [vmem:[%s10693_s5 + $0x5b8] sm:$0xff]  ;;  %v912_v52 = vld [vmem:[%s10693_s5 + $0x5d0] sm:$0xff] }
 0x243   :  { %2580 = vmatprep.subr.bf16.mxu0 %v6467_v7  ;;  %v865_v7 = vld [vmem:[%s10693_s5 + $0x458] sm:$0xff]  ;;  %v6571_v60 = vcombine.high %v905_v47, %v909_v49 }
 0x244   :  { %v6531_v13 = vcombine.high %v865_v7, %v869_v17  ;;  %v6530_v18 = vcombine.low %v865_v7, %v869_v17 }
 0x245   :  { %2495 = vmatpush1.bf16.msra.mxu1 %v6464_v45  ;;  %v6520_v45 = vcombine.low %v856_v55, %v860_v56  ;;  %v6562_v55 = vcombine.low %v897_v26, %v901_v27 }
 0x246   :  { %2581 = vmatpush1.bf16.msra.mxu0 %v6466_v46  ;;  %2496 = vmatprep.subr.bf16.mxu1 %v6473_v8  ;;  %v872_v46 = vld [vmem:[%s10693_s5 + $0x490] sm:$0xff] }
 0x247   :  { %2582 = vmatprep.subr.bf16.mxu0 %v6475_v12  ;;  %v876_v8 = vld [vmem:[%s10693_s5 + $0x4b0] sm:$0xff]  ;;  %v6529_v12 = vcombine.high %v864_v4, %v868_v5 }
 0x248   :  { %v6537_v22 = vcombine.high %v872_v46, %v876_v8  ;;  %v6536_v28 = vcombine.low %v872_v46, %v876_v8  ;;  %v928_v46 = vld [vmem:[%s10693_s5 + $0x650] sm:$0xff] }
 0x249   :  { %2497 = vmatpush1.bf16.msra.mxu1 %v6472_v14  ;;  %v6528_v14 = vcombine.low %v864_v4, %v868_v5  ;;  %v921_v5 = vld [vmem:[%s10693_s5 + $0x618] sm:$0xff]  ;;  %v932_v8 = vld [vmem:[%s10693_s5 + $0x670] sm:$0xff] }
 0x24a   :  { %2583 = vmatpush1.bf16.msra.mxu0 %v6474_v59  ;;  %2498 = vmatprep.subr.bf16.mxu1 %v6481_v16  ;;  %v880_v59 = vld [vmem:[%s10693_s5 + $0x4d0] sm:$0xff] }
 0x24b   :  { %2584 = vmatprep.subr.bf16.mxu0 %v6483_v25  ;;  %v884_v16 = vld [vmem:[%s10693_s5 + $0x4f0] sm:$0xff]  ;;  %v6539_v25 = vcombine.high %v873_v10, %v877_v11 }
 0x24c   :  { %v6545_v33 = vcombine.high %v880_v59, %v884_v16 }
 0x24d   :  { %2499 = vmatpush1.bf16.msra.mxu1 %v6480_v29  ;;  %v888_v29 = vld [vmem:[%s10693_s5 + $0x510] sm:$0xff] }
 0x24e   :  { %2585 = vmatpush1.bf16.msra.mxu0 %v6482_v30  ;;  %2500 = vmatprep.subr.bf16.mxu1 %v6489_v32  ;;  %v892_v30 = vld [vmem:[%s10693_s5 + $0x530] sm:$0xff]  ;;  %v6538_v32 = vcombine.low %v873_v10, %v877_v11  ;;  %v929_v10 = vld [vmem:[%s10693_s5 + $0x658] sm:$0xff] }
 0x24f   :  { %2586 = vmatprep.subr.bf16.mxu0 %v6491_v37  ;;  %v6544_v37 = vcombine.low %v880_v59, %v884_v16  ;;  %v933_v11 = vld [vmem:[%s10693_s5 + $0x678] sm:$0xff]  ;;  %v936_v59 = vld [vmem:[%s10693_s5 + $0x690] sm:$0xff] }
 0x250   :  { %v940_v16 = vld [vmem:[%s10693_s5 + $0x6b0] sm:$0xff] }
 0x251   :  { %2501 = vmatpush1.bf16.msra.mxu1 %v6488_v20  ;;  %v900_v20 = vld [vmem:[%s10693_s5 + $0x570] sm:$0xff] }
 0x252   :  { %2587 = vmatpush1.bf16.msra.mxu0 %v6490_v21  ;;  %2502 = vmatprep.subr.bf16.mxu1 %v6497_v24  ;;  %v6553_v24 = vcombine.high %v888_v29, %v892_v30  ;;  %v6560_v51 = vcombine.low %v896_v19, %v900_v20 }
 0x253   :  { %2588 = vmatprep.subr.bf16.mxu0 %v6499_v39  ;;  %v6552_v39 = vcombine.low %v888_v29, %v892_v30  ;;  %v944_v30 = vld [vmem:[%s10693_s5 + $0x6d0] sm:$0xff] }
 0x255   :  { %2503 = vmatpush1.bf16.msra.mxu1 %v6496_v42  ;;  %v908_v42 = vld [vmem:[%s10693_s5 + $0x5b0] sm:$0xff] }
 0x256   :  { %2589 = vmatpush1.bf16.msra.mxu0 %v6498_v43  ;;  %2504 = vmatprep.subr.bf16.mxu1 %v6505_v44  ;;  %v6561_v44 = vcombine.high %v896_v19, %v900_v20  ;;  %v6569_v56 = vcombine.high %v904_v40, %v908_v42  ;;  %v6568_v61 = vcombine.low %v904_v40, %v908_v42  ;;  %v952_v19 = vld [vmem:[%s10693_s5 + $0x710] sm:$0xff] }
 0x257   :  { %2590 = vmatprep.subr.bf16.mxu0 %v6507_v50  ;;  %v6563_v50 = vcombine.high %v897_v26, %v901_v27  ;;  %v956_v20 = vld [vmem:[%s10693_s5 + $0x730] sm:$0xff]  ;;  %v957_v26 = vld [vmem:[%s10693_s5 + $0x738] sm:$0xff] }
 0x258   :  { %v960_v40 = vld [vmem:[%s10693_s5 + $0x750] sm:$0xff] }
 0x259   :  { %2505 = vmatpush1.bf16.msra.mxu1 %v6504_v54  ;;  %v916_v54 = vld [vmem:[%s10693_s5 + $0x5f0] sm:$0xff] }
 0x25a   :  { %2591 = vmatpush1.bf16.msra.mxu0 %v6506_v57  ;;  %2506 = vmatprep.subr.bf16.mxu1 %v6513_v58  ;;  %v913_v57 = vld [vmem:[%s10693_s5 + $0x5d8] sm:$0xff]  ;;  %v6576_v7 = vcombine.low %v912_v52, %v916_v54  ;;  %v964_v42 = vld [vmem:[%s10693_s5 + $0x770] sm:$0xff] }
 0x25b   :  { %2592 = vmatprep.subr.bf16.mxu0 %v6515_v63  ;;  %v917_v58 = vld [vmem:[%s10693_s5 + $0x5f8] sm:$0xff]  ;;  %v6570_v63 = vcombine.low %v905_v47, %v909_v49  ;;  %v6616_v49 = vcombine.low %v952_v19, %v956_v20 }
 0x25c   :  { %v6579_v4 = vcombine.high %v913_v57, %v917_v58  ;;  %v6578_v17 = vcombine.low %v913_v57, %v917_v58  ;;  %v965_v47 = vld [vmem:[%s10693_s5 + $0x778] sm:$0xff]  ;;  %v6624_v58 = vcombine.low %v960_v40, %v964_v42 }
 0x25d   :  { %2507 = vmatpush1.bf16.msra.mxu1 %v6512_v0  ;;  %v6577_v0 = vcombine.high %v912_v52, %v916_v54  ;;  %v968_v52 = vld [vmem:[%s10693_s5 + $0x790] sm:$0xff]  ;;  %v973_v57 = vld [vmem:[%s10693_s5 + $0x7b8] sm:$0xff] }
 0x25e   :  { %2593 = vmatpush1.bf16.msra.mxu0 %v6514_v2  ;;  %2519 = vmatprep.subr.bf16.mxu1 %v6521_v3  ;;  %v920_v2 = vld [vmem:[%s10693_s5 + $0x610] sm:$0xff] }
 0x25f   :  { %2605 = vmatprep.subr.bf16.mxu0 %v6523_v6  ;;  %v924_v3 = vld [vmem:[%s10693_s5 + $0x630] sm:$0xff]  ;;  %v925_v6 = vld [vmem:[%s10693_s5 + $0x638] sm:$0xff] }
 0x260   :  { %2509 = vmatmul.mubr.bf16.vlgmr.msra.gmra.mrb[4].mxu1 %v8626_v15  ;;  %v972_v54 = vld [vmem:[%s10693_s5 + $0x7b0] sm:$0xff] }
 0x261   :  { %2595 = vmatmul.mubr.bf16.vlgmr.msra.gmra.mrb[16].mxu0 %v8626_v15  ;;  %2520 = vmatpush1.bf16.msra.mxu1 %v6520_v45  ;;  %v885_v15 = vld [vmem:[%s10693_s5 + $0x4f8] sm:$0xff]  ;;  %v6585_v45 = vcombine.high %v920_v2, %v924_v3 }
 0x262   :  { %2551 = vmatprep.mubr.bf16.mxu1 %v8845_v53  ;;  %2606 = vmatpush1.bf16.msra.mxu0 %v6522_v9  ;;  %v6547_v35 = vcombine.high %v881_v23, %v885_v15  ;;  %v6546_v21 = vcombine.low %v881_v23, %v885_v15  ;;  %v6587_v9 = vcombine.high %v921_v5, %v925_v6  ;;  %v941_v23 = vld [vmem:[%s10693_s5 + $0x6b8] sm:$0xff] }
 0x263   :  { %2637 = vmatprep.mubr.bf16.mxu0 %v8845_v53  ;;  %2521 = vmatprep.subr.bf16.mxu1 %v6529_v12  ;;  %v889_v53 = vld [vmem:[%s10693_s5 + $0x518] sm:$0xff]  ;;  %v6584_v12 = vcombine.low %v920_v2, %v924_v3  ;;  %v6592_v15 = vcombine.low %v928_v46, %v932_v8 }
 0x264   :  { %2607 = vmatprep.subr.bf16.mxu0 %v6531_v13  ;;  %v6555_v38 = vcombine.high %v889_v53, %v893_v34  ;;  %v6554_v43 = vcombine.low %v889_v53, %v893_v34  ;;  %v6586_v13 = vcombine.low %v921_v5, %v925_v6  ;;  %v949_v53 = vld [vmem:[%s10693_s5 + $0x6f8] sm:$0xff]  ;;  %v6600_v34 = vcombine.low %v936_v59, %v940_v16 }
 0x265   :  { %2522 = vmatpush1.bf16.msra.mxu1 %v6528_v14  ;;  %v6593_v14 = vcombine.high %v928_v46, %v932_v8  ;;  %v977_v3 = vld [vmem:[%s10693_s5 + $0x7d8] sm:$0xff]  ;;  %v6632_v5 = vcombine.low %v968_v52, %v972_v54  ;;  %v7400_v8 = vld [vmem:[%s10696_s7 + $0x4] ss:$28 sps:$4 sm:$0xff]  }
 0x266   :  { %2608 = vmatpush1.bf16.msra.mxu0 %v6530_v18  ;;  %2523 = vmatprep.subr.bf16.mxu1 %v6537_v22  ;;  %v6595_v18 = vcombine.high %v929_v10, %v933_v11  ;;  %v937_v22 = vld [vmem:[%s10693_s5 + $0x698] sm:$0xff] }
 0x267   :  { %2609 = vmatprep.subr.bf16.mxu0 %v6539_v25  ;;  %v6594_v25 = vcombine.low %v929_v10, %v933_v11  ;;  %v6603_v29 = vcombine.high %v937_v22, %v941_v23  ;;  %v7403_v10 = vld [vmem:[%s10696_s7 + $0xc] ss:$28 sps:$4 sm:$0xff]  }
 0x268   :  { %v7401_v11 = vld [vmem:[%s10696_s7 + $0x8] ss:$28 sps:$4 sm:$0xff]  }
 0x269   :  { %2524 = vmatpush1.bf16.msra.mxu1 %v6536_v28  ;;  %v6601_v28 = vcombine.high %v936_v59, %v940_v16  ;;  %v7407_v59 = vld [vmem:[%s10696_s7 + $0x40] ss:$28 sps:$4 sm:$0xff]   ;;  %v7412_v16 = vld [vmem:[%s10696_s7 + $0x74] ss:$28 sps:$4 sm:$0xff]  }
 0x26a   :  { %2610 = vmatpush1.bf16.msra.mxu0 %v6538_v32  ;;  %2525 = vmatprep.subr.bf16.mxu1 %v6545_v33  ;;  %v948_v32 = vld [vmem:[%s10693_s5 + $0x6f0] sm:$0xff]  ;;  %v945_v33 = vld [vmem:[%s10693_s5 + $0x6d8] sm:$0xff] }
 0x26b   :  { %2611 = vmatprep.subr.bf16.mxu0 %v6547_v35  ;;  %v6602_v35 = vcombine.low %v937_v22, %v941_v23  ;;  %v6608_v27 = vcombine.low %v944_v30, %v948_v32  ;;  %v7413_v22 = vld [vmem:[%s10696_s7 + $0x78] ss:$28 sps:$4 sm:$0xff]   ;;  %v7418_v23 = vld [vmem:[%s10696_s7 + $0xac] ss:$28 sps:$4 sm:$0xff]  }
 0x26d   :  { %2526 = vmatpush1.bf16.msra.mxu1 %v6544_v37  ;;  %v6609_v37 = vcombine.high %v944_v30, %v948_v32  ;;  %v7422_v30 = vld [vmem:[%s10696_s7 + $0xe0] ss:$28 sps:$4 sm:$0xff]   ;;  %v7427_v32 = vld [vmem:[%s10696_s7 + $0xec] ss:$28 sps:$4 sm:$0xff]  }
 0x26e   :  { %2612 = vmatpush1.bf16.msra.mxu0 %v6546_v21  ;;  %2527 = vmatprep.subr.bf16.mxu1 %v6553_v24  ;;  %v6611_v21 = vcombine.high %v945_v33, %v949_v53  ;;  %v953_v24 = vld [vmem:[%s10693_s5 + $0x718] sm:$0xff] }
 0x26f   :  { %2613 = vmatprep.subr.bf16.mxu0 %v6555_v38  ;;  %v6610_v38 = vcombine.low %v945_v33, %v949_v53  ;;  %v7425_v33 = vld [vmem:[%s10696_s7 + $0xe8] ss:$28 sps:$4 sm:$0xff]   ;;  %v7430_v53 = vld [vmem:[%s10696_s7 + $0x11c] ss:$28 sps:$4 sm:$0xff]  }
 0x271   :  { %2528 = vmatpush1.bf16.msra.mxu1 %v6552_v39  ;;  %v6617_v39 = vcombine.high %v952_v19, %v956_v20  ;;  %v7436_v19 = vld [vmem:[%s10696_s7 + $0x154] ss:$28 sps:$4 sm:$0xff]  }
 0x272   :  { %2614 = vmatpush1.bf16.msra.mxu0 %v6554_v43  ;;  %2529 = vmatprep.subr.bf16.mxu1 %v6561_v44  ;;  %v6619_v43 = vcombine.high %v953_v24, %v957_v26  ;;  %v961_v44 = vld [vmem:[%s10693_s5 + $0x758] sm:$0xff]  ;;  %v7434_v20 = vld [vmem:[%s10696_s7 + $0x150] ss:$28 sps:$4 sm:$0xff]  }
 0x273   :  { %2615 = vmatprep.subr.bf16.mxu0 %v6563_v50  ;;  %v6618_v50 = vcombine.low %v953_v24, %v957_v26  ;;  %v7437_v24 = vld [vmem:[%s10696_s7 + $0x158] ss:$28 sps:$4 sm:$0xff]   ;;  %v7442_v26 = vld [vmem:[%s10696_s7 + $0x18c] ss:$28 sps:$4 sm:$0xff]  }
 0x275   :  { %2530 = vmatpush1.bf16.msra.mxu1 %v6560_v51  ;;  %v6625_v51 = vcombine.high %v960_v40, %v964_v42  ;;  %v7448_v40 = vld [vmem:[%s10696_s7 + $0x1c4] ss:$28 sps:$4 sm:$0xff]  }
 0x276   :  { %2616 = vmatpush1.bf16.msra.mxu0 %v6562_v55  ;;  %2531 = vmatprep.subr.bf16.mxu1 %v6569_v56  ;;  %v6627_v55 = vcombine.high %v961_v44, %v965_v47  ;;  %v969_v56 = vld [vmem:[%s10693_s5 + $0x798] sm:$0xff] }
 0x277   :  { %2617 = vmatprep.subr.bf16.mxu0 %v6571_v60  ;;  %v6626_v60 = vcombine.low %v961_v44, %v965_v47  ;;  %v6635_v2 = vcombine.high %v969_v56, %v973_v57  ;;  %v6634_v6 = vcombine.low %v969_v56, %v973_v57  ;;  %v7446_v42 = vld [vmem:[%s10696_s7 + $0x1c0] ss:$28 sps:$4 sm:$0xff]   ;;  %v7449_v44 = vld [vmem:[%s10696_s7 + $0x1c8] ss:$28 sps:$4 sm:$0xff]   ;;  %v7461_v56 = vld [vmem:[%s10696_s7 + $0x238] ss:$28 sps:$4 sm:$0xff]  }
 0x278   :  { %v7454_v47 = vld [vmem:[%s10696_s7 + $0x1fc] ss:$28 sps:$4 sm:$0xff]   ;;  %v7466_v57 = vld [vmem:[%s10696_s7 + $0x26c] ss:$28 sps:$4 sm:$0xff]  }
 0x279   :  { %2532 = vmatpush1.bf16.msra.mxu1 %v6568_v61  ;;  %v6633_v61 = vcombine.high %v968_v52, %v972_v54  ;;  %v7460_v52 = vld [vmem:[%s10696_s7 + $0x234] ss:$28 sps:$4 sm:$0xff]  }
 0x27a   :  { %2618 = vmatpush1.bf16.msra.mxu0 %v6570_v63  ;;  %2533 = vmatprep.subr.bf16.mxu1 %v6577_v0  ;;  %v976_v63 = vld [vmem:[%s10693_s5 + $0x7d0] sm:$0xff] }
 0x27b   :  { %2619 = vmatprep.subr.bf16.mxu0 %v6579_v4  ;;  %v980_v0 = vld [vmem:[%s10693_s5 + $0x7f0] sm:$0xff]  ;;  %v981_v4 = vld [vmem:[%s10693_s5 + $0x7f8] sm:$0xff] }
 0x27c   :  { %v6642_v46 = vcombine.low %v977_v3, %v981_v4  ;;  %v7458_v54 = vld [vmem:[%s10696_s7 + $0x230] ss:$28 sps:$4 sm:$0xff]  }
 0x27d   :  { %2534 = vmatpush1.bf16.msra.mxu1 %v6576_v7  ;;  %v6641_v7 = vcombine.high %v976_v63, %v980_v0 }
 0x27e   :  { %2620 = vmatpush1.bf16.msra.mxu0 %v6578_v17  ;;  %2535 = vmatprep.subr.bf16.mxu1 %v6585_v45  ;;  %v6643_v17 = vcombine.high %v977_v3, %v981_v4  ;;  %v6640_v45 = vcombine.low %v976_v63, %v980_v0  ;;  %v7472_v63 = vld [vmem:[%s10696_s7 + $0x2a4] ss:$28 sps:$4 sm:$0xff]   ;;  %v7478_v4 = vld [vmem:[%s10696_s7 + $0x2dc] ss:$28 sps:$4 sm:$0xff]  }
 0x27f   :  { %2621 = vmatprep.subr.bf16.mxu0 %v6587_v9  ;;  %v7398_v9 = vld [vmem:[%s10696_s7] ss:$28 sps:$4 sm:$0xff]   ;;  %v7473_v3 = vld [vmem:[%s10696_s7 + $0x2a8] ss:$28 sps:$4 sm:$0xff]  }
 0x280   :  { %v7470_v0 = vld [vmem:[%s10696_s7 + $0x2a0] ss:$28 sps:$4 sm:$0xff]  }
 0x281   :  { %2536 = vmatpush1.bf16.msra.mxu1 %v6584_v12  ;;  %v7406_v12 = vld [vmem:[%s10696_s7 + $0x3c] ss:$28 sps:$4 sm:$0xff]  }
 0x282   :  { %2622 = vmatpush1.bf16.msra.mxu0 %v6586_v13  ;;  %2537 = vmatprep.subr.bf16.mxu1 %v6593_v14  ;;  %v7404_v13 = vld [vmem:[%s10696_s7 + $0x38] ss:$28 sps:$4 sm:$0xff]   ;;  %v7409_v14 = vld [vmem:[%s10696_s7 + $0x44] ss:$28 sps:$4 sm:$0xff]  }
 0x283   :  { %2623 = vmatprep.subr.bf16.mxu0 %v6595_v18  ;;  %v7410_v18 = vld [vmem:[%s10696_s7 + $0x70] ss:$28 sps:$4 sm:$0xff]  }
 0x285   :  { %2538 = vmatpush1.bf16.msra.mxu1 %v6592_v15  ;;  %v7416_v15 = vld [vmem:[%s10696_s7 + $0xa8] ss:$28 sps:$4 sm:$0xff]  }
 0x286   :  { %2624 = vmatpush1.bf16.msra.mxu0 %v6594_v25  ;;  %2539 = vmatprep.subr.bf16.mxu1 %v6601_v28  ;;  %v7421_v25 = vld [vmem:[%s10696_s7 + $0xb4] ss:$28 sps:$4 sm:$0xff]  }
 0x287   :  { %2625 = vmatprep.subr.bf16.mxu0 %v6603_v29  ;;  %v7419_v28 = vld [vmem:[%s10696_s7 + $0xb0] ss:$28 sps:$4 sm:$0xff]   ;;  %v7424_v29 = vld [vmem:[%s10696_s7 + $0xe4] ss:$28 sps:$4 sm:$0xff]  }
 0x289   :  { %2540 = vmatpush1.bf16.msra.mxu1 %v6600_v34  ;;  %v7428_v34 = vld [vmem:[%s10696_s7 + $0x118] ss:$28 sps:$4 sm:$0xff]  }
 0x28a   :  { %2626 = vmatpush1.bf16.msra.mxu0 %v6602_v35  ;;  %2541 = vmatprep.subr.bf16.mxu1 %v6609_v37  ;;  %v7433_v35 = vld [vmem:[%s10696_s7 + $0x124] ss:$28 sps:$4 sm:$0xff]  }
 0x28b   :  { %2627 = vmatprep.subr.bf16.mxu0 %v6611_v21  ;;  %v7431_v37 = vld [vmem:[%s10696_s7 + $0x120] ss:$28 sps:$4 sm:$0xff]  }
 0x28c   :  { %v7439_v21 = vld [vmem:[%s10696_s7 + $0x15c] ss:$28 sps:$4 sm:$0xff]  }
 0x28d   :  { %2542 = vmatpush1.bf16.msra.mxu1 %v6608_v27  ;;  %v7440_v27 = vld [vmem:[%s10696_s7 + $0x188] ss:$28 sps:$4 sm:$0xff]  }
 0x28e   :  { %2628 = vmatpush1.bf16.msra.mxu0 %v6610_v38  ;;  %2543 = vmatprep.subr.bf16.mxu1 %v6617_v39  ;;  %v7445_v38 = vld [vmem:[%s10696_s7 + $0x194] ss:$28 sps:$4 sm:$0xff]  }
 0x28f   :  { %2629 = vmatprep.subr.bf16.mxu0 %v6619_v43  ;;  %v7443_v39 = vld [vmem:[%s10696_s7 + $0x190] ss:$28 sps:$4 sm:$0xff]  }
 0x290   :  { %v7451_v43 = vld [vmem:[%s10696_s7 + $0x1cc] ss:$28 sps:$4 sm:$0xff]  }
 0x291   :  { %2544 = vmatpush1.bf16.msra.mxu1 %v6616_v49  ;;  %v7457_v49 = vld [vmem:[%s10696_s7 + $0x204] ss:$28 sps:$4 sm:$0xff]  }
 0x292   :  { %2630 = vmatpush1.bf16.msra.mxu0 %v6618_v50  ;;  %2545 = vmatprep.subr.bf16.mxu1 %v6625_v51  ;;  %v7452_v50 = vld [vmem:[%s10696_s7 + $0x1f8] ss:$28 sps:$4 sm:$0xff]   ;;  %v7455_v51 = vld [vmem:[%s10696_s7 + $0x200] ss:$28 sps:$4 sm:$0xff]  }
 0x293   :  { %2631 = vmatprep.subr.bf16.mxu0 %v6627_v55  ;;  %v7463_v55 = vld [vmem:[%s10696_s7 + $0x23c] ss:$28 sps:$4 sm:$0xff]  }
 0x295   :  { %2546 = vmatpush1.bf16.msra.mxu1 %v6624_v58  ;;  %v7464_v58 = vld [vmem:[%s10696_s7 + $0x268] ss:$28 sps:$4 sm:$0xff]  }
 0x296   :  { %2632 = vmatpush1.bf16.msra.mxu0 %v6626_v60  ;;  %2547 = vmatprep.subr.bf16.mxu1 %v6633_v61  ;;  %v7469_v60 = vld [vmem:[%s10696_s7 + $0x274] ss:$28 sps:$4 sm:$0xff]  }
 0x297   :  { %2633 = vmatprep.subr.bf16.mxu0 %v6635_v2  ;;  %v7467_v61 = vld [vmem:[%s10696_s7 + $0x270] ss:$28 sps:$4 sm:$0xff]  }
 0x298   :  { %v7475_v2 = vld [vmem:[%s10696_s7 + $0x2ac] ss:$28 sps:$4 sm:$0xff]  }
 0x299   :  { %2548 = vmatpush1.bf16.msra.mxu1 %v6632_v5  ;;  %v7476_v5 = vld [vmem:[%s10696_s7 + $0x2d8] ss:$28 sps:$4 sm:$0xff]  }
 0x29a   :  { %2634 = vmatpush1.bf16.msra.mxu0 %v6634_v6  ;;  %2549 = vmatprep.subr.bf16.mxu1 %v6641_v7  ;;  %v7481_v6 = vld [vmem:[%s10696_s7 + $0x2e4] ss:$28 sps:$4 sm:$0xff]  }
 0x29b   :  { %2635 = vmatprep.subr.bf16.mxu0 %v6643_v17  ;;  %v7479_v7 = vld [vmem:[%s10696_s7 + $0x2e0] ss:$28 sps:$4 sm:$0xff]   ;;  %v7484_v17 = vld [vmem:[%s10696_s7 + $0x314] ss:$28 sps:$4 sm:$0xff]  }
 0x29d   :  { %2550 = vmatpush1.bf16.msra.mxu1 %v6640_v45  ;;  %v7482_v45 = vld [vmem:[%s10696_s7 + $0x310] ss:$28 sps:$4 sm:$0xff]  }
 0x29e   :  { %2636 = vmatpush1.bf16.msra.mxu0 %v6642_v46  ;;  %5557 = vmatprep.subr.bf16.mxu1 %v7400_v8  ;;  %v7487_v46 = vld [vmem:[%s10696_s7 + $0x31c] ss:$28 sps:$4 sm:$0xff]  }
 0x29f   :  { %5729 = vmatprep.subr.bf16.mxu0 %v7403_v10  ;;  %v7485_v8 = vld [vmem:[%s10696_s7 + $0x318] ss:$28 sps:$4 sm:$0xff]   ;;  %v7488_v10 = vld [vmem:[%s10696_s7 + $0x348] ss:$28 sps:$4 sm:$0xff]  }
 0x2a0   :  { %2552 = vmatmul.mubr.bf16.vlgmr.msra.gmra.mrb[4].mxu1 %v8834_v48 }
 0x2a1   :  { %2638 = vmatmul.mubr.bf16.vlgmr.msra.gmra.mrb[16].mxu0 %v8834_v48  ;;  %5558 = vmatpush1.bf16.msra.mxu1 %v7398_v9  ;;  %v7415_v48 = vld [vmem:[%s10696_s7 + $0x7c] ss:$28 sps:$4 sm:$0xff]   ;;  %v7490_v9 = vld [vmem:[%s10696_s7 + $0x34c] ss:$28 sps:$4 sm:$0xff]  }
 0x2a2   :  { %5730 = vmatpush1.bf16.msra.mxu0 %v7401_v11  ;;  %5559 = vmatprep.subr.bf16.mxu1 %v7406_v12  ;;  %v7493_v11 = vld [vmem:[%s10696_s7 + $0x354] ss:$28 sps:$4 sm:$0xff]  }
 0x2a3   :  { %5731 = vmatprep.subr.bf16.mxu0 %v7409_v14  ;;  %v7491_v12 = vld [vmem:[%s10696_s7 + $0x350] ss:$28 sps:$4 sm:$0xff]  }
 0x2a4   :  { %v7499_v14 = vld [vmem:[%s10696_s7 + $0x38c] ss:$28 sps:$4 sm:$0xff]  }
 0x2a5   :  { %5560 = vmatpush1.bf16.msra.mxu1 %v7404_v13  ;;  %v7496_v13 = vld [vmem:[%s10696_s7 + $0x384] ss:$28 sps:$4 sm:$0xff]  }
 0x2a6   :  { %5732 = vmatpush1.bf16.msra.mxu0 %v7407_v59  ;;  %5561 = vmatprep.subr.bf16.mxu1 %v7412_v16  ;;  %v9420_v59 = vld [vmem:[%s10697_s6] sm:$0xff] }
 0x2a7   :  { %5733 = vmatprep.subr.bf16.mxu0 %v7415_v48  ;;  %v987_v16 = vrot.slane %v9420_v59, %v8342_v36  ;;  %v991_v48 = vrot.slane %v9420_v59, %v8354_v41 }
 0x2a9   :  { %5562 = vmatpush1.bf16.msra.mxu1 %v7410_v18  ;;  %v995_v18 = vrot.slane %v9420_v59, %v8785_v62 }
 0x2aa   :  { %5734 = vmatpush1.bf16.msra.mxu0 %v7413_v22  ;;  %5563 = vmatprep.subr.bf16.mxu1 %v7418_v23  ;;  %v999_v22 = vrot.slane %v9420_v59, %v8788_v1 }
 0x2ab   :  { %5735 = vmatprep.subr.bf16.mxu0 %v7421_v25 }
 0x2ad   :  { %5564 = vmatpush1.bf16.msra.mxu1 %v7416_v15 }
 0x2ae   :  { %5736 = vmatpush1.bf16.msra.mxu0 %v7419_v28  ;;  %5565 = vmatprep.subr.bf16.mxu1 %v7424_v29 }
 0x2af   :  { %5737 = vmatprep.subr.bf16.mxu0 %v7427_v32 }
 0x2b1   :  { %5566 = vmatpush1.bf16.msra.mxu1 %v7422_v30 }
 0x2b2   :  { %5738 = vmatpush1.bf16.msra.mxu0 %v7425_v33  ;;  %5567 = vmatprep.subr.bf16.mxu1 %v7430_v53 }
 0x2b3   :  { %5739 = vmatprep.subr.bf16.mxu0 %v7433_v35 }
 0x2b5   :  { %5568 = vmatpush1.bf16.msra.mxu1 %v7428_v34 }
 0x2b6   :  { %5740 = vmatpush1.bf16.msra.mxu0 %v7431_v37  ;;  %5569 = vmatprep.subr.bf16.mxu1 %v7436_v19 }
 0x2b7   :  { %5741 = vmatprep.subr.bf16.mxu0 %v7439_v21 }
 0x2b9   :  { %5570 = vmatpush1.bf16.msra.mxu1 %v7434_v20 }
 0x2ba   :  { %5742 = vmatpush1.bf16.msra.mxu0 %v7437_v24  ;;  %5571 = vmatprep.subr.bf16.mxu1 %v7442_v26 }
 0x2bb   :  { %5743 = vmatprep.subr.bf16.mxu0 %v7445_v38 }
 0x2bd   :  { %5572 = vmatpush1.bf16.msra.mxu1 %v7440_v27 }
 0x2be   :  { %5744 = vmatpush1.bf16.msra.mxu0 %v7443_v39  ;;  %5573 = vmatprep.subr.bf16.mxu1 %v7448_v40 }
 0x2bf   :  { %5745 = vmatprep.subr.bf16.mxu0 %v7451_v43 }
 0x2c1   :  { %5574 = vmatpush1.bf16.msra.mxu1 %v7446_v42 }
 0x2c2   :  { %5746 = vmatpush1.bf16.msra.mxu0 %v7449_v44  ;;  %5575 = vmatprep.subr.bf16.mxu1 %v7454_v47 }
 0x2c3   :  { %5747 = vmatprep.subr.bf16.mxu0 %v7457_v49 }
 0x2c5   :  { %5576 = vmatpush1.bf16.msra.mxu1 %v7452_v50 }
 0x2c6   :  { %5748 = vmatpush1.bf16.msra.mxu0 %v7455_v51  ;;  %5577 = vmatprep.subr.bf16.mxu1 %v7460_v52 }
 0x2c7   :  { %5749 = vmatprep.subr.bf16.mxu0 %v7463_v55 }
 0x2c9   :  { %5578 = vmatpush1.bf16.msra.mxu1 %v7458_v54 }
 0x2ca   :  { %5750 = vmatpush1.bf16.msra.mxu0 %v7461_v56  ;;  %5579 = vmatprep.subr.bf16.mxu1 %v7466_v57 }
 0x2cb   :  { %5751 = vmatprep.subr.bf16.mxu0 %v7469_v60  ;;  %v7494_v60 = vld [vmem:[%s10696_s7 + $0x380] ss:$28 sps:$4 sm:$0xff]  }
 0x2cd   :  { %5580 = vmatpush1.bf16.msra.mxu1 %v7464_v58 }
 0x2ce   :  { %5752 = vmatpush1.bf16.msra.mxu0 %v7467_v61  ;;  %5581 = vmatprep.subr.bf16.mxu1 %v7472_v63  ;;  %v7497_v61 = vld [vmem:[%s10696_s7 + $0x388] ss:$28 sps:$4 sm:$0xff]  }
 0x2cf   :  { %5753 = vmatprep.subr.bf16.mxu0 %v7475_v2  ;;  %v7502_v2 = vld [vmem:[%s10696_s7 + $0x3bc] ss:$28 sps:$4 sm:$0xff]  }
 0x2d1   :  { %5582 = vmatpush1.bf16.msra.mxu1 %v7470_v0 }
 0x2d2   :  { %5754 = vmatpush1.bf16.msra.mxu0 %v7473_v3  ;;  %5583 = vmatprep.subr.bf16.mxu1 %v7478_v4  ;;  %v7500_v3 = vld [vmem:[%s10696_s7 + $0x3b8] ss:$28 sps:$4 sm:$0xff]   ;;  %v7503_v4 = vld [vmem:[%s10696_s7 + $0x3c0] ss:$28 sps:$4 sm:$0xff]  }
 0x2d3   :  { %5755 = vmatprep.subr.bf16.mxu0 %v7481_v6  ;;  %v7508_v6 = vld [vmem:[%s10696_s7 + $0x3f4] ss:$28 sps:$4 sm:$0xff]  }
 0x2d5   :  { %5584 = vmatpush1.bf16.msra.mxu1 %v7476_v5  ;;  %v7505_v5 = vld [vmem:[%s10696_s7 + $0x3c4] ss:$28 sps:$4 sm:$0xff]  }
 0x2d6   :  { %5756 = vmatpush1.bf16.msra.mxu0 %v7479_v7  ;;  %5585 = vmatprep.subr.bf16.mxu1 %v7484_v17  ;;  %v7511_v7 = vld [vmem:[%s10696_s7 + $0x3fc] ss:$28 sps:$4 sm:$0xff]   ;;  %v7506_v17 = vld [vmem:[%s10696_s7 + $0x3f0] ss:$28 sps:$4 sm:$0xff]  }
 0x2d7   :  { %5757 = vmatprep.subr.bf16.mxu0 %v7487_v46  ;;  %v7514_v46 = vld [vmem:[%s10696_s7 + $0x42c] ss:$28 sps:$4 sm:$0xff]  }
 0x2d9   :  { %5586 = vmatpush1.bf16.msra.mxu1 %v7482_v45  ;;  %v7509_v45 = vld [vmem:[%s10696_s7 + $0x3f8] ss:$28 sps:$4 sm:$0xff]  }
 0x2da   :  { %5758 = vmatpush1.bf16.msra.mxu0 %v7485_v8  ;;  %5587 = vmatprep.subr.bf16.mxu1 %v7490_v9  ;;  %v7517_v8 = vld [vmem:[%s10696_s7 + $0x434] ss:$28 sps:$4 sm:$0xff]   ;;  %v7512_v9 = vld [vmem:[%s10696_s7 + $0x428] ss:$28 sps:$4 sm:$0xff]  }
 0x2db   :  { %5759 = vmatprep.subr.bf16.mxu0 %v7493_v11  ;;  %v7520_v11 = vld [vmem:[%s10696_s7 + $0x464] ss:$28 sps:$4 sm:$0xff]  }
 0x2dd   :  { %5588 = vmatpush1.bf16.msra.mxu1 %v7488_v10  ;;  %v7515_v10 = vld [vmem:[%s10696_s7 + $0x430] ss:$28 sps:$4 sm:$0xff]  }
 0x2de   :  { %5760 = vmatpush1.bf16.msra.mxu0 %v7491_v12  ;;  %5600 = vmatprep.subr.bf16.mxu1 %v7496_v13  ;;  %v7523_v12 = vld [vmem:[%s10696_s7 + $0x46c] ss:$28 sps:$4 sm:$0xff]   ;;  %v7518_v13 = vld [vmem:[%s10696_s7 + $0x460] ss:$28 sps:$4 sm:$0xff]  }
 0x2df   :  { %5772 = vmatprep.subr.bf16.mxu0 %v7499_v14  ;;  %v7521_v14 = vld [vmem:[%s10696_s7 + $0x468] ss:$28 sps:$4 sm:$0xff]  }
 0x2f3   :  { %v2381_v23 = vpop.f32.mrb[0].mxu1  ;;  %v2467_v15 = vpop.f32.mrb[12].mxu0 }
 0x2f4   :  { %v7196_v25 = vadd.f32 %v2381_v23, %v987_v16  ;;  %v7200_v28 = vadd.f32 %v2467_v15, %v995_v18  ;;  %v2383_v29 = vpop.f32.mrb[1].mxu1  ;;  %v2469_v30 = vpop.f32.mrb[13].mxu0  ;;  %v7532_v23 = vld [vmem:[%s10696_s7 + $0x4d4] ss:$28 sps:$4 sm:$0xff]   ;;  %v7535_v15 = vld [vmem:[%s10696_s7 + $0x4dc] ss:$28 sps:$4 sm:$0xff]  }
 0x2f5   :  { %v7197_v32 = vadd.f32 %v2383_v29, %v991_v48  ;;  %v7201_v33 = vadd.f32 %v2469_v30, %v999_v22  ;;  %v2385_v53 = vpop.f32.mrb[2].mxu1  ;;  %v2471_v34 = vpop.f32.mrb[14].mxu0  ;;  %v7538_v29 = vld [vmem:[%s10696_s7 + $0x50c] ss:$28 sps:$4 sm:$0xff]   ;;  %v7541_v30 = vld [vmem:[%s10696_s7 + $0x514] ss:$28 sps:$4 sm:$0xff]  }
 0x2f6   :  { %vm2648_vm12 = vcmp.gt.f32.partialorder %v7196_v25, 0.0  ;;  %v2664_v35 = vmul.f32 0.2, %v7196_v25  ;;  %vm2650_vm13 = vcmp.gt.f32.partialorder %v7200_v28, 0.0  ;;  %v2666_v37 = vmul.f32 0.2, %v7200_v28 }
 0x2f7   :  { %vm2649_vm14 = vcmp.gt.f32.partialorder %v7197_v32, 0.0  ;;  %v2665_v19 = vmul.f32 0.2, %v7197_v32  ;;  %vm2651_vm15 = vcmp.gt.f32.partialorder %v7201_v33, 0.0  ;;  %v2667_v20 = vmul.f32 0.2, %v7201_v33 }
 0x2f8   :  { %v7198_v21 = vadd.f32 %v2385_v53, %v987_v16  ;;  %v7202_v24 = vadd.f32 %v2471_v34, %v995_v18  ;;  %v2387_v26 = vpop.f32.mrb[3].mxu1  ;;  %v2473_v27 = vpop.f32.mrb[15].mxu0  ;;  %v2680_v38 = vsel %vm2648_vm12, %v7196_v25, %v2664_v35  ;;  %v2682_v39 = vsel %vm2650_vm13, %v7200_v28, %v2666_v37  ;;  %v7526_v16 = vld [vmem:[%s10696_s7 + $0x49c] ss:$28 sps:$4 sm:$0xff]   ;;  %v7529_v18 = vld [vmem:[%s10696_s7 + $0x4a4] ss:$28 sps:$4 sm:$0xff]  }
 0x2f9   :  { %v7199_v40 = vadd.f32 %v2387_v26, %v991_v48  ;;  %v7203_v42 = vadd.f32 %v2473_v27, %v999_v22  ;;  %v2681_v50 = vsel %vm2649_vm14, %v7197_v32, %v2665_v19  ;;  %v2683_v51 = vsel %vm2651_vm15, %v7201_v33, %v2667_v20  ;;  %v7524_v48 = vld [vmem:[%s10696_s7 + $0x498] ss:$28 sps:$4 sm:$0xff]   ;;  %v7527_v22 = vld [vmem:[%s10696_s7 + $0x4a0] ss:$28 sps:$4 sm:$0xff]   ;;  %v7530_v25 = vld [vmem:[%s10696_s7 + $0x4d0] ss:$28 sps:$4 sm:$0xff]  }
 0x2fa   :  { %vm2656_vm0 = vcmp.gt.f32.partialorder %v7198_v21, 0.0  ;;  %v2672_v43 = vmul.f32 0.2, %v7198_v21  ;;  %vm2658_vm1 = vcmp.gt.f32.partialorder %v7202_v24, 0.0  ;;  %v2674_v44 = vmul.f32 0.2, %v7202_v24 }
 0x2fb   :  { %vm2657_vm2 = vcmp.gt.f32.partialorder %v7199_v40, 0.0  ;;  %v2673_v47 = vmul.f32 0.2, %v7199_v40  ;;  %vm2659_vm3 = vcmp.gt.f32.partialorder %v7203_v42, 0.0  ;;  %v2675_v49 = vmul.f32 0.2, %v7203_v42 }
 0x2fc   :  { %v2688_v52 = vsel %vm2656_vm0, %v7198_v21, %v2672_v43  ;;  %v2690_v54 = vsel %vm2658_vm1, %v7202_v24, %v2674_v44  ;;  %v7533_v28 = vld [vmem:[%s10696_s7 + $0x4d8] ss:$28 sps:$4 sm:$0xff]   ;;  %v7536_v32 = vld [vmem:[%s10696_s7 + $0x508] ss:$28 sps:$4 sm:$0xff]   ;;  %v7539_v33 = vld [vmem:[%s10696_s7 + $0x510] ss:$28 sps:$4 sm:$0xff]  }
 0x2fd   :  { %v9432_v55 = vpack.c.bf16 %v2688_v52, %v2680_v38  ;;  %v9434_v56 = vpack.c.bf16 %v2690_v54, %v2682_v39  ;;  %v2689_v57 = vsel %vm2657_vm2, %v7199_v40, %v2673_v47  ;;  %v2691_v58 = vsel %vm2659_vm3, %v7203_v42, %v2675_v49  ;;  %v7544_v53 = vld [vmem:[%s10696_s7 + $0x544] ss:$28 sps:$4 sm:$0xff]   ;;  %v7547_v34 = vld [vmem:[%s10696_s7 + $0x54c] ss:$28 sps:$4 sm:$0xff]   ;;  %v7550_v19 = vld [vmem:[%s10696_s7 + $0x57c] ss:$28 sps:$4 sm:$0xff]  }
 0x2fe   :  { %v9442_v63 = vpack.c.bf16 %v2689_v57, %v2681_v50  ;;  %v9444_v0 = vpack.c.bf16 %v2691_v58, %v2683_v51  ;;  %v7542_v35 = vld [vmem:[%s10696_s7 + $0x540] ss:$28 sps:$4 sm:$0xff]   ;;  %v7545_v37 = vld [vmem:[%s10696_s7 + $0x548] ss:$28 sps:$4 sm:$0xff]   ;;  %v7548_v21 = vld [vmem:[%s10696_s7 + $0x578] ss:$28 sps:$4 sm:$0xff]  }
 0x2ff   :  { %v7553_v20 = vld [vmem:[%s10696_s7 + $0x584] ss:$28 sps:$4 sm:$0xff]   ;;  %v7556_v26 = vld [vmem:[%s10696_s7 + $0x5b4] ss:$28 sps:$4 sm:$0xff]   ;;  %v7559_v27 = vld [vmem:[%s10696_s7 + $0x5bc] ss:$28 sps:$4 sm:$0xff]  }
 0x300   :  { %5589 = vmatprep.mubr.bf16.mxu1 %v9442_v63  ;;  %5761 = vmatprep.mubr.bf16.mxu0 %v9442_v63  ;;  %v7551_v24 = vld [vmem:[%s10696_s7 + $0x580] ss:$28 sps:$4 sm:$0xff]   ;;  %v7554_v38 = vld [vmem:[%s10696_s7 + $0x5b0] ss:$28 sps:$4 sm:$0xff]   ;;  %v7557_v39 = vld [vmem:[%s10696_s7 + $0x5b8] ss:$28 sps:$4 sm:$0xff]  }
 0x301   :  { %5590 = vmatmul.mubr.bf16.vlgmr.msra.gmra.mrb[8].mxu1 %v9432_v55  ;;  %5762 = vmatmul.mubr.bf16.vlgmr.msra.gmra.mrb[20].mxu0 %v9432_v55  ;;  %v7562_v40 = vld [vmem:[%s10696_s7 + $0x5ec] ss:$28 sps:$4 sm:$0xff]   ;;  %v7565_v42 = vld [vmem:[%s10696_s7 + $0x5f4] ss:$28 sps:$4 sm:$0xff]   ;;  %v7568_v47 = vld [vmem:[%s10696_s7 + $0x624] ss:$28 sps:$4 sm:$0xff]  }
 0x302   :  { %5601 = vmatpush1.bf16.msra.mxu1 %v7494_v60  ;;  %5773 = vmatpush1.bf16.msra.mxu0 %v7497_v61  ;;  %v7560_v43 = vld [vmem:[%s10696_s7 + $0x5e8] ss:$28 sps:$4 sm:$0xff]   ;;  %v7563_v44 = vld [vmem:[%s10696_s7 + $0x5f0] ss:$28 sps:$4 sm:$0xff]   ;;  %v7566_v50 = vld [vmem:[%s10696_s7 + $0x620] ss:$28 sps:$4 sm:$0xff]  }
 0x303   :  { %5632 = vmatprep.mubr.bf16.mxu1 %v9444_v0  ;;  %5804 = vmatprep.mubr.bf16.mxu0 %v9444_v0  ;;  %v7571_v49 = vld [vmem:[%s10696_s7 + $0x62c] ss:$28 sps:$4 sm:$0xff]   ;;  %v7574_v52 = vld [vmem:[%s10696_s7 + $0x65c] ss:$28 sps:$4 sm:$0xff]   ;;  %v7577_v54 = vld [vmem:[%s10696_s7 + $0x664] ss:$28 sps:$4 sm:$0xff]  }
 0x304   :  { %5602 = vmatprep.subr.bf16.mxu1 %v7502_v2  ;;  %5774 = vmatprep.subr.bf16.mxu0 %v7505_v5  ;;  %v7569_v51 = vld [vmem:[%s10696_s7 + $0x628] ss:$28 sps:$4 sm:$0xff]   ;;  %v7572_v57 = vld [vmem:[%s10696_s7 + $0x658] ss:$28 sps:$4 sm:$0xff]   ;;  %v7575_v58 = vld [vmem:[%s10696_s7 + $0x660] ss:$28 sps:$4 sm:$0xff]  }
 0x305   :  { %v7580_v60 = vld [vmem:[%s10696_s7 + $0x694] ss:$28 sps:$4 sm:$0xff]   ;;  %v7583_v61 = vld [vmem:[%s10696_s7 + $0x69c] ss:$28 sps:$4 sm:$0xff]  }
 0x306   :  { %5603 = vmatpush1.bf16.msra.mxu1 %v7500_v3  ;;  %5775 = vmatpush1.bf16.msra.mxu0 %v7503_v4  ;;  %v7578_v2 = vld [vmem:[%s10696_s7 + $0x690] ss:$28 sps:$4 sm:$0xff]   ;;  %v7581_v3 = vld [vmem:[%s10696_s7 + $0x698] ss:$28 sps:$4 sm:$0xff]  }
 0x307   :  { %5604 = vmatprep.subr.bf16.mxu1 %v7508_v6  ;;  %5776 = vmatprep.subr.bf16.mxu0 %v7511_v7  ;;  %v7586_v4 = vld [vmem:[%s10696_s7 + $0x6cc] ss:$28 sps:$4 sm:$0xff]   ;;  %v7589_v5 = vld [vmem:[%s10696_s7 + $0x6d4] ss:$28 sps:$4 sm:$0xff]  }
 0x308   :  { %v7584_v6 = vld [vmem:[%s10696_s7 + $0x6c8] ss:$28 sps:$4 sm:$0xff]   ;;  %v7587_v7 = vld [vmem:[%s10696_s7 + $0x6d0] ss:$28 sps:$4 sm:$0xff]  }
 0x30a   :  { %5605 = vmatpush1.bf16.msra.mxu1 %v7506_v17  ;;  %5777 = vmatpush1.bf16.msra.mxu0 %v7509_v45  ;;  %v7592_v17 = vld [vmem:[%s10696_s7 + $0x704] ss:$28 sps:$4 sm:$0xff]   ;;  %v7595_v45 = vld [vmem:[%s10696_s7 + $0x70c] ss:$28 sps:$4 sm:$0xff]  }
 0x30b   :  { %5606 = vmatprep.subr.bf16.mxu1 %v7514_v46  ;;  %5778 = vmatprep.subr.bf16.mxu0 %v7517_v8  ;;  %v7590_v46 = vld [vmem:[%s10696_s7 + $0x700] ss:$28 sps:$4 sm:$0xff]   ;;  %v7593_v8 = vld [vmem:[%s10696_s7 + $0x708] ss:$28 sps:$4 sm:$0xff]  }
 0x30e   :  { %5607 = vmatpush1.bf16.msra.mxu1 %v7512_v9  ;;  %5779 = vmatpush1.bf16.msra.mxu0 %v7515_v10  ;;  %v7598_v9 = vld [vmem:[%s10696_s7 + $0x73c] ss:$28 sps:$4 sm:$0xff]   ;;  %v7601_v10 = vld [vmem:[%s10696_s7 + $0x744] ss:$28 sps:$4 sm:$0xff]  }
 0x30f   :  { %5608 = vmatprep.subr.bf16.mxu1 %v7520_v11  ;;  %5780 = vmatprep.subr.bf16.mxu0 %v7523_v12  ;;  %v7596_v11 = vld [vmem:[%s10696_s7 + $0x738] ss:$28 sps:$4 sm:$0xff]   ;;  %v7599_v12 = vld [vmem:[%s10696_s7 + $0x740] ss:$28 sps:$4 sm:$0xff]  }
 0x312   :  { %5609 = vmatpush1.bf16.msra.mxu1 %v7518_v13  ;;  %5781 = vmatpush1.bf16.msra.mxu0 %v7521_v14  ;;  %v7604_v13 = vld [vmem:[%s10696_s7 + $0x774] ss:$28 sps:$4 sm:$0xff]   ;;  %v7607_v14 = vld [vmem:[%s10696_s7 + $0x77c] ss:$28 sps:$4 sm:$0xff]  }
 0x313   :  { %5610 = vmatprep.subr.bf16.mxu1 %v7526_v16  ;;  %5782 = vmatprep.subr.bf16.mxu0 %v7529_v18  ;;  %v7602_v16 = vld [vmem:[%s10696_s7 + $0x770] ss:$28 sps:$4 sm:$0xff]   ;;  %v7605_v18 = vld [vmem:[%s10696_s7 + $0x778] ss:$28 sps:$4 sm:$0xff]  }
 0x316   :  { %5611 = vmatpush1.bf16.msra.mxu1 %v7524_v48  ;;  %5783 = vmatpush1.bf16.msra.mxu0 %v7527_v22  ;;  %v7610_v48 = vld [vmem:[%s10696_s7 + $0x7ac] ss:$28 sps:$4 sm:$0xff]   ;;  %v7613_v22 = vld [vmem:[%s10696_s7 + $0x7b4] ss:$28 sps:$4 sm:$0xff]  }
 0x317   :  { %5612 = vmatprep.subr.bf16.mxu1 %v7532_v23  ;;  %5784 = vmatprep.subr.bf16.mxu0 %v7535_v15  ;;  %v7608_v23 = vld [vmem:[%s10696_s7 + $0x7a8] ss:$28 sps:$4 sm:$0xff]   ;;  %v7611_v15 = vld [vmem:[%s10696_s7 + $0x7b0] ss:$28 sps:$4 sm:$0xff]  }
 0x31a   :  { %5613 = vmatpush1.bf16.msra.mxu1 %v7530_v25  ;;  %5785 = vmatpush1.bf16.msra.mxu0 %v7533_v28  ;;  %v7616_v25 = vld [vmem:[%s10696_s7 + $0x7e4] ss:$28 sps:$4 sm:$0xff]   ;;  %v7619_v28 = vld [vmem:[%s10696_s7 + $0x7ec] ss:$28 sps:$4 sm:$0xff]  }
 0x31b   :  { %5614 = vmatprep.subr.bf16.mxu1 %v7538_v29  ;;  %5786 = vmatprep.subr.bf16.mxu0 %v7541_v30  ;;  %v7614_v29 = vld [vmem:[%s10696_s7 + $0x7e0] ss:$28 sps:$4 sm:$0xff]   ;;  %v7617_v30 = vld [vmem:[%s10696_s7 + $0x7e8] ss:$28 sps:$4 sm:$0xff]  }
 0x31e   :  { %5615 = vmatpush1.bf16.msra.mxu1 %v7536_v32  ;;  %5787 = vmatpush1.bf16.msra.mxu0 %v7539_v33  ;;  %v7622_v32 = vld [vmem:[%s10696_s7 + $0x81c] ss:$28 sps:$4 sm:$0xff]   ;;  %v7625_v33 = vld [vmem:[%s10696_s7 + $0x824] ss:$28 sps:$4 sm:$0xff]  }
 0x31f   :  { %5616 = vmatprep.subr.bf16.mxu1 %v7544_v53  ;;  %5788 = vmatprep.subr.bf16.mxu0 %v7547_v34  ;;  %v7620_v53 = vld [vmem:[%s10696_s7 + $0x818] ss:$28 sps:$4 sm:$0xff]   ;;  %v7623_v34 = vld [vmem:[%s10696_s7 + $0x820] ss:$28 sps:$4 sm:$0xff]  }
 0x322   :  { %5617 = vmatpush1.bf16.msra.mxu1 %v7542_v35  ;;  %5789 = vmatpush1.bf16.msra.mxu0 %v7545_v37  ;;  %v7628_v35 = vld [vmem:[%s10696_s7 + $0x854] ss:$28 sps:$4 sm:$0xff]   ;;  %v7631_v37 = vld [vmem:[%s10696_s7 + $0x85c] ss:$28 sps:$4 sm:$0xff]  }
 0x323   :  { %5618 = vmatprep.subr.bf16.mxu1 %v7550_v19  ;;  %5790 = vmatprep.subr.bf16.mxu0 %v7553_v20  ;;  %v7626_v19 = vld [vmem:[%s10696_s7 + $0x850] ss:$28 sps:$4 sm:$0xff]   ;;  %v7629_v20 = vld [vmem:[%s10696_s7 + $0x858] ss:$28 sps:$4 sm:$0xff]  }
 0x326   :  { %5619 = vmatpush1.bf16.msra.mxu1 %v7548_v21  ;;  %5791 = vmatpush1.bf16.msra.mxu0 %v7551_v24  ;;  %v7634_v21 = vld [vmem:[%s10696_s7 + $0x88c] ss:$28 sps:$4 sm:$0xff]   ;;  %v7637_v24 = vld [vmem:[%s10696_s7 + $0x894] ss:$28 sps:$4 sm:$0xff]  }
 0x327   :  { %5620 = vmatprep.subr.bf16.mxu1 %v7556_v26  ;;  %5792 = vmatprep.subr.bf16.mxu0 %v7559_v27  ;;  %v7632_v26 = vld [vmem:[%s10696_s7 + $0x888] ss:$28 sps:$4 sm:$0xff]   ;;  %v7635_v27 = vld [vmem:[%s10696_s7 + $0x890] ss:$28 sps:$4 sm:$0xff]  }
 0x32a   :  { %5621 = vmatpush1.bf16.msra.mxu1 %v7554_v38  ;;  %5793 = vmatpush1.bf16.msra.mxu0 %v7557_v39  ;;  %v7640_v38 = vld [vmem:[%s10696_s7 + $0x8c4] ss:$28 sps:$4 sm:$0xff]   ;;  %v7643_v39 = vld [vmem:[%s10696_s7 + $0x8cc] ss:$28 sps:$4 sm:$0xff]  }
 0x32b   :  { %5622 = vmatprep.subr.bf16.mxu1 %v7562_v40  ;;  %5794 = vmatprep.subr.bf16.mxu0 %v7565_v42  ;;  %v7638_v40 = vld [vmem:[%s10696_s7 + $0x8c0] ss:$28 sps:$4 sm:$0xff]   ;;  %v7641_v42 = vld [vmem:[%s10696_s7 + $0x8c8] ss:$28 sps:$4 sm:$0xff]  }
 0x32e   :  { %5623 = vmatpush1.bf16.msra.mxu1 %v7560_v43  ;;  %5795 = vmatpush1.bf16.msra.mxu0 %v7563_v44  ;;  %v7646_v43 = vld [vmem:[%s10696_s7 + $0x8fc] ss:$28 sps:$4 sm:$0xff]   ;;  %v7649_v44 = vld [vmem:[%s10696_s7 + $0x904] ss:$28 sps:$4 sm:$0xff]  }
 0x32f   :  { %5624 = vmatprep.subr.bf16.mxu1 %v7568_v47  ;;  %5796 = vmatprep.subr.bf16.mxu0 %v7571_v49  ;;  %v7644_v47 = vld [vmem:[%s10696_s7 + $0x8f8] ss:$28 sps:$4 sm:$0xff]   ;;  %v7647_v49 = vld [vmem:[%s10696_s7 + $0x900] ss:$28 sps:$4 sm:$0xff]  }
 0x332   :  { %5625 = vmatpush1.bf16.msra.mxu1 %v7566_v50  ;;  %5797 = vmatpush1.bf16.msra.mxu0 %v7569_v51  ;;  %v7652_v50 = vld [vmem:[%s10696_s7 + $0x934] ss:$28 sps:$4 sm:$0xff]   ;;  %v7655_v51 = vld [vmem:[%s10696_s7 + $0x93c] ss:$28 sps:$4 sm:$0xff]  }
 0x333   :  { %5626 = vmatprep.subr.bf16.mxu1 %v7574_v52  ;;  %5798 = vmatprep.subr.bf16.mxu0 %v7577_v54  ;;  %v7650_v52 = vld [vmem:[%s10696_s7 + $0x930] ss:$28 sps:$4 sm:$0xff]   ;;  %v7653_v54 = vld [vmem:[%s10696_s7 + $0x938] ss:$28 sps:$4 sm:$0xff]  }
 0x336   :  { %5627 = vmatpush1.bf16.msra.mxu1 %v7572_v57  ;;  %5799 = vmatpush1.bf16.msra.mxu0 %v7575_v58  ;;  %v7658_v57 = vld [vmem:[%s10696_s7 + $0x96c] ss:$28 sps:$4 sm:$0xff]   ;;  %v7661_v58 = vld [vmem:[%s10696_s7 + $0x974] ss:$28 sps:$4 sm:$0xff]  }
 0x337   :  { %5628 = vmatprep.subr.bf16.mxu1 %v7580_v60  ;;  %5800 = vmatprep.subr.bf16.mxu0 %v7583_v61  ;;  %v7656_v60 = vld [vmem:[%s10696_s7 + $0x968] ss:$28 sps:$4 sm:$0xff]   ;;  %v7659_v61 = vld [vmem:[%s10696_s7 + $0x970] ss:$28 sps:$4 sm:$0xff]  }
 0x33a   :  { %5629 = vmatpush1.bf16.msra.mxu1 %v7578_v2  ;;  %5801 = vmatpush1.bf16.msra.mxu0 %v7581_v3  ;;  %v7664_v2 = vld [vmem:[%s10696_s7 + $0x9a4] ss:$28 sps:$4 sm:$0xff]   ;;  %v7667_v3 = vld [vmem:[%s10696_s7 + $0x9ac] ss:$28 sps:$4 sm:$0xff]  }
 0x33b   :  { %5630 = vmatprep.subr.bf16.mxu1 %v7586_v4  ;;  %5802 = vmatprep.subr.bf16.mxu0 %v7589_v5  ;;  %v1002_v4 = vsub.s32 4, %v8333_v31  ;;  %v1010_v5 = vsub.s32 6, %v8333_v31 }
 0x33e   :  { %5631 = vmatpush1.bf16.msra.mxu1 %v7584_v6  ;;  %5803 = vmatpush1.bf16.msra.mxu0 %v7587_v7  ;;  %v1006_v6 = vsub.s32 5, %v8333_v31  ;;  %v7662_v7 = vld [vmem:[%s10696_s7 + $0x9a0] ss:$28 sps:$4 sm:$0xff]  }
 0x33f   :  { %5643 = vmatprep.subr.bf16.mxu1 %v7592_v17  ;;  %5815 = vmatprep.subr.bf16.mxu0 %v7595_v45  ;;  %v7665_v17 = vld [vmem:[%s10696_s7 + $0x9a8] ss:$28 sps:$4 sm:$0xff]   ;;  %v1014_v45 = vsub.s32 7, %v8333_v31 }
 0x341   :  { %5633 = vmatmul.mubr.bf16.vlgmr.msra.gmra.mrb[8].mxu1 %v9434_v56  ;;  %5805 = vmatmul.mubr.bf16.vlgmr.msra.gmra.mrb[20].mxu0 %v9434_v56 }
 0x342   :  { %5644 = vmatpush1.bf16.msra.mxu1 %v7590_v46  ;;  %5816 = vmatpush1.bf16.msra.mxu0 %v7593_v8  ;;  %v7670_v46 = vld [vmem:[%s10696_s7 + $0x9dc] ss:$28 sps:$4 sm:$0xff]   ;;  %v7673_v8 = vld [vmem:[%s10696_s7 + $0x9e4] ss:$28 sps:$4 sm:$0xff]  }
 0x343   :  { %5645 = vmatprep.subr.bf16.mxu1 %v7598_v9  ;;  %5817 = vmatprep.subr.bf16.mxu0 %v7601_v10  ;;  %v1003_v9 = vrot.slane %v9420_v59, %v1002_v4  ;;  %v1011_v10 = vrot.slane %v9420_v59, %v1010_v5 }
 0x346   :  { %5646 = vmatpush1.bf16.msra.mxu1 %v7596_v11  ;;  %5818 = vmatpush1.bf16.msra.mxu0 %v7599_v12  ;;  %v1007_v11 = vrot.slane %v9420_v59, %v1006_v6  ;;  %v7668_v12 = vld [vmem:[%s10696_s7 + $0x9d8] ss:$28 sps:$4 sm:$0xff]  }
 0x347   :  { %5647 = vmatprep.subr.bf16.mxu1 %v7604_v13  ;;  %5819 = vmatprep.subr.bf16.mxu0 %v7607_v14  ;;  %v7671_v13 = vld [vmem:[%s10696_s7 + $0x9e0] ss:$28 sps:$4 sm:$0xff]   ;;  %v1015_v14 = vrot.slane %v9420_v59, %v1014_v45  ;;  %v7674_v59 = vld [vmem:[%s10696_s7 + $0xa10] ss:$28 sps:$4 sm:$0xff]  }
 0x34a   :  { %5648 = vmatpush1.bf16.msra.mxu1 %v7602_v16  ;;  %5820 = vmatpush1.bf16.msra.mxu0 %v7605_v18  ;;  %v7676_v18 = vld [vmem:[%s10696_s7 + $0xa14] ss:$28 sps:$4 sm:$0xff]  }
 0x34b   :  { %5649 = vmatprep.subr.bf16.mxu1 %v7610_v48  ;;  %5821 = vmatprep.subr.bf16.mxu0 %v7613_v22  ;;  %v7679_v48 = vld [vmem:[%s10696_s7 + $0xa1c] ss:$28 sps:$4 sm:$0xff]  }
 0x34e   :  { %5650 = vmatpush1.bf16.msra.mxu1 %v7608_v23  ;;  %5822 = vmatpush1.bf16.msra.mxu0 %v7611_v15 }
 0x34f   :  { %5651 = vmatprep.subr.bf16.mxu1 %v7616_v25  ;;  %5823 = vmatprep.subr.bf16.mxu0 %v7619_v28 }
 0x352   :  { %5652 = vmatpush1.bf16.msra.mxu1 %v7614_v29  ;;  %5824 = vmatpush1.bf16.msra.mxu0 %v7617_v30 }
 0x353   :  { %5653 = vmatprep.subr.bf16.mxu1 %v7622_v32  ;;  %5825 = vmatprep.subr.bf16.mxu0 %v7625_v33 }
 0x356   :  { %5654 = vmatpush1.bf16.msra.mxu1 %v7620_v53  ;;  %5826 = vmatpush1.bf16.msra.mxu0 %v7623_v34 }
 0x357   :  { %5655 = vmatprep.subr.bf16.mxu1 %v7628_v35  ;;  %5827 = vmatprep.subr.bf16.mxu0 %v7631_v37  ;;  %v7677_v37 = vld [vmem:[%s10696_s7 + $0xa18] ss:$28 sps:$4 sm:$0xff]  }
 0x35a   :  { %5656 = vmatpush1.bf16.msra.mxu1 %v7626_v19  ;;  %5828 = vmatpush1.bf16.msra.mxu0 %v7629_v20  ;;  %v7682_v19 = vld [vmem:[%s10696_s7 + $0xa4c] ss:$28 sps:$4 sm:$0xff]   ;;  %v7685_v20 = vld [vmem:[%s10696_s7 + $0xa54] ss:$28 sps:$4 sm:$0xff]  }
 0x35b   :  { %5657 = vmatprep.subr.bf16.mxu1 %v7634_v21  ;;  %5829 = vmatprep.subr.bf16.mxu0 %v7637_v24 }
 0x35e   :  { %5658 = vmatpush1.bf16.msra.mxu1 %v7632_v26  ;;  %5830 = vmatpush1.bf16.msra.mxu0 %v7635_v27  ;;  %v7680_v26 = vld [vmem:[%s10696_s7 + $0xa48] ss:$28 sps:$4 sm:$0xff]   ;;  %v7683_v27 = vld [vmem:[%s10696_s7 + $0xa50] ss:$28 sps:$4 sm:$0xff]  }
 0x35f   :  { %5659 = vmatprep.subr.bf16.mxu1 %v7640_v38  ;;  %5831 = vmatprep.subr.bf16.mxu0 %v7643_v39 }
 0x362   :  { %5660 = vmatpush1.bf16.msra.mxu1 %v7638_v40  ;;  %5832 = vmatpush1.bf16.msra.mxu0 %v7641_v42 }
 0x363   :  { %5661 = vmatprep.subr.bf16.mxu1 %v7646_v43  ;;  %5833 = vmatprep.subr.bf16.mxu0 %v7649_v44 }
 0x366   :  { %5662 = vmatpush1.bf16.msra.mxu1 %v7644_v47  ;;  %5834 = vmatpush1.bf16.msra.mxu0 %v7647_v49  ;;  %v7688_v47 = vld [vmem:[%s10696_s7 + $0xa84] ss:$28 sps:$4 sm:$0xff]   ;;  %v7691_v49 = vld [vmem:[%s10696_s7 + $0xa8c] ss:$28 sps:$4 sm:$0xff]  }
 0x367   :  { %5663 = vmatprep.subr.bf16.mxu1 %v7652_v50  ;;  %5835 = vmatprep.subr.bf16.mxu0 %v7655_v51 }
 0x36a   :  { %5664 = vmatpush1.bf16.msra.mxu1 %v7650_v52  ;;  %5836 = vmatpush1.bf16.msra.mxu0 %v7653_v54 }
 0x36b   :  { %5665 = vmatprep.subr.bf16.mxu1 %v7658_v57  ;;  %5837 = vmatprep.subr.bf16.mxu0 %v7661_v58 }
 0x36e   :  { %5666 = vmatpush1.bf16.msra.mxu1 %v7656_v60  ;;  %5838 = vmatpush1.bf16.msra.mxu0 %v7659_v61 }
 0x36f   :  { %5667 = vmatprep.subr.bf16.mxu1 %v7664_v2  ;;  %5839 = vmatprep.subr.bf16.mxu0 %v7667_v3 }
 0x372   :  { %5668 = vmatpush1.bf16.msra.mxu1 %v7662_v7  ;;  %5840 = vmatpush1.bf16.msra.mxu0 %v7665_v17 }
 0x373   :  { %5669 = vmatprep.subr.bf16.mxu1 %v7670_v46  ;;  %5841 = vmatprep.subr.bf16.mxu0 %v7673_v8  ;;  %v2553_v16 = vpop.f32.mrb[4].mxu1  ;;  %v7686_v8 = vld [vmem:[%s10696_s7 + $0xa80] ss:$28 sps:$4 sm:$0xff]  }
 0x374   :  { %v7204_v22 = vadd.f32 %v2553_v16, %v1003_v9  ;;  %v2639_v23 = vpop.f32.mrb[16].mxu0  ;;  %v2555_v15 = vpop.f32.mrb[5].mxu1  ;;  %v7700_v16 = vld [vmem:[%s10696_s7 + $0xaf4] ss:$28 sps:$4 sm:$0xff]  }
 0x375   :  { %v7208_v25 = vadd.f32 %v2639_v23, %v1011_v10  ;;  %v7205_v28 = vadd.f32 %v2555_v15, %v1007_v11  ;;  %v2641_v29 = vpop.f32.mrb[17].mxu0  ;;  %v2557_v30 = vpop.f32.mrb[6].mxu1  ;;  %v7706_v23 = vld [vmem:[%s10696_s7 + $0xb2c] ss:$28 sps:$4 sm:$0xff]   ;;  %v7709_v15 = vld [vmem:[%s10696_s7 + $0xb34] ss:$28 sps:$4 sm:$0xff]  }
 0x376   :  { %v2668_v32 = vmul.f32 0.2, %v7204_v22  ;;  %5670 = vmatpush1.bf16.msra.mxu1 %v7668_v12  ;;  %5842 = vmatpush1.bf16.msra.mxu0 %v7671_v13  ;;  %v7209_v33 = vadd.f32 %v2641_v29, %v1015_v14  ;;  %v7206_v53 = vadd.f32 %v2557_v30, %v1003_v9  ;;  %v2643_v34 = vpop.f32.mrb[18].mxu0  ;;  %v2559_v35 = vpop.f32.mrb[7].mxu1  ;;  %vm2652_vm4 = vcmp.gt.f32.partialorder %v7204_v22, 0.0 }
 0x377   :  { %5671 = vmatprep.subr.bf16.mxu1 %v7676_v18  ;;  %5843 = vmatprep.subr.bf16.mxu0 %v7679_v48  ;;  %vm2654_vm5 = vcmp.gt.f32.partialorder %v7208_v25, 0.0  ;;  %v2670_v21 = vmul.f32 0.2, %v7208_v25  ;;  %v2645_v24 = vpop.f32.mrb[19].mxu0  ;;  %vm2653_vm7 = vcmp.gt.f32.partialorder %v7205_v28, 0.0  ;;  %v7210_v40 = vadd.f32 %v2643_v34, %v1011_v10 }
 0x378   :  { %vm2660_vm6 = vcmp.gt.f32.partialorder %v7206_v53, 0.0  ;;  %v2669_v38 = vmul.f32 0.2, %v7205_v28  ;;  %v2676_v39 = vmul.f32 0.2, %v7206_v53  ;;  %v2684_v42 = vsel %vm2652_vm4, %v7204_v22, %v2668_v32 }
 0x379   :  { %vm2655_vm8 = vcmp.gt.f32.partialorder %v7209_v33, 0.0  ;;  %v7207_v43 = vadd.f32 %v2559_v35, %v1007_v11  ;;  %v7211_v44 = vadd.f32 %v2645_v24, %v1015_v14  ;;  %v2671_v50 = vmul.f32 0.2, %v7209_v33  ;;  %v7689_v9 = vld [vmem:[%s10696_s7 + $0xa88] ss:$28 sps:$4 sm:$0xff]  }
 0x37a   :  { %5672 = vmatpush1.bf16.msra.mxu1 %v7674_v59  ;;  %5844 = vmatpush1.bf16.msra.mxu0 %v7677_v37  ;;  %v2692_v51 = vsel %vm2660_vm6, %v7206_v53, %v2676_v39  ;;  %vm2662_vm9 = vcmp.gt.f32.partialorder %v7210_v40, 0.0  ;;  %v2678_v52 = vmul.f32 0.2, %v7210_v40  ;;  %v2686_v58 = vsel %vm2654_vm5, %v7208_v25, %v2670_v21  ;;  %v7694_v11 = vld [vmem:[%s10696_s7 + $0xabc] ss:$28 sps:$4 sm:$0xff]  }
 0x37b   :  { %5673 = vmatprep.subr.bf16.mxu1 %v7682_v19  ;;  %5845 = vmatprep.subr.bf16.mxu0 %v7685_v20  ;;  %v9847_v54 = vpack.c.bf16 %v2692_v51, %v2684_v42  ;;  %vm2661_vm10 = vcmp.gt.f32.partialorder %v7207_v43, 0.0  ;;  %v2677_v57 = vmul.f32 0.2, %v7207_v43  ;;  %vm2663_vm11 = vcmp.gt.f32.partialorder %v7211_v44, 0.0  ;;  %v7697_v12 = vld [vmem:[%s10696_s7 + $0xac4] ss:$28 sps:$4 sm:$0xff]  }
 0x37c   :  { %v2694_v60 = vsel %vm2662_vm9, %v7210_v40, %v2678_v52  ;;  %v2679_v61 = vmul.f32 0.2, %v7211_v44  ;;  %v2685_v2 = vsel %vm2653_vm7, %v7205_v28, %v2669_v38  ;;  %v2687_v17 = vsel %vm2655_vm8, %v7209_v33, %v2671_v50  ;;  %v7692_v13 = vld [vmem:[%s10696_s7 + $0xab8] ss:$28 sps:$4 sm:$0xff]   ;;  %v7695_v14 = vld [vmem:[%s10696_s7 + $0xac0] ss:$28 sps:$4 sm:$0xff]  }
 0x37d   :  { %v9851_v3 = vpack.c.bf16 %v2694_v60, %v2686_v58  ;;  %v2693_v7 = vsel %vm2661_vm10, %v7207_v43, %v2677_v57  ;;  %v7703_v18 = vld [vmem:[%s10696_s7 + $0xafc] ss:$28 sps:$4 sm:$0xff]   ;;  %v7698_v48 = vld [vmem:[%s10696_s7 + $0xaf0] ss:$28 sps:$4 sm:$0xff]   ;;  %v7704_v25 = vld [vmem:[%s10696_s7 + $0xb28] ss:$28 sps:$4 sm:$0xff]  }
 0x37e   :  { %5674 = vmatpush1.bf16.msra.mxu1 %v7680_v26  ;;  %5846 = vmatpush1.bf16.msra.mxu0 %v7683_v27  ;;  %v9854_v45 = vpack.c.bf16 %v2693_v7, %v2685_v2  ;;  %v2695_v46 = vsel %vm2663_vm11, %v7211_v44, %v2679_v61  ;;  %v7701_v22 = vld [vmem:[%s10696_s7 + $0xaf8] ss:$28 sps:$4 sm:$0xff]   ;;  %v7707_v28 = vld [vmem:[%s10696_s7 + $0xb30] ss:$28 sps:$4 sm:$0xff]   ;;  %v7712_v29 = vld [vmem:[%s10696_s7 + $0xb64] ss:$28 sps:$4 sm:$0xff]  }
 0x37f   :  { %5686 = vmatprep.subr.bf16.mxu1 %v7688_v47  ;;  %5858 = vmatprep.subr.bf16.mxu0 %v7691_v49  ;;  %v9862_v10 = vpack.c.bf16 %v2695_v46, %v2687_v17  ;;  %v7715_v30 = vld [vmem:[%s10696_s7 + $0xb6c] ss:$28 sps:$4 sm:$0xff]   ;;  %v7710_v59 = vld [vmem:[%s10696_s7 + $0xb60] ss:$28 sps:$4 sm:$0xff]   ;;  %v7716_v34 = vld [vmem:[%s10696_s7 + $0xb98] ss:$28 sps:$4 sm:$0xff]  }
 0x380   :  { %5675 = vmatprep.mubr.bf16.mxu1 %v9854_v45  ;;  %5847 = vmatprep.mubr.bf16.mxu0 %v9854_v45  ;;  %v7713_v32 = vld [vmem:[%s10696_s7 + $0xb68] ss:$28 sps:$4 sm:$0xff]   ;;  %v7718_v33 = vld [vmem:[%s10696_s7 + $0xb9c] ss:$28 sps:$4 sm:$0xff]   ;;  %v7724_v37 = vld [vmem:[%s10696_s7 + $0xbd4] ss:$28 sps:$4 sm:$0xff]  }
 0x381   :  { %5676 = vmatmul.mubr.bf16.vlgmr.msra.gmra.mrb[8].mxu1 %v9847_v54  ;;  %5848 = vmatmul.mubr.bf16.vlgmr.msra.gmra.mrb[20].mxu0 %v9847_v54  ;;  %v7721_v53 = vld [vmem:[%s10696_s7 + $0xba4] ss:$28 sps:$4 sm:$0xff]   ;;  %v7727_v19 = vld [vmem:[%s10696_s7 + $0xbdc] ss:$28 sps:$4 sm:$0xff]   ;;  %v7722_v20 = vld [vmem:[%s10696_s7 + $0xbd0] ss:$28 sps:$4 sm:$0xff]  }
 0x382   :  { %5687 = vmatpush1.bf16.msra.mxu1 %v7686_v8  ;;  %5859 = vmatpush1.bf16.msra.mxu0 %v7689_v9  ;;  %v7719_v35 = vld [vmem:[%s10696_s7 + $0xba0] ss:$28 sps:$4 sm:$0xff]   ;;  %v7725_v21 = vld [vmem:[%s10696_s7 + $0xbd8] ss:$28 sps:$4 sm:$0xff]   ;;  %v7730_v24 = vld [vmem:[%s10696_s7 + $0xc0c] ss:$28 sps:$4 sm:$0xff]  }
 0x383   :  { %5718 = vmatprep.mubr.bf16.mxu1 %v9862_v10  ;;  %5890 = vmatprep.mubr.bf16.mxu0 %v9862_v10  ;;  %v7733_v26 = vld [vmem:[%s10696_s7 + $0xc14] ss:$28 sps:$4 sm:$0xff]   ;;  %v7728_v27 = vld [vmem:[%s10696_s7 + $0xc08] ss:$28 sps:$4 sm:$0xff]   ;;  %v7734_v42 = vld [vmem:[%s10696_s7 + $0xc40] ss:$28 sps:$4 sm:$0xff]  }
 0x384   :  { %5688 = vmatprep.subr.bf16.mxu1 %v7694_v11  ;;  %5860 = vmatprep.subr.bf16.mxu0 %v7697_v12  ;;  %v7731_v38 = vld [vmem:[%s10696_s7 + $0xc10] ss:$28 sps:$4 sm:$0xff]   ;;  %v7736_v39 = vld [vmem:[%s10696_s7 + $0xc44] ss:$28 sps:$4 sm:$0xff]   ;;  %v7742_v44 = vld [vmem:[%s10696_s7 + $0xc7c] ss:$28 sps:$4 sm:$0xff]  }
 0x385   :  { %v7739_v40 = vld [vmem:[%s10696_s7 + $0xc4c] ss:$28 sps:$4 sm:$0xff]   ;;  %v7745_v47 = vld [vmem:[%s10696_s7 + $0xc84] ss:$28 sps:$4 sm:$0xff]   ;;  %v7740_v49 = vld [vmem:[%s10696_s7 + $0xc78] ss:$28 sps:$4 sm:$0xff]  }
 0x386   :  { %5689 = vmatpush1.bf16.msra.mxu1 %v7692_v13  ;;  %5861 = vmatpush1.bf16.msra.mxu0 %v7695_v14  ;;  %v7737_v43 = vld [vmem:[%s10696_s7 + $0xc48] ss:$28 sps:$4 sm:$0xff]   ;;  %v7743_v50 = vld [vmem:[%s10696_s7 + $0xc80] ss:$28 sps:$4 sm:$0xff]   ;;  %v7748_v51 = vld [vmem:[%s10696_s7 + $0xcb4] ss:$28 sps:$4 sm:$0xff]  }
 0x387   :  { %5690 = vmatprep.subr.bf16.mxu1 %v7700_v16  ;;  %5862 = vmatprep.subr.bf16.mxu0 %v7703_v18  ;;  %v7751_v52 = vld [vmem:[%s10696_s7 + $0xcbc] ss:$28 sps:$4 sm:$0xff]   ;;  %v7746_v57 = vld [vmem:[%s10696_s7 + $0xcb0] ss:$28 sps:$4 sm:$0xff]   ;;  %v7752_v2 = vld [vmem:[%s10696_s7 + $0xce8] ss:$28 sps:$4 sm:$0xff]  }
 0x388   :  { %v7749_v58 = vld [vmem:[%s10696_s7 + $0xcb8] ss:$28 sps:$4 sm:$0xff]   ;;  %v7754_v60 = vld [vmem:[%s10696_s7 + $0xcec] ss:$28 sps:$4 sm:$0xff]   ;;  %v7760_v17 = vld [vmem:[%s10696_s7 + $0xd24] ss:$28 sps:$4 sm:$0xff]  }
 0x389   :  { %v7757_v61 = vld [vmem:[%s10696_s7 + $0xcf4] ss:$28 sps:$4 sm:$0xff]   ;;  %v7763_v46 = vld [vmem:[%s10696_s7 + $0xd2c] ss:$28 sps:$4 sm:$0xff]   ;;  %v7758_v8 = vld [vmem:[%s10696_s7 + $0xd20] ss:$28 sps:$4 sm:$0xff]  }
 0x38a   :  { %5691 = vmatpush1.bf16.msra.mxu1 %v7698_v48  ;;  %5863 = vmatpush1.bf16.msra.mxu0 %v7701_v22  ;;  %v7755_v7 = vld [vmem:[%s10696_s7 + $0xcf0] ss:$28 sps:$4 sm:$0xff]   ;;  %v7761_v9 = vld [vmem:[%s10696_s7 + $0xd28] ss:$28 sps:$4 sm:$0xff]   ;;  %v7766_v11 = vld [vmem:[%s10696_s7 + $0xd5c] ss:$28 sps:$4 sm:$0xff]  }
 0x38b   :  { %5692 = vmatprep.subr.bf16.mxu1 %v7706_v23  ;;  %5864 = vmatprep.subr.bf16.mxu0 %v7709_v15  ;;  %v7769_v12 = vld [vmem:[%s10696_s7 + $0xd64] ss:$28 sps:$4 sm:$0xff]   ;;  %v7764_v13 = vld [vmem:[%s10696_s7 + $0xd58] ss:$28 sps:$4 sm:$0xff]   ;;  %v7770_v48 = vld [vmem:[%s10696_s7 + $0xd90] ss:$28 sps:$4 sm:$0xff]  }
 0x38c   :  { %v7767_v14 = vld [vmem:[%s10696_s7 + $0xd60] ss:$28 sps:$4 sm:$0xff]   ;;  %v7772_v16 = vld [vmem:[%s10696_s7 + $0xd94] ss:$28 sps:$4 sm:$0xff]   ;;  %v7778_v23 = vld [vmem:[%s10696_s7 + $0xdcc] ss:$28 sps:$4 sm:$0xff]  }
 0x38d   :  { %v7775_v18 = vld [vmem:[%s10696_s7 + $0xd9c] ss:$28 sps:$4 sm:$0xff]   ;;  %v7781_v15 = vld [vmem:[%s10696_s7 + $0xdd4] ss:$28 sps:$4 sm:$0xff]  }
 0x38e   :  { %5693 = vmatpush1.bf16.msra.mxu1 %v7704_v25  ;;  %5865 = vmatpush1.bf16.msra.mxu0 %v7707_v28  ;;  %v7773_v22 = vld [vmem:[%s10696_s7 + $0xd98] ss:$28 sps:$4 sm:$0xff]   ;;  %v7776_v25 = vld [vmem:[%s10696_s7 + $0xdc8] ss:$28 sps:$4 sm:$0xff]   ;;  %v7779_v28 = vld [vmem:[%s10696_s7 + $0xdd0] ss:$28 sps:$4 sm:$0xff]  }
 0x38f   :  { %5694 = vmatprep.subr.bf16.mxu1 %v7712_v29  ;;  %5866 = vmatprep.subr.bf16.mxu0 %v7715_v30  ;;  %v7784_v29 = vld [vmem:[%s10696_s7 + $0x14] ss:$28 sps:$4 sm:$0xff]  }
 0x390   :  { %v7785_v30 = vld [vmem:[%s10696_s7 + $0x1d8] ss:$28 sps:$4 sm:$0xff]  }
 0x392   :  { %5695 = vmatpush1.bf16.msra.mxu1 %v7710_v59  ;;  %5867 = vmatpush1.bf16.msra.mxu0 %v7713_v32  ;;  %v7782_v59 = vld [vmem:[%s10696_s7 + $0x10] ss:$28 sps:$4 sm:$0xff]   ;;  %v7786_v32 = vld [vmem:[%s10696_s7 + $0x18] ss:$28 sps:$4 sm:$0xff]  }
 0x393   :  { %5696 = vmatprep.subr.bf16.mxu1 %v7718_v33  ;;  %5868 = vmatprep.subr.bf16.mxu0 %v7721_v53  ;;  %v7789_v33 = vld [vmem:[%s10696_s7 + $0x4c] ss:$28 sps:$4 sm:$0xff]  }
 0x394   :  { %v7790_v53 = vld [vmem:[%s10696_s7 + $0x210] ss:$28 sps:$4 sm:$0xff]  }
 0x396   :  { %5697 = vmatpush1.bf16.msra.mxu1 %v7716_v34  ;;  %5869 = vmatpush1.bf16.msra.mxu0 %v7719_v35  ;;  %v7787_v34 = vld [vmem:[%s10696_s7 + $0x48] ss:$28 sps:$4 sm:$0xff]   ;;  %v7791_v35 = vld [vmem:[%s10696_s7 + $0x50] ss:$28 sps:$4 sm:$0xff]  }
 0x397   :  { %5698 = vmatprep.subr.bf16.mxu1 %v7724_v37  ;;  %5870 = vmatprep.subr.bf16.mxu0 %v7727_v19  ;;  %v7794_v37 = vld [vmem:[%s10696_s7 + $0x84] ss:$28 sps:$4 sm:$0xff]  }
 0x398   :  { %v7795_v19 = vld [vmem:[%s10696_s7 + $0x248] ss:$28 sps:$4 sm:$0xff]  }
 0x39a   :  { %5699 = vmatpush1.bf16.msra.mxu1 %v7722_v20  ;;  %5871 = vmatpush1.bf16.msra.mxu0 %v7725_v21  ;;  %v7792_v20 = vld [vmem:[%s10696_s7 + $0x80] ss:$28 sps:$4 sm:$0xff]  }
 0x39b   :  { %5700 = vmatprep.subr.bf16.mxu1 %v7730_v24  ;;  %5872 = vmatprep.subr.bf16.mxu0 %v7733_v26  ;;  %v7799_v21 = vld [vmem:[%s10696_s7 + $0xbc] ss:$28 sps:$4 sm:$0xff]  }
 0x39c   :  { %v7800_v24 = vld [vmem:[%s10696_s7 + $0x280] ss:$28 sps:$4 sm:$0xff]   ;;  %v7797_v26 = vld [vmem:[%s10696_s7 + $0xb8] ss:$28 sps:$4 sm:$0xff]  }
 0x39e   :  { %5701 = vmatpush1.bf16.msra.mxu1 %v7728_v27  ;;  %5873 = vmatpush1.bf16.msra.mxu0 %v7731_v38  ;;  %v7801_v27 = vld [vmem:[%s10696_s7 + $0xc0] ss:$28 sps:$4 sm:$0xff]   ;;  %v7804_v38 = vld [vmem:[%s10696_s7 + $0xf4] ss:$28 sps:$4 sm:$0xff]  }
 0x39f   :  { %5702 = vmatprep.subr.bf16.mxu1 %v7736_v39  ;;  %5874 = vmatprep.subr.bf16.mxu0 %v7739_v40  ;;  %v7805_v39 = vld [vmem:[%s10696_s7 + $0x2b8] ss:$28 sps:$4 sm:$0xff]   ;;  %v7802_v40 = vld [vmem:[%s10696_s7 + $0xf0] ss:$28 sps:$4 sm:$0xff]  }
 0x3a2   :  { %5703 = vmatpush1.bf16.msra.mxu1 %v7734_v42  ;;  %5875 = vmatpush1.bf16.msra.mxu0 %v7737_v43  ;;  %v7806_v42 = vld [vmem:[%s10696_s7 + $0xf8] ss:$28 sps:$4 sm:$0xff]   ;;  %v7809_v43 = vld [vmem:[%s10696_s7 + $0x12c] ss:$28 sps:$4 sm:$0xff]  }
 0x3a3   :  { %5704 = vmatprep.subr.bf16.mxu1 %v7742_v44  ;;  %5876 = vmatprep.subr.bf16.mxu0 %v7745_v47  ;;  %v7810_v44 = vld [vmem:[%s10696_s7 + $0x2f0] ss:$28 sps:$4 sm:$0xff]   ;;  %v7807_v47 = vld [vmem:[%s10696_s7 + $0x128] ss:$28 sps:$4 sm:$0xff]  }
 0x3a6   :  { %5705 = vmatpush1.bf16.msra.mxu1 %v7740_v49  ;;  %5877 = vmatpush1.bf16.msra.mxu0 %v7743_v50  ;;  %v7811_v49 = vld [vmem:[%s10696_s7 + $0x130] ss:$28 sps:$4 sm:$0xff]   ;;  %v7814_v50 = vld [vmem:[%s10696_s7 + $0x164] ss:$28 sps:$4 sm:$0xff]  }
 0x3a7   :  { %5706 = vmatprep.subr.bf16.mxu1 %v7748_v51  ;;  %5878 = vmatprep.subr.bf16.mxu0 %v7751_v52  ;;  %v7815_v51 = vld [vmem:[%s10696_s7 + $0x328] ss:$28 sps:$4 sm:$0xff]   ;;  %v7812_v52 = vld [vmem:[%s10696_s7 + $0x160] ss:$28 sps:$4 sm:$0xff]  }
 0x3aa   :  { %5707 = vmatpush1.bf16.msra.mxu1 %v7746_v57  ;;  %5879 = vmatpush1.bf16.msra.mxu0 %v7749_v58  ;;  %v7816_v57 = vld [vmem:[%s10696_s7 + $0x168] ss:$28 sps:$4 sm:$0xff]   ;;  %v7819_v58 = vld [vmem:[%s10696_s7 + $0x19c] ss:$28 sps:$4 sm:$0xff]  }
 0x3ab   :  { %5708 = vmatprep.subr.bf16.mxu1 %v7754_v60  ;;  %5880 = vmatprep.subr.bf16.mxu0 %v7757_v61  ;;  %v7820_v60 = vld [vmem:[%s10696_s7 + $0x360] ss:$28 sps:$4 sm:$0xff]   ;;  %v7817_v61 = vld [vmem:[%s10696_s7 + $0x198] ss:$28 sps:$4 sm:$0xff]  }
 0x3ae   :  { %5709 = vmatpush1.bf16.msra.mxu1 %v7752_v2  ;;  %5881 = vmatpush1.bf16.msra.mxu0 %v7755_v7  ;;  %v7821_v2 = vld [vmem:[%s10696_s7 + $0x1a0] ss:$28 sps:$4 sm:$0xff]   ;;  %v7824_v7 = vld [vmem:[%s10696_s7 + $0x1d4] ss:$28 sps:$4 sm:$0xff]  }
 0x3af   :  { %5710 = vmatprep.subr.bf16.mxu1 %v7760_v17  ;;  %5882 = vmatprep.subr.bf16.mxu0 %v7763_v46  ;;  %v7825_v17 = vld [vmem:[%s10696_s7 + $0x558] ss:$28 sps:$4 sm:$0xff]   ;;  %v7822_v46 = vld [vmem:[%s10696_s7 + $0x1d0] ss:$28 sps:$4 sm:$0xff]  }
 0x3b2   :  { %5711 = vmatpush1.bf16.msra.mxu1 %v7758_v8  ;;  %5883 = vmatpush1.bf16.msra.mxu0 %v7761_v9  ;;  %v7826_v8 = vld [vmem:[%s10696_s7 + $0x398] ss:$28 sps:$4 sm:$0xff]   ;;  %v7829_v9 = vld [vmem:[%s10696_s7 + $0x20c] ss:$28 sps:$4 sm:$0xff]  }
 0x3b3   :  { %5712 = vmatprep.subr.bf16.mxu1 %v7766_v11  ;;  %5884 = vmatprep.subr.bf16.mxu0 %v7769_v12  ;;  %v7830_v11 = vld [vmem:[%s10696_s7 + $0x590] ss:$28 sps:$4 sm:$0xff]   ;;  %v7827_v12 = vld [vmem:[%s10696_s7 + $0x208] ss:$28 sps:$4 sm:$0xff]  }
 0x3b6   :  { %5713 = vmatpush1.bf16.msra.mxu1 %v7764_v13  ;;  %5885 = vmatpush1.bf16.msra.mxu0 %v7767_v14  ;;  %v7831_v13 = vld [vmem:[%s10696_s7 + $0x3d0] ss:$28 sps:$4 sm:$0xff]   ;;  %v7834_v14 = vld [vmem:[%s10696_s7 + $0x244] ss:$28 sps:$4 sm:$0xff]  }
 0x3b7   :  { %5714 = vmatprep.subr.bf16.mxu1 %v7772_v16  ;;  %5886 = vmatprep.subr.bf16.mxu0 %v7775_v18  ;;  %v7835_v16 = vld [vmem:[%s10696_s7 + $0x5c8] ss:$28 sps:$4 sm:$0xff]   ;;  %v7832_v18 = vld [vmem:[%s10696_s7 + $0x240] ss:$28 sps:$4 sm:$0xff]  }
 0x3ba   :  { %5715 = vmatpush1.bf16.msra.mxu1 %v7770_v48  ;;  %5887 = vmatpush1.bf16.msra.mxu0 %v7773_v22  ;;  %v7836_v48 = vld [vmem:[%s10696_s7 + $0x408] ss:$28 sps:$4 sm:$0xff]   ;;  %v7839_v22 = vld [vmem:[%s10696_s7 + $0x27c] ss:$28 sps:$4 sm:$0xff]  }
 0x3bb   :  { %5716 = vmatprep.subr.bf16.mxu1 %v7778_v23  ;;  %5888 = vmatprep.subr.bf16.mxu0 %v7781_v15  ;;  %v7840_v23 = vld [vmem:[%s10696_s7 + $0x600] ss:$28 sps:$4 sm:$0xff]   ;;  %v7837_v15 = vld [vmem:[%s10696_s7 + $0x278] ss:$28 sps:$4 sm:$0xff]  }
 0x3be   :  { %5717 = vmatpush1.bf16.msra.mxu1 %v7776_v25  ;;  %5889 = vmatpush1.bf16.msra.mxu0 %v7779_v28  ;;  %v7841_v25 = vld [vmem:[%s10696_s7 + $0x440] ss:$28 sps:$4 sm:$0xff]   ;;  %v7844_v28 = vld [vmem:[%s10696_s7 + $0x2b4] ss:$28 sps:$4 sm:$0xff]  }
 0x3bf   :  { %5901 = vmatprep.subr.bf16.mxu1 %v7784_v29  ;;  %7108 = vmatprep.subr.bf16.mxu0 %v7785_v30  ;;  %v7845_v29 = vld [vmem:[%s10696_s7 + $0x638] ss:$28 sps:$4 sm:$0xff]   ;;  %v7842_v30 = vld [vmem:[%s10696_s7 + $0x2b0] ss:$28 sps:$4 sm:$0xff]  }
 0x3c1   :  { %5719 = vmatmul.mubr.bf16.vlgmr.msra.gmra.mrb[8].mxu1 %v9851_v3  ;;  %5891 = vmatmul.mubr.bf16.vlgmr.msra.gmra.mrb[20].mxu0 %v9851_v3 }
 0x3c2   :  { %5902 = vmatpush1.bf16.msra.mxu1 %v7782_v59  ;;  %5933 = vmatprep.mubr.bf16.mxu1 %v9442_v63  ;;  %v7846_v59 = vld [vmem:[%s10696_s7 + $0x478] ss:$28 sps:$4 sm:$0xff]  }
 0x3c3   :  { %7109 = vmatpush3.bf16.msra.mxu0 %v7786_v32  ;;  %6105 = vmatprep.mubr.bf16.mxu0 %v9442_v63  ;;  %v7796_v63 = vld [vmem:[%s10696_s7 + $0x88] ss:$28 sps:$4 sm:$0xff]  }
 0x3c4   :  { %5903 = vmatprep.subr.bf16.mxu1 %v7789_v33  ;;  %7110 = vmatprep.subr.bf16.mxu0 %v7790_v53  ;;  %v7849_v32 = vld [vmem:[%s10696_s7 + $0x2ec] ss:$28 sps:$4 sm:$0xff]  }
 0x3c5   :  { %v7850_v33 = vld [vmem:[%s10696_s7 + $0x670] ss:$28 sps:$4 sm:$0xff]   ;;  %v7847_v53 = vld [vmem:[%s10696_s7 + $0x2e8] ss:$28 sps:$4 sm:$0xff]  }
 0x3c6   :  { %5904 = vmatpush1.bf16.msra.mxu1 %v7787_v34  ;;  %v7851_v34 = vld [vmem:[%s10696_s7 + $0x4b0] ss:$28 sps:$4 sm:$0xff]  }
 0x3c7   :  { %7111 = vmatpush3.bf16.msra.mxu0 %v7791_v35  ;;  %5905 = vmatprep.subr.bf16.mxu1 %v7794_v37  ;;  %v7854_v35 = vld [vmem:[%s10696_s7 + $0x324] ss:$28 sps:$4 sm:$0xff]  }
 0x3c8   :  { %7112 = vmatprep.subr.bf16.mxu0 %v7795_v19  ;;  %v7855_v37 = vld [vmem:[%s10696_s7 + $0x6a8] ss:$28 sps:$4 sm:$0xff]   ;;  %v7852_v19 = vld [vmem:[%s10696_s7 + $0x320] ss:$28 sps:$4 sm:$0xff]  }
 0x3ca   :  { %5906 = vmatpush1.bf16.msra.mxu1 %v7792_v20  ;;  %v7856_v20 = vld [vmem:[%s10696_s7 + $0x4e8] ss:$28 sps:$4 sm:$0xff]  }
 0x3cb   :  { %7113 = vmatpush3.bf16.msra.mxu0 %v7796_v63  ;;  %5907 = vmatprep.subr.bf16.mxu1 %v7799_v21  ;;  %v7859_v63 = vld [vmem:[%s10696_s7 + $0x35c] ss:$28 sps:$4 sm:$0xff]  }
 0x3cc   :  { %7114 = vmatprep.subr.bf16.mxu0 %v7800_v24  ;;  %v7860_v21 = vld [vmem:[%s10696_s7 + $0x6e0] ss:$28 sps:$4 sm:$0xff]   ;;  %v7857_v24 = vld [vmem:[%s10696_s7 + $0x358] ss:$28 sps:$4 sm:$0xff]  }
 0x3ce   :  { %5908 = vmatpush1.bf16.msra.mxu1 %v7797_v26  ;;  %v7861_v26 = vld [vmem:[%s10696_s7 + $0x520] ss:$28 sps:$4 sm:$0xff]  }
 0x3cf   :  { %7115 = vmatpush3.bf16.msra.mxu0 %v7801_v27  ;;  %5909 = vmatprep.subr.bf16.mxu1 %v7804_v38  ;;  %v7864_v27 = vld [vmem:[%s10696_s7 + $0x394] ss:$28 sps:$4 sm:$0xff]  }
 0x3d0   :  { %7116 = vmatprep.subr.bf16.mxu0 %v7805_v39  ;;  %v7865_v38 = vld [vmem:[%s10696_s7 + $0x8d8] ss:$28 sps:$4 sm:$0xff]   ;;  %v7862_v39 = vld [vmem:[%s10696_s7 + $0x390] ss:$28 sps:$4 sm:$0xff]  }
 0x3d2   :  { %5910 = vmatpush1.bf16.msra.mxu1 %v7802_v40  ;;  %v7866_v40 = vld [vmem:[%s10696_s7 + $0x718] ss:$28 sps:$4 sm:$0xff]  }
 0x3d3   :  { %7117 = vmatpush3.bf16.msra.mxu0 %v7806_v42  ;;  %5911 = vmatprep.subr.bf16.mxu1 %v7809_v43  ;;  %v7869_v42 = vld [vmem:[%s10696_s7 + $0x3cc] ss:$28 sps:$4 sm:$0xff]  }
 0x3d4   :  { %7118 = vmatprep.subr.bf16.mxu0 %v7810_v44  ;;  %v7870_v43 = vld [vmem:[%s10696_s7 + $0x910] ss:$28 sps:$4 sm:$0xff]   ;;  %v7867_v44 = vld [vmem:[%s10696_s7 + $0x3c8] ss:$28 sps:$4 sm:$0xff]  }
 0x3d6   :  { %5912 = vmatpush1.bf16.msra.mxu1 %v7807_v47  ;;  %v7871_v47 = vld [vmem:[%s10696_s7 + $0x750] ss:$28 sps:$4 sm:$0xff]  }
 0x3d7   :  { %7119 = vmatpush3.bf16.msra.mxu0 %v7811_v49  ;;  %5913 = vmatprep.subr.bf16.mxu1 %v7814_v50  ;;  %v7875_v49 = vld [vmem:[%s10696_s7 + $0x948] ss:$28 sps:$4 sm:$0xff]  }
 0x3d8   :  { %7120 = vmatprep.subr.bf16.mxu0 %v7815_v51  ;;  %v7876_v50 = vld [vmem:[%s10696_s7 + $0x788] ss:$28 sps:$4 sm:$0xff]   ;;  %v7879_v51 = vld [vmem:[%s10696_s7 + $0x43c] ss:$28 sps:$4 sm:$0xff]  }
 0x3da   :  { %5914 = vmatpush1.bf16.msra.mxu1 %v7812_v52  ;;  %v7880_v52 = vld [vmem:[%s10696_s7 + $0x980] ss:$28 sps:$4 sm:$0xff]  }
 0x3db   :  { %7121 = vmatpush3.bf16.msra.mxu0 %v7816_v57  ;;  %5915 = vmatprep.subr.bf16.mxu1 %v7819_v58  ;;  %v7877_v57 = vld [vmem:[%s10696_s7 + $0x438] ss:$28 sps:$4 sm:$0xff]   ;;  %v7881_v58 = vld [vmem:[%s10696_s7 + $0x7c0] ss:$28 sps:$4 sm:$0xff]  }
 0x3dc   :  { %7122 = vmatprep.subr.bf16.mxu0 %v7820_v60  ;;  %v7884_v60 = vld [vmem:[%s10696_s7 + $0x474] ss:$28 sps:$4 sm:$0xff]  }
 0x3de   :  { %5916 = vmatpush1.bf16.msra.mxu1 %v7817_v61  ;;  %v7885_v61 = vld [vmem:[%s10696_s7 + $0x9b8] ss:$28 sps:$4 sm:$0xff]  }
 0x3df   :  { %7123 = vmatpush3.bf16.msra.mxu0 %v7821_v2  ;;  %5917 = vmatprep.subr.bf16.mxu1 %v7824_v7  ;;  %v7882_v2 = vld [vmem:[%s10696_s7 + $0x470] ss:$28 sps:$4 sm:$0xff]   ;;  %v7886_v7 = vld [vmem:[%s10696_s7 + $0x7f8] ss:$28 sps:$4 sm:$0xff]  }
 0x3e0   :  { %7130 = vmatprep.subr.bf16.mxu0 %v7825_v17  ;;  %v7889_v17 = vld [vmem:[%s10696_s7 + $0x4ac] ss:$28 sps:$4 sm:$0xff]  }
 0x3e2   :  { %6106 = vmatmul.mubr.bf16.vlgmr.msra.gmra.mrb[24].mxu0 %v9432_v55  ;;  %5918 = vmatpush1.bf16.msra.mxu1 %v7822_v46  ;;  %v7890_v46 = vld [vmem:[%s10696_s7 + $0x9f0] ss:$28 sps:$4 sm:$0xff]  }
 0x3e3   :  { %7131 = vmatpush3.bf16.msra.mxu0 %v7826_v8  ;;  %6146 = vmatprep.mubr.bf16.mxu0 %v9444_v0  ;;  %v7887_v8 = vld [vmem:[%s10696_s7 + $0x4a8] ss:$28 sps:$4 sm:$0xff]  }
 0x3e4   :  { %5919 = vmatprep.subr.bf16.mxu1 %v7829_v9  ;;  %7132 = vmatprep.subr.bf16.mxu0 %v7830_v11  ;;  %v7891_v9 = vld [vmem:[%s10696_s7 + $0x830] ss:$28 sps:$4 sm:$0xff]   ;;  %v7894_v11 = vld [vmem:[%s10696_s7 + $0x4e4] ss:$28 sps:$4 sm:$0xff]  }
 0x3e6   :  { %5920 = vmatpush1.bf16.msra.mxu1 %v7827_v12  ;;  %v7895_v12 = vld [vmem:[%s10696_s7 + $0xa28] ss:$28 sps:$4 sm:$0xff]  }
 0x3e7   :  { %7133 = vmatpush3.bf16.msra.mxu0 %v7831_v13  ;;  %5921 = vmatprep.subr.bf16.mxu1 %v7834_v14  ;;  %v7892_v13 = vld [vmem:[%s10696_s7 + $0x4e0] ss:$28 sps:$4 sm:$0xff]   ;;  %v7896_v14 = vld [vmem:[%s10696_s7 + $0x868] ss:$28 sps:$4 sm:$0xff]  }
 0x3e8   :  { %7134 = vmatprep.subr.bf16.mxu0 %v7835_v16  ;;  %v7899_v16 = vld [vmem:[%s10696_s7 + $0x51c] ss:$28 sps:$4 sm:$0xff]  }
 0x3ea   :  { %5922 = vmatpush1.bf16.msra.mxu1 %v7832_v18  ;;  %v7900_v18 = vld [vmem:[%s10696_s7 + $0xa60] ss:$28 sps:$4 sm:$0xff]  }
 0x3eb   :  { %7135 = vmatpush3.bf16.msra.mxu0 %v7836_v48  ;;  %5923 = vmatprep.subr.bf16.mxu1 %v7839_v22  ;;  %v7897_v48 = vld [vmem:[%s10696_s7 + $0x518] ss:$28 sps:$4 sm:$0xff]   ;;  %v7901_v22 = vld [vmem:[%s10696_s7 + $0x8a0] ss:$28 sps:$4 sm:$0xff]  }
 0x3ec   :  { %7136 = vmatprep.subr.bf16.mxu0 %v7840_v23  ;;  %v7904_v23 = vld [vmem:[%s10696_s7 + $0x554] ss:$28 sps:$4 sm:$0xff]  }
 0x3ee   :  { %5924 = vmatpush1.bf16.msra.mxu1 %v7837_v15  ;;  %v7905_v15 = vld [vmem:[%s10696_s7 + $0xc58] ss:$28 sps:$4 sm:$0xff]  }
 0x3ef   :  { %7137 = vmatpush3.bf16.msra.mxu0 %v7841_v25  ;;  %5925 = vmatprep.subr.bf16.mxu1 %v7844_v28  ;;  %v7902_v25 = vld [vmem:[%s10696_s7 + $0x550] ss:$28 sps:$4 sm:$0xff]   ;;  %v7906_v28 = vld [vmem:[%s10696_s7 + $0xa98] ss:$28 sps:$4 sm:$0xff]  }
 0x3f0   :  { %7138 = vmatprep.subr.bf16.mxu0 %v7845_v29  ;;  %v7909_v29 = vld [vmem:[%s10696_s7 + $0x58c] ss:$28 sps:$4 sm:$0xff]  }
 0x3f2   :  { %5926 = vmatpush1.bf16.msra.mxu1 %v7842_v30  ;;  %v7910_v30 = vld [vmem:[%s10696_s7 + $0xc90] ss:$28 sps:$4 sm:$0xff]  }
 0x3f3   :  { %7139 = vmatpush3.bf16.msra.mxu0 %v7846_v59  ;;  %5927 = vmatprep.subr.bf16.mxu1 %v7849_v32  ;;  %v7907_v59 = vld [vmem:[%s10696_s7 + $0x588] ss:$28 sps:$4 sm:$0xff]   ;;  %v7911_v32 = vld [vmem:[%s10696_s7 + $0xad0] ss:$28 sps:$4 sm:$0xff]  }
 0x3f4   :  { %7140 = vmatprep.subr.bf16.mxu0 %v7850_v33  ;;  %v7914_v33 = vld [vmem:[%s10696_s7 + $0x5c4] ss:$28 sps:$4 sm:$0xff]  }
 0x3f6   :  { %5928 = vmatpush1.bf16.msra.mxu1 %v7847_v53  ;;  %v7915_v53 = vld [vmem:[%s10696_s7 + $0xcc8] ss:$28 sps:$4 sm:$0xff]  }
 0x3f7   :  { %7141 = vmatpush3.bf16.msra.mxu0 %v7851_v34  ;;  %5929 = vmatprep.subr.bf16.mxu1 %v7854_v35  ;;  %v7912_v34 = vld [vmem:[%s10696_s7 + $0x5c0] ss:$28 sps:$4 sm:$0xff]   ;;  %v7916_v35 = vld [vmem:[%s10696_s7 + $0xb08] ss:$28 sps:$4 sm:$0xff]  }
 0x3f8   :  { %7142 = vmatprep.subr.bf16.mxu0 %v7855_v37  ;;  %v7919_v37 = vld [vmem:[%s10696_s7 + $0x5fc] ss:$28 sps:$4 sm:$0xff]  }
 0x3fa   :  { %5930 = vmatpush1.bf16.msra.mxu1 %v7852_v19  ;;  %v7920_v19 = vld [vmem:[%s10696_s7 + $0xd00] ss:$28 sps:$4 sm:$0xff]  }
 0x3fb   :  { %7143 = vmatpush3.bf16.msra.mxu0 %v7856_v20  ;;  %5931 = vmatprep.subr.bf16.mxu1 %v7859_v63  ;;  %v7917_v20 = vld [vmem:[%s10696_s7 + $0x5f8] ss:$28 sps:$4 sm:$0xff]   ;;  %v7921_v63 = vld [vmem:[%s10696_s7 + $0xb40] ss:$28 sps:$4 sm:$0xff]  }
 0x3fc   :  { %7144 = vmatprep.subr.bf16.mxu0 %v7860_v21  ;;  %v7924_v21 = vld [vmem:[%s10696_s7 + $0x634] ss:$28 sps:$4 sm:$0xff]  }
 0x3fe   :  { %5932 = vmatpush1.bf16.msra.mxu1 %v7857_v24  ;;  %v7925_v24 = vld [vmem:[%s10696_s7 + $0xd38] ss:$28 sps:$4 sm:$0xff]  }
 0x3ff   :  { %7145 = vmatpush3.bf16.msra.mxu0 %v7861_v26  ;;  %5944 = vmatprep.subr.bf16.mxu1 %v7864_v27  ;;  %v7922_v26 = vld [vmem:[%s10696_s7 + $0x630] ss:$28 sps:$4 sm:$0xff]   ;;  %v7926_v27 = vld [vmem:[%s10696_s7 + $0xb78] ss:$28 sps:$4 sm:$0xff]  }
 0x400   :  { %7152 = vmatprep.subr.bf16.mxu0 %v7865_v38  ;;  %v7929_v38 = vld [vmem:[%s10696_s7 + $0x66c] ss:$28 sps:$4 sm:$0xff]  }
 0x401   :  { %5934 = vmatmul.mubr.bf16.vlgmr.msra.gmra.mrb[12].mxu1 %v9432_v55  ;;  %v7874_v55 = vld [vmem:[%s10696_s7 + $0x404] ss:$28 sps:$4 sm:$0xff]  }
 0x402   :  { %6147 = vmatmul.mubr.bf16.vlgmr.msra.gmra.mrb[28].mxu0 %v9434_v56  ;;  %5945 = vmatpush1.bf16.msra.mxu1 %v7862_v39  ;;  %v7930_v39 = vld [vmem:[%s10696_s7 + $0xd70] ss:$28 sps:$4 sm:$0xff]  }
 0x403   :  { %5976 = vmatprep.mubr.bf16.mxu1 %v9444_v0  ;;  %7153 = vmatpush3.bf16.msra.mxu0 %v7866_v40  ;;  %v7872_v0 = vld [vmem:[%s10696_s7 + $0x400] ss:$28 sps:$4 sm:$0xff]   ;;  %v7927_v40 = vld [vmem:[%s10696_s7 + $0x668] ss:$28 sps:$4 sm:$0xff]  }
 0x404   :  { %6187 = vmatprep.mubr.bf16.mxu0 %v9854_v45  ;;  %5946 = vmatprep.subr.bf16.mxu1 %v7869_v42  ;;  %v7931_v42 = vld [vmem:[%s10696_s7 + $0xbb0] ss:$28 sps:$4 sm:$0xff]  }
 0x405   :  { %7154 = vmatprep.subr.bf16.mxu0 %v7870_v43  ;;  %v7934_v43 = vld [vmem:[%s10696_s7 + $0x6a4] ss:$28 sps:$4 sm:$0xff]  }
 0x406   :  { %5947 = vmatpush1.bf16.msra.mxu1 %v7867_v44  ;;  %v7935_v44 = vld [vmem:[%s10696_s7 + $0xda8] ss:$28 sps:$4 sm:$0xff]  }
 0x407   :  { %7155 = vmatpush3.bf16.msra.mxu0 %v7871_v47  ;;  %5948 = vmatprep.subr.bf16.mxu1 %v7874_v55  ;;  %v7932_v47 = vld [vmem:[%s10696_s7 + $0x6a0] ss:$28 sps:$4 sm:$0xff]   ;;  %v7936_v55 = vld [vmem:[%s10696_s7 + $0xbe8] ss:$28 sps:$4 sm:$0xff]  }
 0x408   :  { %7156 = vmatprep.subr.bf16.mxu0 %v7875_v49  ;;  %v7939_v49 = vld [vmem:[%s10696_s7 + $0x6dc] ss:$28 sps:$4 sm:$0xff]  }
 0x40a   :  { %5949 = vmatpush1.bf16.msra.mxu1 %v7872_v0  ;;  %v7940_v0 = vld [vmem:[%s10696_s7 + $0xde0] ss:$28 sps:$4 sm:$0xff]  }
 0x40b   :  { %7157 = vmatpush3.bf16.msra.mxu0 %v7876_v50  ;;  %5950 = vmatprep.subr.bf16.mxu1 %v7879_v51  ;;  %v7937_v50 = vld [vmem:[%s10696_s7 + $0x6d8] ss:$28 sps:$4 sm:$0xff]   ;;  %v7941_v51 = vld [vmem:[%s10696_s7 + $0xc20] ss:$28 sps:$4 sm:$0xff]  }
 0x40c   :  { %7158 = vmatprep.subr.bf16.mxu0 %v7880_v52  ;;  %v7944_v52 = vld [vmem:[%s10696_s7 + $0x714] ss:$28 sps:$4 sm:$0xff]  }
 0x40e   :  { %5951 = vmatpush1.bf16.msra.mxu1 %v7877_v57  ;;  %v7942_v57 = vld [vmem:[%s10696_s7 + $0x710] ss:$28 sps:$4 sm:$0xff]  }
 0x40f   :  { %7159 = vmatpush3.bf16.msra.mxu0 %v7881_v58  ;;  %5952 = vmatprep.subr.bf16.mxu1 %v7884_v60  ;;  %v7947_v58 = vld [vmem:[%s10696_s7 + $0x74c] ss:$28 sps:$4 sm:$0xff]  }
 0x410   :  { %7160 = vmatprep.subr.bf16.mxu0 %v7885_v61  ;;  %v7945_v60 = vld [vmem:[%s10696_s7 + $0x748] ss:$28 sps:$4 sm:$0xff]  }
 0x411   :  { %v7950_v61 = vld [vmem:[%s10696_s7 + $0x784] ss:$28 sps:$4 sm:$0xff]  }
 0x412   :  { %5953 = vmatpush1.bf16.msra.mxu1 %v7882_v2  ;;  %v7948_v2 = vld [vmem:[%s10696_s7 + $0x780] ss:$28 sps:$4 sm:$0xff]  }
 0x413   :  { %7161 = vmatpush3.bf16.msra.mxu0 %v7886_v7  ;;  %5954 = vmatprep.subr.bf16.mxu1 %v7889_v17  ;;  %v7956_v7 = vld [vmem:[%s10696_s7 + $0x7f4] ss:$28 sps:$4 sm:$0xff]  }
 0x414   :  { %7162 = vmatprep.subr.bf16.mxu0 %v7890_v46  ;;  %v7954_v17 = vld [vmem:[%s10696_s7 + $0x7f0] ss:$28 sps:$4 sm:$0xff]  }
 0x415   :  { %v7959_v46 = vld [vmem:[%s10696_s7 + $0x82c] ss:$28 sps:$4 sm:$0xff]  }
 0x416   :  { %5955 = vmatpush1.bf16.msra.mxu1 %v7887_v8  ;;  %v7957_v8 = vld [vmem:[%s10696_s7 + $0x828] ss:$28 sps:$4 sm:$0xff]  }
 0x417   :  { %7163 = vmatpush3.bf16.msra.mxu0 %v7891_v9  ;;  %5956 = vmatprep.subr.bf16.mxu1 %v7894_v11  ;;  %v7962_v9 = vld [vmem:[%s10696_s7 + $0x864] ss:$28 sps:$4 sm:$0xff]  }
 0x418   :  { %7164 = vmatprep.subr.bf16.mxu0 %v7895_v12  ;;  %v7960_v11 = vld [vmem:[%s10696_s7 + $0x860] ss:$28 sps:$4 sm:$0xff]  }
 0x419   :  { %v7965_v12 = vld [vmem:[%s10696_s7 + $0x89c] ss:$28 sps:$4 sm:$0xff]  }
 0x41a   :  { %5957 = vmatpush1.bf16.msra.mxu1 %v7892_v13  ;;  %v7963_v13 = vld [vmem:[%s10696_s7 + $0x898] ss:$28 sps:$4 sm:$0xff]  }
 0x41b   :  { %7165 = vmatpush3.bf16.msra.mxu0 %v7896_v14  ;;  %5958 = vmatprep.subr.bf16.mxu1 %v7899_v16  ;;  %v7968_v14 = vld [vmem:[%s10696_s7 + $0x8d4] ss:$28 sps:$4 sm:$0xff]  }
 0x41c   :  { %7166 = vmatprep.subr.bf16.mxu0 %v7900_v18  ;;  %v7966_v16 = vld [vmem:[%s10696_s7 + $0x8d0] ss:$28 sps:$4 sm:$0xff]  }
 0x41d   :  { %v7971_v18 = vld [vmem:[%s10696_s7 + $0x90c] ss:$28 sps:$4 sm:$0xff]  }
 0x41e   :  { %5959 = vmatpush1.bf16.msra.mxu1 %v7897_v48  ;;  %v7969_v48 = vld [vmem:[%s10696_s7 + $0x908] ss:$28 sps:$4 sm:$0xff]  }
 0x41f   :  { %7167 = vmatpush3.bf16.msra.mxu0 %v7901_v22  ;;  %5960 = vmatprep.subr.bf16.mxu1 %v7904_v23  ;;  %v7974_v22 = vld [vmem:[%s10696_s7 + $0x944] ss:$28 sps:$4 sm:$0xff]  }
 0x420   :  { %7174 = vmatprep.subr.bf16.mxu0 %v7905_v15  ;;  %v7972_v23 = vld [vmem:[%s10696_s7 + $0x940] ss:$28 sps:$4 sm:$0xff]  }
 0x421   :  { %v7977_v15 = vld [vmem:[%s10696_s7 + $0x97c] ss:$28 sps:$4 sm:$0xff]  }
 0x422   :  { %6188 = vmatmul.mubr.bf16.vlgmr.msra.gmra.mrb[32].mxu0 %v9847_v54  ;;  %5961 = vmatpush1.bf16.msra.mxu1 %v7902_v25  ;;  %v7975_v25 = vld [vmem:[%s10696_s7 + $0x978] ss:$28 sps:$4 sm:$0xff]  }
 0x423   :  { %7175 = vmatpush3.bf16.msra.mxu0 %v7906_v28  ;;  %6228 = vmatprep.mubr.bf16.mxu0 %v9862_v10  ;;  %v7980_v28 = vld [vmem:[%s10696_s7 + $0x9b4] ss:$28 sps:$4 sm:$0xff]  }
 0x424   :  { %5962 = vmatprep.subr.bf16.mxu1 %v7909_v29  ;;  %7176 = vmatprep.subr.bf16.mxu0 %v7910_v30  ;;  %v7978_v29 = vld [vmem:[%s10696_s7 + $0x9b0] ss:$28 sps:$4 sm:$0xff]  }
 0x425   :  { %v7983_v30 = vld [vmem:[%s10696_s7 + $0x9ec] ss:$28 sps:$4 sm:$0xff]  }
 0x426   :  { %5963 = vmatpush1.bf16.msra.mxu1 %v7907_v59  ;;  %v7981_v59 = vld [vmem:[%s10696_s7 + $0x9e8] ss:$28 sps:$4 sm:$0xff]  }
 0x427   :  { %7177 = vmatpush3.bf16.msra.mxu0 %v7911_v32  ;;  %5964 = vmatprep.subr.bf16.mxu1 %v7914_v33  ;;  %v7986_v32 = vld [vmem:[%s10696_s7 + $0xa24] ss:$28 sps:$4 sm:$0xff]  }
 0x428   :  { %7178 = vmatprep.subr.bf16.mxu0 %v7915_v53  ;;  %v7984_v33 = vld [vmem:[%s10696_s7 + $0xa20] ss:$28 sps:$4 sm:$0xff]  }
 0x429   :  { %v7989_v53 = vld [vmem:[%s10696_s7 + $0xa5c] ss:$28 sps:$4 sm:$0xff]  }
 0x42a   :  { %5965 = vmatpush1.bf16.msra.mxu1 %v7912_v34  ;;  %v7987_v34 = vld [vmem:[%s10696_s7 + $0xa58] ss:$28 sps:$4 sm:$0xff]  }
 0x42b   :  { %7179 = vmatpush3.bf16.msra.mxu0 %v7916_v35  ;;  %5966 = vmatprep.subr.bf16.mxu1 %v7919_v37  ;;  %v7992_v35 = vld [vmem:[%s10696_s7 + $0xa94] ss:$28 sps:$4 sm:$0xff]  }
 0x42c   :  { %7180 = vmatprep.subr.bf16.mxu0 %v7920_v19  ;;  %v7990_v37 = vld [vmem:[%s10696_s7 + $0xa90] ss:$28 sps:$4 sm:$0xff]  }
 0x42d   :  { %v7995_v19 = vld [vmem:[%s10696_s7 + $0xacc] ss:$28 sps:$4 sm:$0xff]  }
 0x42e   :  { %5967 = vmatpush1.bf16.msra.mxu1 %v7917_v20  ;;  %v7993_v20 = vld [vmem:[%s10696_s7 + $0xac8] ss:$28 sps:$4 sm:$0xff]  }
 0x42f   :  { %7181 = vmatpush3.bf16.msra.mxu0 %v7921_v63  ;;  %5968 = vmatprep.subr.bf16.mxu1 %v7924_v21  ;;  %v7998_v63 = vld [vmem:[%s10696_s7 + $0xb04] ss:$28 sps:$4 sm:$0xff]  }
 0x430   :  { %7182 = vmatprep.subr.bf16.mxu0 %v7925_v24  ;;  %v7996_v21 = vld [vmem:[%s10696_s7 + $0xb00] ss:$28 sps:$4 sm:$0xff]   ;;  %v8004_v24 = vld [vmem:[%s10696_s7 + $0xb74] ss:$28 sps:$4 sm:$0xff]  }
 0x432   :  { %5969 = vmatpush1.bf16.msra.mxu1 %v7922_v26  ;;  %v8002_v26 = vld [vmem:[%s10696_s7 + $0xb70] ss:$28 sps:$4 sm:$0xff]  }
 0x433   :  { %7183 = vmatpush3.bf16.msra.mxu0 %v7926_v27  ;;  %5970 = vmatprep.subr.bf16.mxu1 %v7929_v38  ;;  %v10580_v27 = vld [vmem:[%s10698_s8] sm:$0xff]  ;;  %v8007_v38 = vld [vmem:[%s10696_s7 + $0xbac] ss:$28 sps:$4 sm:$0xff]  }
 0x434   :  { %7184 = vmatprep.subr.bf16.mxu0 %v7930_v39  ;;  %v3221_v39 = vrot.slane %v10580_v27, %v8342_v36 }
 0x436   :  { %5971 = vmatpush1.bf16.msra.mxu1 %v7927_v40  ;;  %v3229_v40 = vrot.slane %v10580_v27, %v8785_v62 }
 0x437   :  { %7185 = vmatpush3.bf16.msra.mxu0 %v7931_v42  ;;  %5972 = vmatprep.subr.bf16.mxu1 %v7934_v43  ;;  %v3225_v42 = vrot.slane %v10580_v27, %v8354_v41  ;;  %v3233_v43 = vrot.slane %v10580_v27, %v8788_v1  ;;  %v8008_v1 = vld [vmem:[%s10696_s7 + $0xbe0] ss:$28 sps:$4 sm:$0xff]  }
 0x438   :  { %7186 = vmatprep.subr.bf16.mxu0 %v7935_v44  ;;  %v8005_v44 = vld [vmem:[%s10696_s7 + $0xba8] ss:$28 sps:$4 sm:$0xff]  }
 0x43a   :  { %5973 = vmatpush1.bf16.msra.mxu1 %v7932_v47  ;;  %v8010_v47 = vld [vmem:[%s10696_s7 + $0xbe4] ss:$28 sps:$4 sm:$0xff]  }
 0x43b   :  { %7187 = vmatpush3.bf16.msra.mxu0 %v7936_v55  ;;  %5974 = vmatprep.subr.bf16.mxu1 %v7939_v49 }
 0x43c   :  { %7188 = vmatprep.subr.bf16.mxu0 %v7940_v0 }
 0x43e   :  { %5975 = vmatpush1.bf16.msra.mxu1 %v7937_v50 }
 0x43f   :  { %7189 = vmatpush3.bf16.msra.mxu0 %v7941_v51  ;;  %5987 = vmatprep.subr.bf16.mxu1 %v7944_v52 }
 0x441   :  { %5977 = vmatmul.mubr.bf16.vlgmr.msra.gmra.mrb[12].mxu1 %v9434_v56  ;;  %v7953_v56 = vld [vmem:[%s10696_s7 + $0x7bc] ss:$28 sps:$4 sm:$0xff]  }
 0x442   :  { %6229 = vmatmul.mubr.bf16.vlgmr.msra.gmra.mrb[36].mxu0 %v9851_v3  ;;  %5988 = vmatpush1.bf16.msra.mxu1 %v7942_v57 }
 0x443   :  { %6019 = vmatprep.mubr.bf16.mxu1 %v9854_v45  ;;  %5989 = vmatprep.subr.bf16.mxu1 %v7947_v58  ;;  %v7951_v45 = vld [vmem:[%s10696_s7 + $0x7b8] ss:$28 sps:$4 sm:$0xff]  }
 0x446   :  { %5990 = vmatpush1.bf16.msra.mxu1 %v7945_v60 }
 0x447   :  { %5991 = vmatprep.subr.bf16.mxu1 %v7950_v61 }
 0x44a   :  { %5992 = vmatpush1.bf16.msra.mxu1 %v7948_v2  ;;  %v8013_v2 = vld [vmem:[%s10696_s7 + $0xc1c] ss:$28 sps:$4 sm:$0xff]  }
 0x44b   :  { %5993 = vmatprep.subr.bf16.mxu1 %v7953_v56 }
 0x44e   :  { %5994 = vmatpush1.bf16.msra.mxu1 %v7951_v45 }
 0x44f   :  { %5995 = vmatprep.subr.bf16.mxu1 %v7956_v7 }
 0x452   :  { %5996 = vmatpush1.bf16.msra.mxu1 %v7954_v17  ;;  %v8011_v17 = vld [vmem:[%s10696_s7 + $0xc18] ss:$28 sps:$4 sm:$0xff]  }
 0x453   :  { %5997 = vmatprep.subr.bf16.mxu1 %v7959_v46  ;;  %v8016_v46 = vld [vmem:[%s10696_s7 + $0xc54] ss:$28 sps:$4 sm:$0xff]  }
 0x456   :  { %5998 = vmatpush1.bf16.msra.mxu1 %v7957_v8  ;;  %v8014_v8 = vld [vmem:[%s10696_s7 + $0xc50] ss:$28 sps:$4 sm:$0xff]  }
 0x457   :  { %5999 = vmatprep.subr.bf16.mxu1 %v7962_v9  ;;  %v8019_v9 = vld [vmem:[%s10696_s7 + $0xc8c] ss:$28 sps:$4 sm:$0xff]  }
 0x45a   :  { %6000 = vmatpush1.bf16.msra.mxu1 %v7960_v11 }
 0x45b   :  { %6001 = vmatprep.subr.bf16.mxu1 %v7965_v12 }
 0x45e   :  { %6002 = vmatpush1.bf16.msra.mxu1 %v7963_v13  ;;  %v8017_v13 = vld [vmem:[%s10696_s7 + $0xc88] ss:$28 sps:$4 sm:$0xff]  }
 0x45f   :  { %6003 = vmatprep.subr.bf16.mxu1 %v7968_v14 }
 0x462   :  { %6004 = vmatpush1.bf16.msra.mxu1 %v7966_v16  ;;  %v8022_v16 = vld [vmem:[%s10696_s7 + $0xcc4] ss:$28 sps:$4 sm:$0xff]  }
 0x463   :  { %6005 = vmatprep.subr.bf16.mxu1 %v7971_v18 }
 0x466   :  { %6006 = vmatpush1.bf16.msra.mxu1 %v7969_v48 }
 0x467   :  { %6007 = vmatprep.subr.bf16.mxu1 %v7974_v22 }
 0x46a   :  { %6008 = vmatpush1.bf16.msra.mxu1 %v7972_v23 }
 0x46b   :  { %6009 = vmatprep.subr.bf16.mxu1 %v7977_v15 }
 0x46e   :  { %6010 = vmatpush1.bf16.msra.mxu1 %v7975_v25  ;;  %v8020_v25 = vld [vmem:[%s10696_s7 + $0xcc0] ss:$28 sps:$4 sm:$0xff]  }
 0x46f   :  { %6011 = vmatprep.subr.bf16.mxu1 %v7980_v28 }
 0x472   :  { %6012 = vmatpush1.bf16.msra.mxu1 %v7978_v29  ;;  %v8025_v29 = vld [vmem:[%s10696_s7 + $0xcfc] ss:$28 sps:$4 sm:$0xff]  }
 0x473   :  { %6013 = vmatprep.subr.bf16.mxu1 %v7983_v30 }
 0x476   :  { %6014 = vmatpush1.bf16.msra.mxu1 %v7981_v59 }
 0x477   :  { %6015 = vmatprep.subr.bf16.mxu1 %v7986_v32 }
 0x47a   :  { %6016 = vmatpush1.bf16.msra.mxu1 %v7984_v33  ;;  %v8023_v33 = vld [vmem:[%s10696_s7 + $0xcf8] ss:$28 sps:$4 sm:$0xff]  }
 0x47b   :  { %6017 = vmatprep.subr.bf16.mxu1 %v7989_v53  ;;  %v8028_v53 = vld [vmem:[%s10696_s7 + $0xd34] ss:$28 sps:$4 sm:$0xff]  }
 0x47e   :  { %6018 = vmatpush1.bf16.msra.mxu1 %v7987_v34  ;;  %v8026_v34 = vld [vmem:[%s10696_s7 + $0xd30] ss:$28 sps:$4 sm:$0xff]  }
 0x47f   :  { %6030 = vmatprep.subr.bf16.mxu1 %v7992_v35  ;;  %v8031_v35 = vld [vmem:[%s10696_s7 + $0xd6c] ss:$28 sps:$4 sm:$0xff]  }
 0x481   :  { %6020 = vmatmul.mubr.bf16.vlgmr.msra.gmra.mrb[12].mxu1 %v9847_v54  ;;  %v8001_v54 = vld [vmem:[%s10696_s7 + $0xb3c] ss:$28 sps:$4 sm:$0xff]  }
 0x482   :  { %6031 = vmatpush1.bf16.msra.mxu1 %v7990_v37  ;;  %6062 = vmatprep.mubr.bf16.mxu1 %v9862_v10  ;;  %v7999_v10 = vld [vmem:[%s10696_s7 + $0xb38] ss:$28 sps:$4 sm:$0xff]   ;;  %v8029_v37 = vld [vmem:[%s10696_s7 + $0xd68] ss:$28 sps:$4 sm:$0xff]  }
 0x483   :  { %6032 = vmatprep.subr.bf16.mxu1 %v7995_v19  ;;  %v8034_v19 = vld [vmem:[%s10696_s7 + $0xda4] ss:$28 sps:$4 sm:$0xff]  }
 0x486   :  { %6033 = vmatpush1.bf16.msra.mxu1 %v7993_v20 }
 0x487   :  { %6034 = vmatprep.subr.bf16.mxu1 %v7998_v63 }
 0x48a   :  { %6035 = vmatpush1.bf16.msra.mxu1 %v7996_v21  ;;  %v8032_v21 = vld [vmem:[%s10696_s7 + $0xda0] ss:$28 sps:$4 sm:$0xff]  }
 0x48b   :  { %6036 = vmatprep.subr.bf16.mxu1 %v8001_v54 }
 0x48e   :  { %6037 = vmatpush1.bf16.msra.mxu1 %v7999_v10 }
 0x48f   :  { %6038 = vmatprep.subr.bf16.mxu1 %v8004_v24  ;;  %v8037_v24 = vld [vmem:[%s10696_s7 + $0xddc] ss:$28 sps:$4 sm:$0xff]  }
 0x492   :  { %6039 = vmatpush1.bf16.msra.mxu1 %v8002_v26 }
 0x493   :  { %6040 = vmatprep.subr.bf16.mxu1 %v8007_v38 }
 0x494   :  { %v5720_v36 = vpop.f32.mrb[8].mxu1  ;;  %v5892_v55 = vpop.f32.mrb[20].mxu0 }
 0x495   :  { %v7212_v49 = vadd.f32 %v5720_v36, %v3221_v39  ;;  %v7216_v62 = vadd.f32 %v5892_v55, %v3229_v40  ;;  %v5722_v0 = vpop.f32.mrb[9].mxu1  ;;  %v5894_v50 = vpop.f32.mrb[21].mxu0 }
 0x496   :  { %v7213_v51 = vadd.f32 %v5722_v0, %v3225_v42  ;;  %v7217_v41 = vadd.f32 %v5894_v50, %v3233_v43  ;;  %v5724_v52 = vpop.f32.mrb[10].mxu1  ;;  %v5896_v57 = vpop.f32.mrb[22].mxu0  ;;  %6041 = vmatpush1.bf16.msra.mxu1 %v8005_v44 }
 0x497   :  { %8038 = vtanh.f32 %v7212_v49  ;;  %v7214_v58 = vadd.f32 %v5724_v52, %v3221_v39  ;;  %v5726_v60 = vpop.f32.mrb[11].mxu1  ;;  %v5898_v61 = vpop.f32.mrb[23].mxu0  ;;  %6042 = vmatprep.subr.bf16.mxu1 %v8010_v47  ;;  %v7218_v56 = vadd.f32 %v5896_v57, %v3229_v40  ;;  %v8035_v39 = vld [vmem:[%s10696_s7 + $0xdd8] ss:$28 sps:$4 sm:$0xff]   ;;  %v3245_v40 = vrot.slane %v10580_v27, %v1010_v5 }
 0x498   :  { %8040 = vtanh.f32 %v7216_v62  ;;  %v7215_v45 = vadd.f32 %v5726_v60, %v3225_v42  ;;  %v7219_v7 = vadd.f32 %v5898_v61, %v3233_v43 }
 0x499   :  { %8042 = vtanh.f32 %v7213_v51 }
 0x49a   :  { %8044 = vtanh.f32 %v7217_v41  ;;  %6043 = vmatpush1.bf16.msra.mxu1 %v8008_v1 }
 0x49b   :  { %8046 = vtanh.f32 %v7214_v58  ;;  %6044 = vmatprep.subr.bf16.mxu1 %v8013_v2 }
 0x49c   :  { %8048 = vtanh.f32 %v7218_v56 }
 0x49d   :  { %8050 = vtanh.f32 %v7215_v45 }
 0x49e   :  { %8052 = vtanh.f32 %v7219_v7  ;;  %6045 = vmatpush1.bf16.msra.mxu1 %v8011_v17 }
 0x49f   :  { %6046 = vmatprep.subr.bf16.mxu1 %v8016_v46 }
 0x4a1   :  { %v8039_v11 = vpop.eup %8038 }
 0x4a2   :  { %v8041_v12 = vpop.eup %8040  ;;  %6047 = vmatpush1.bf16.msra.mxu1 %v8014_v8 }
 0x4a3   :  { %v8043_v14 = vpop.eup %8042  ;;  %6048 = vmatprep.subr.bf16.mxu1 %v8019_v9 }
 0x4a4   :  { %v8045_v18 = vpop.eup %8044  ;;  %v7100_v48 = vpack.c.bf16 %v8043_v14, %v8039_v11  ;;  %v3241_v14 = vrot.slane %v10580_v27, %v1006_v6 }
 0x4a5   :  { %v8047_v22 = vpop.eup %8046  ;;  %v7101_v23 = vpack.c.bf16 %v8045_v18, %v8041_v12 }
 0x4a6   :  { %v8049_v15 = vpop.eup %8048  ;;  %6295 = vst [vmem:[%s10699_s9] sm:$0xff] %v7100_v48  ;;  %6049 = vmatpush1.bf16.msra.mxu1 %v8017_v13  ;;  %v3237_v13 = vrot.slane %v10580_v27, %v1002_v4 }
 0x4a7   :  { %v8051_v28 = vpop.eup %8050  ;;  %6296 = vst [vmem:[%s10699_s9 + $0x8] sm:$0xff] %v7101_v23  ;;  %6050 = vmatprep.subr.bf16.mxu1 %v8022_v16 }
 0x4a8   :  { %v8053_v30 = vpop.eup %8052  ;;  %v7104_v59 = vpack.c.bf16 %v8051_v28, %v8047_v22 }
 0x4a9   :  { %v7105_v32 = vpack.c.bf16 %v8053_v30, %v8049_v15 }
 0x4aa   :  { %6299 = vst [vmem:[%s10699_s9 + $0x1c] sm:$0xff] %v7104_v59  ;;  %6051 = vmatpush1.bf16.msra.mxu1 %v8020_v25 }
 0x4ab   :  { %6300 = vst [vmem:[%s10699_s9 + $0x24] sm:$0xff] %v7105_v32  ;;  %6052 = vmatprep.subr.bf16.mxu1 %v8025_v29 }
 0x4ae   :  { %6053 = vmatpush1.bf16.msra.mxu1 %v8023_v33 }
 0x4af   :  { %6054 = vmatprep.subr.bf16.mxu1 %v8028_v53 }
 0x4b2   :  { %6055 = vmatpush1.bf16.msra.mxu1 %v8026_v34 }
 0x4b3   :  { %6056 = vmatprep.subr.bf16.mxu1 %v8031_v35 }
 0x4b5   :  { %v7124_v20 = vpop.f32.mrb[24].mxu0 }
 0x4b6   :  { %v7125_v63 = vpop.f32.mrb[25].mxu0  ;;  %6057 = vmatpush1.bf16.msra.mxu1 %v8029_v37 }
 0x4b7   :  { %v7126_v54 = vadd.f32 %v7125_v63, %v7124_v20  ;;  %v7127_v10 = vpop.f32.mrb[26].mxu0  ;;  %6058 = vmatprep.subr.bf16.mxu1 %v8034_v19 }
 0x4b8   :  { %v7128_v26 = vpop.f32.mrb[27].mxu0 }
 0x4b9   :  { %v7129_v38 = vadd.f32 %v7128_v26, %v7127_v10  ;;  %v6108_v44 = vadd.f32 %v7126_v54, %v3245_v40 }
 0x4ba   :  { %6059 = vmatpush1.bf16.msra.mxu1 %v8032_v21 }
 0x4bb   :  { %6060 = vmatprep.subr.bf16.mxu1 %v8037_v24  ;;  %v6111_v49 = vadd.f32 %v7129_v38, %v3245_v40 }
 0x4be   :  { %6061 = vmatpush1.bf16.msra.mxu1 %v8035_v39 }
 0x4c1   :  { %6063 = vmatmul.mubr.bf16.vlgmr.msra.gmra.mrb[12].mxu1 %v9851_v3 }
 0x4d5   :  { %v7146_v42 = vpop.f32.mrb[28].mxu0 }
 0x4d6   :  { %v7147_v43 = vpop.f32.mrb[29].mxu0 }
 0x4d7   :  { %v7148_v47 = vadd.f32 %v7147_v43, %v7146_v42  ;;  %v7149_v36 = vpop.f32.mrb[30].mxu0 }
 0x4d8   :  { %v7150_v55 = vpop.f32.mrb[31].mxu0 }
 0x4d9   :  { %v6149_v62 = vadd.f32 %v7148_v47, %v6108_v44  ;;  %v7151_v0 = vadd.f32 %v7150_v55, %v7149_v36 }
 0x4db   :  { %v6152_v50 = vadd.f32 %v7151_v0, %v6111_v49 }
 0x4f5   :  { %v7168_v51 = vpop.f32.mrb[32].mxu0 }
 0x4f6   :  { %v7169_v41 = vpop.f32.mrb[33].mxu0 }
 0x4f7   :  { %v7170_v52 = vadd.f32 %v7169_v41, %v7168_v51  ;;  %v7171_v57 = vpop.f32.mrb[34].mxu0 }
 0x4f8   :  { %v7172_v1 = vpop.f32.mrb[35].mxu0 }
 0x4f9   :  { %v6190_v3 = vadd.f32 %v7170_v52, %v6149_v62  ;;  %v7173_v58 = vadd.f32 %v7172_v1, %v7171_v57 }
 0x4fb   :  { %v6193_v60 = vadd.f32 %v7173_v58, %v6152_v50 }
 0x515   :  { %v7190_v61 = vpop.f32.mrb[36].mxu0 }
 0x516   :  { %v7191_v5 = vpop.f32.mrb[37].mxu0 }
 0x517   :  { %v7192_v2 = vadd.f32 %v7191_v5, %v7190_v61  ;;  %v7193_v56 = vpop.f32.mrb[38].mxu0 }
 0x518   :  { %v7194_v45 = vpop.f32.mrb[39].mxu0 }
 0x519   :  { %v6231_v7 = vadd.f32 %v7192_v2, %v6190_v3  ;;  %v7195_v17 = vadd.f32 %v7194_v45, %v7193_v56 }
 0x51b   :  { %8054 = vtanh.f32 %v6231_v7  ;;  %v6234_v46 = vadd.f32 %v7195_v17, %v6193_v60 }
 0x51d   :  { %8056 = vtanh.f32 %v6234_v46 }
 0x525   :  { %v8055_v8 = vpop.eup %8054 }
 0x526   :  { %v7103_v9 = vpack.c.bf16 %v8055_v8, %v8055_v8 }
 0x527   :  { %v8057_v11 = vpop.eup %8056 }
 0x528   :  { %6298 = vst [vmem:[%s10699_s9 + $0x18] sm:$0xf] %v7103_v9  ;;  %v7107_v12 = vpack.c.bf16 %v8057_v11, %v8057_v11 }
 0x52a   :  { %6302 = vst [vmem:[%s10699_s9 + $0x34] sm:$0xf] %v7107_v12 }
 0x594   :  { %v6064_v16 = vpop.f32.mrb[12].mxu1 }
 0x595   :  { %v7220_v18 = vadd.f32 %v6064_v16, %v3237_v13  ;;  %v6066_v48 = vpop.f32.mrb[13].mxu1 }
 0x596   :  { %v7221_v22 = vadd.f32 %v6066_v48, %v3241_v14  ;;  %v6068_v23 = vpop.f32.mrb[14].mxu1 }
 0x597   :  { %8058 = vtanh.f32 %v7220_v18  ;;  %v7222_v15 = vadd.f32 %v6068_v23, %v3237_v13  ;;  %v6070_v25 = vpop.f32.mrb[15].mxu1 }
 0x598   :  { %8060 = vtanh.f32 %v7221_v22  ;;  %v7223_v28 = vadd.f32 %v6070_v25, %v3241_v14 }
 0x599   :  { %8062 = vtanh.f32 %v7222_v15 }
 0x59a   :  { %8064 = vtanh.f32 %v7223_v28 }
 0x5a1   :  { %v8059_v29 = vpop.eup %8058 }
 0x5a2   :  { %v8061_v30 = vpop.eup %8060 }
 0x5a3   :  { %v8063_v59 = vpop.eup %8062  ;;  %v7102_v4 = vpack.c.bf16 %v8061_v30, %v8059_v29 }
 0x5a4   :  { %v8065_v32 = vpop.eup %8064 }
 0x5a5   :  { %6297 = vst [vmem:[%s10699_s9 + $0x10] sm:$0xff] %v7102_v4  ;;  %v7106_v31 = vpack.c.bf16 %v8065_v32, %v8063_v59 }
 0x5a7   :  { %6301 = vst [vmem:[%s10699_s9 + $0x2c] sm:$0xff] %v7106_v31 }

</bundles_post_ra>
